<compile_context>
chip_gen: v5e
topology: v5e:2x2
jax: 0.10.0
libtpu: 0.0.40
codegen_flags: <defaults>
</compile_context>

<pallas_src>
import functools

import jax
import jax.numpy as jnp
from jax.experimental import pallas as pl
from jax.experimental.pallas import tpu as pltpu


def _round_up(x, m):
    return (x + m - 1) // m * m


def _cdiv(a, b):
    return (a + b - 1) // b


# ---------------------------------------------------------------------------
# Kernel: one batch tile through all four layers, weights resident in VMEM.
# ---------------------------------------------------------------------------
def _mlp_kernel(x_ref,
                w1_ref, b1_ref,
                w2_ref, b2_ref,
                w3_ref, b3_ref,
                w4_ref, b4_ref,
                o_ref):
    # l1 + (dropout2: identity) + relu2   -- x already bf16, no LHS cast needed
    h = jnp.dot(x_ref[...], w1_ref[...], preferred_element_type=jnp.float32)
    h = jnp.maximum(h + b1_ref[...], 0.0)
    # l3 + (dropout3: identity) + relu3
    h = jnp.dot(h.astype(jnp.bfloat16), w2_ref[...],
                preferred_element_type=jnp.float32)
    h = jnp.maximum(h + b2_ref[...], 0.0)
    # l4 + (dropout4: identity) + relu4
    h = jnp.dot(h.astype(jnp.bfloat16), w3_ref[...],
                preferred_element_type=jnp.float32)
    h = jnp.maximum(h + b3_ref[...], 0.0)
    # l5 (no activation)
    o_ref[...] = jnp.dot(h.astype(jnp.bfloat16), w4_ref[...],
                         preferred_element_type=jnp.float32) + b4_ref[...]


# ---------------------------------------------------------------------------
# Param init (PyTorch Linear style) + ONE-TIME padding / bf16 packing.
# ---------------------------------------------------------------------------
def init_params(key, input_size, num_classes):
    """Deterministic PyTorch-style Linear init: U(-1/sqrt(fan_in), 1/sqrt(fan_in)).
    Weights are (in, out) = transpose of PyTorch's (out, in)."""
    dims = [(input_size, 500), (500, 1200), (1200, 500), (500, num_classes)]
    params = []
    for (fan_in, fan_out) in dims:
        key, kw, kb = jax.random.split(key, 3)
        bound = 1.0 / jnp.sqrt(jnp.float32(fan_in))
        w = jax.random.uniform(kw, (fan_in, fan_out), jnp.float32, -bound, bound)
        b = jax.random.uniform(kb, (fan_out,), jnp.float32, -bound, bound)
        params.append((w, b))
    return params


def pack_params(params, input_size, num_classes):
    """Pad hidden/output feature dims to multiples of 128 and cast weights to
    bf16.  Done ONCE; the packed tuple is what the forward pass consumes."""
    dims = [input_size, 500, 1200, 500, num_classes]
    # Keep the input feature dim unpadded (full-extent block is legal).
    dims_p = [input_size] + [_round_up(d, 128) for d in dims[1:]]
    packed = []
    for i, (w, b) in enumerate(params):
        d_in, d_out = dims[i], dims[i + 1]
        pi, po = dims_p[i], dims_p[i + 1]
        w_p = jnp.zeros((pi, po), jnp.bfloat16).at[:d_in, :d_out].set(
            w.astype(jnp.bfloat16))
        b_p = jnp.zeros((1, po), jnp.float32).at[0, :d_out].set(b)
        packed.extend([w_p, b_p])
    return tuple(jax.device_put(p) for p in packed)


# ---------------------------------------------------------------------------
# Forward pass.
# ---------------------------------------------------------------------------
@functools.partial(jax.jit,
                   static_argnames=("input_size", "num_classes", "return_padded"))
def larger_network_forward(x, packed, *, input_size, num_classes,
                           return_padded=False):
    # Flatten exactly like torch `x.reshape(-1, input_size)`.
    # Cast to bf16 ONCE here so the x tile DMAs as bf16 and the kernel needs
    # no per-step LHS cast (numerics identical to casting inside the kernel).
    x_flat = x.reshape(-1, input_size).astype(jnp.bfloat16)
    B = x_flat.shape[0]

    # Batch tile selection:
    #   * B <= 128 : single tile, rounded up to a sublane multiple.
    #   * B  > 128 : guarantee >= 2 grid steps (so 'parallel' actually splits
    #                the batch across v7x's two TensorCores), capped at 512
    #                rows per tile to amortize the fixed per-grid-step cost.
    if B <= 128:
        TILE_B = _round_up(B, 8)
    else:
        TILE_B = min(512, max(128, _round_up(_cdiv(B, 2), 128)))
    Bp = _round_up(B, TILE_B)
    x_p = jnp.pad(x_flat, ((0, Bp - B), (0, 0)))

    out_pad = packed[-1].shape[1]          # padded num_classes (>=128, lane-dense)
    d_in = packed[0].shape[0]              # == input_size (unpadded)

    # Cost estimate (per full call, padded dims).
    w_shapes = [packed[2 * i].shape for i in range(4)]
    flops = 2 * Bp * sum(k * n for (k, n) in w_shapes)
    weight_bytes = sum(2 * k * n for (k, n) in w_shapes)          # bf16
    bias_bytes = sum(4 * packed[2 * i + 1].shape[1] for i in range(4))
    io_bytes = 2 * Bp * d_in + 4 * Bp * out_pad                   # bf16 in, f32 out
    cost = pl.CostEstimate(flops=flops, transcendentals=0,
                           bytes_accessed=weight_bytes + bias_bytes + io_bytes)

    # BlockSpecs: x/out tiled along batch; weights/biases block-constant and
    # SINGLE-buffered (constant index_map -> double-buffering only wastes VMEM).
    in_specs = [pl.BlockSpec((TILE_B, d_in), lambda i: (i, 0))]
    for arr in packed:
        in_specs.append(pl.BlockSpec(arr.shape, lambda i: (0, 0),
                                     pipeline_mode=pl.Buffered(1)))
    out_specs = pl.BlockSpec((TILE_B, out_pad), lambda i: (i, 0))

    out_p = pl.pallas_call(
        _mlp_kernel,
        out_shape=jax.ShapeDtypeStruct((Bp, out_pad), jnp.float32),
        grid=(Bp // TILE_B,),
        in_specs=in_specs,
        out_specs=out_specs,
        compiler_params=pltpu.CompilerParams(
            dimension_semantics=("parallel",),
            vmem_limit_bytes=32 << 20),
        cost_estimate=cost,
    )(x_p, *packed)

    if return_padded:
        # Consumer handles padding -> skip the extra HBM slice pass.
        return out_p
    return out_p[:B, :num_classes]


# ---------------------------------------------------------------------------
# Pure-JAX reference (same bf16 weight/activation rounding as the kernel).
# ---------------------------------------------------------------------------
def reference_forward(x, params, input_size):
    h = x.reshape(-1, input_size).astype(jnp.float32)
    for i, (w, b) in enumerate(params):
        h = jnp.dot(h.astype(jnp.bfloat16), w.astype(jnp.bfloat16),
                    preferred_element_type=jnp.float32) + b
        if i < len(params) - 1:
            h = jnp.maximum(h, 0.0)
    return h


if __name__ == "__main__":
    input_size = 64
    num_classes = 10

    key = jax.random.PRNGKey(0)
    k_x, k_p = jax.random.split(key)

    # Small input consistent with the module: flattens to (-1, input_size) = (8, 64)
    x = jax.random.normal(k_x, (2, 4, 64), dtype=jnp.float32)

    params = init_params(k_p, input_size, num_classes)
    packed = pack_params(params, input_size, num_classes)   # one-time packing

    out = larger_network_forward(x, packed, input_size=input_size,
                                 num_classes=num_classes)
    out = jax.block_until_ready(out)

    ref = reference_forward(x, params, input_size)
    assert out.shape == (8, num_classes), out.shape
    err = float(jnp.max(jnp.abs(out - ref)))
    assert jnp.allclose(out, ref, atol=1e-2, rtol=1e-2), err

    # Also exercise the multi-step (>=2 grid steps) large-batch path.
    x_big = jax.random.normal(k_x, (300, input_size), dtype=jnp.float32)
    out_big = jax.block_until_ready(
        larger_network_forward(x_big, packed, input_size=input_size,
                               num_classes=num_classes))
    ref_big = reference_forward(x_big, params, input_size)
    assert out_big.shape == (300, num_classes), out_big.shape
    err_big = float(jnp.max(jnp.abs(out_big - ref_big)))
    assert jnp.allclose(out_big, ref_big, atol=1e-2, rtol=1e-2), err_big

    print("KERNEL_OK")
</pallas_src>

<mosaic_0001>
module attributes {stable_mosaic.version = 11 : i64} {
  func.func @_mlp_kernel(%arg0: i32, %arg1: memref<8x64xbf16, #tpu.memory_space<vmem>>, %arg2: memref<64x512xbf16, #tpu.memory_space<vmem>>, %arg3: memref<1x512xf32, #tpu.memory_space<vmem>>, %arg4: memref<512x1280xbf16, #tpu.memory_space<vmem>>, %arg5: memref<1x1280xf32, #tpu.memory_space<vmem>>, %arg6: memref<1280x512xbf16, #tpu.memory_space<vmem>>, %arg7: memref<1x512xf32, #tpu.memory_space<vmem>>, %arg8: memref<512x128xbf16, #tpu.memory_space<vmem>>, %arg9: memref<1x128xf32, #tpu.memory_space<vmem>>, %arg10: memref<8x128xf32, #tpu.memory_space<vmem>>) attributes {dimension_semantics = [#tpu.dimension_semantics<parallel>], iteration_bounds = array<i64: 1>, scalar_prefetch = 0 : i64, scratch_operands = 0 : i64, tpu.core_type = #tpu.core_type<tc>, window_params = [{transform_indices = @transform_0, window_bounds = array<i64: 8, 64>}, {pipeline_mode = #tpu.pipeline_mode<synchronous>, transform_indices = @transform_1, window_bounds = array<i64: 64, 512>}, {pipeline_mode = #tpu.pipeline_mode<synchronous>, transform_indices = @transform_2, window_bounds = array<i64: 1, 512>}, {pipeline_mode = #tpu.pipeline_mode<synchronous>, transform_indices = @transform_3, window_bounds = array<i64: 512, 1280>}, {pipeline_mode = #tpu.pipeline_mode<synchronous>, transform_indices = @transform_4, window_bounds = array<i64: 1, 1280>}, {pipeline_mode = #tpu.pipeline_mode<synchronous>, transform_indices = @transform_5, window_bounds = array<i64: 1280, 512>}, {pipeline_mode = #tpu.pipeline_mode<synchronous>, transform_indices = @transform_6, window_bounds = array<i64: 1, 512>}, {pipeline_mode = #tpu.pipeline_mode<synchronous>, transform_indices = @transform_7, window_bounds = array<i64: 512, 128>}, {pipeline_mode = #tpu.pipeline_mode<synchronous>, transform_indices = @transform_8, window_bounds = array<i64: 1, 128>}, {transform_indices = @transform_9, window_bounds = array<i64: 8, 128>}]} {
    %c0 = arith.constant 0 : index
    %c0_0 = arith.constant 0 : index
    %0 = vector.load %arg1[%c0, %c0_0] : memref<8x64xbf16, #tpu.memory_space<vmem>>, vector<8x64xbf16>
    %c0_1 = arith.constant 0 : index
    %c0_2 = arith.constant 0 : index
    %1 = vector.load %arg2[%c0_1, %c0_2] : memref<64x512xbf16, #tpu.memory_space<vmem>>, vector<64x512xbf16>
    %cst = arith.constant dense<0.000000e+00> : vector<8x512xf32>
    %2 = tpu.matmul %0, %1, %cst {dimension_numbers = #tpu.dot_dimension_numbers<[1], [0], [0], [1], [0, 0, 1, 1], [], []>} : vector<8x64xbf16>, vector<64x512xbf16>, vector<8x512xf32> -> vector<8x512xf32>
    %c0_3 = arith.constant 0 : index
    %c0_4 = arith.constant 0 : index
    %3 = vector.load %arg3[%c0_3, %c0_4] : memref<1x512xf32, #tpu.memory_space<vmem>>, vector<1x512xf32>
    %4 = vector.broadcast %3 : vector<1x512xf32> to vector<8x512xf32>
    %5 = arith.addf %2, %4 : vector<8x512xf32>
    %cst_5 = arith.constant 0.000000e+00 : f32
    %6 = vector.broadcast %cst_5 : f32 to vector<8x512xf32>
    %7 = arith.maximumf %5, %6 : vector<8x512xf32>
    %8 = arith.truncf %7 : vector<8x512xf32> to vector<8x512xbf16>
    %c0_6 = arith.constant 0 : index
    %c0_7 = arith.constant 0 : index
    %9 = vector.load %arg4[%c0_6, %c0_7] : memref<512x1280xbf16, #tpu.memory_space<vmem>>, vector<512x1280xbf16>
    %cst_8 = arith.constant dense<0.000000e+00> : vector<8x1280xf32>
    %10 = tpu.matmul %8, %9, %cst_8 {dimension_numbers = #tpu.dot_dimension_numbers<[1], [0], [0], [1], [0, 0, 1, 1], [], []>} : vector<8x512xbf16>, vector<512x1280xbf16>, vector<8x1280xf32> -> vector<8x1280xf32>
    %c0_9 = arith.constant 0 : index
    %c0_10 = arith.constant 0 : index
    %11 = vector.load %arg5[%c0_9, %c0_10] : memref<1x1280xf32, #tpu.memory_space<vmem>>, vector<1x1280xf32>
    %12 = vector.broadcast %11 : vector<1x1280xf32> to vector<8x1280xf32>
    %13 = arith.addf %10, %12 : vector<8x1280xf32>
    %cst_11 = arith.constant 0.000000e+00 : f32
    %14 = vector.broadcast %cst_11 : f32 to vector<8x1280xf32>
    %15 = arith.maximumf %13, %14 : vector<8x1280xf32>
    %16 = arith.truncf %15 : vector<8x1280xf32> to vector<8x1280xbf16>
    %c0_12 = arith.constant 0 : index
    %c0_13 = arith.constant 0 : index
    %17 = vector.load %arg6[%c0_12, %c0_13] : memref<1280x512xbf16, #tpu.memory_space<vmem>>, vector<1280x512xbf16>
    %cst_14 = arith.constant dense<0.000000e+00> : vector<8x512xf32>
    %18 = tpu.matmul %16, %17, %cst_14 {dimension_numbers = #tpu.dot_dimension_numbers<[1], [0], [0], [1], [0, 0, 1, 1], [], []>} : vector<8x1280xbf16>, vector<1280x512xbf16>, vector<8x512xf32> -> vector<8x512xf32>
    %c0_15 = arith.constant 0 : index
    %c0_16 = arith.constant 0 : index
    %19 = vector.load %arg7[%c0_15, %c0_16] : memref<1x512xf32, #tpu.memory_space<vmem>>, vector<1x512xf32>
    %20 = vector.broadcast %19 : vector<1x512xf32> to vector<8x512xf32>
    %21 = arith.addf %18, %20 : vector<8x512xf32>
    %cst_17 = arith.constant 0.000000e+00 : f32
    %22 = vector.broadcast %cst_17 : f32 to vector<8x512xf32>
    %23 = arith.maximumf %21, %22 : vector<8x512xf32>
    %24 = arith.truncf %23 : vector<8x512xf32> to vector<8x512xbf16>
    %c0_18 = arith.constant 0 : index
    %c0_19 = arith.constant 0 : index
    %25 = vector.load %arg8[%c0_18, %c0_19] : memref<512x128xbf16, #tpu.memory_space<vmem>>, vector<512x128xbf16>
    %cst_20 = arith.constant dense<0.000000e+00> : vector<8x128xf32>
    %26 = tpu.matmul %24, %25, %cst_20 {dimension_numbers = #tpu.dot_dimension_numbers<[1], [0], [0], [1], [0, 0, 1, 1], [], []>} : vector<8x512xbf16>, vector<512x128xbf16>, vector<8x128xf32> -> vector<8x128xf32>
    %c0_21 = arith.constant 0 : index
    %c0_22 = arith.constant 0 : index
    %27 = vector.load %arg9[%c0_21, %c0_22] : memref<1x128xf32, #tpu.memory_space<vmem>>, vector<1x128xf32>
    %28 = vector.broadcast %27 : vector<1x128xf32> to vector<8x128xf32>
    %29 = arith.addf %26, %28 : vector<8x128xf32>
    %c0_23 = arith.constant 0 : index
    %c0_24 = arith.constant 0 : index
    %30 = vector.load %arg10[%c0_23, %c0_24] : memref<8x128xf32, #tpu.memory_space<vmem>>, vector<8x128xf32>
    tpu.vector_store %arg10[%c0_23, %c0_24], %29 {strides = array<i32>} : memref<8x128xf32, #tpu.memory_space<vmem>>, vector<8x128xf32>,
    return
  }
  func.func @transform_0(%arg0: i32) -> (i32, i32) {
    %c0_i32 = arith.constant 0 : i32
    %c0_i32_0 = arith.constant 0 : i32
    return %arg0, %c0_i32 : i32, i32
  }
  func.func @transform_1(%arg0: i32) -> (i32, i32) {
    %c0_i32 = arith.constant 0 : i32
    %c0_i32_0 = arith.constant 0 : i32
    %c0_i32_1 = arith.constant 0 : i32
    return %c0_i32, %c0_i32_0 : i32, i32
  }
  func.func @transform_2(%arg0: i32) -> (i32, i32) {
    %c0_i32 = arith.constant 0 : i32
    %c0_i32_0 = arith.constant 0 : i32
    %c0_i32_1 = arith.constant 0 : i32
    return %c0_i32, %c0_i32_0 : i32, i32
  }
  func.func @transform_3(%arg0: i32) -> (i32, i32) {
    %c0_i32 = arith.constant 0 : i32
    %c0_i32_0 = arith.constant 0 : i32
    %c0_i32_1 = arith.constant 0 : i32
    return %c0_i32, %c0_i32_0 : i32, i32
  }
  func.func @transform_4(%arg0: i32) -> (i32, i32) {
    %c0_i32 = arith.constant 0 : i32
    %c0_i32_0 = arith.constant 0 : i32
    %c0_i32_1 = arith.constant 0 : i32
    return %c0_i32, %c0_i32_0 : i32, i32
  }
  func.func @transform_5(%arg0: i32) -> (i32, i32) {
    %c0_i32 = arith.constant 0 : i32
    %c0_i32_0 = arith.constant 0 : i32
    %c0_i32_1 = arith.constant 0 : i32
    return %c0_i32, %c0_i32_0 : i32, i32
  }
  func.func @transform_6(%arg0: i32) -> (i32, i32) {
    %c0_i32 = arith.constant 0 : i32
    %c0_i32_0 = arith.constant 0 : i32
    %c0_i32_1 = arith.constant 0 : i32
    return %c0_i32, %c0_i32_0 : i32, i32
  }
  func.func @transform_7(%arg0: i32) -> (i32, i32) {
    %c0_i32 = arith.constant 0 : i32
    %c0_i32_0 = arith.constant 0 : i32
    %c0_i32_1 = arith.constant 0 : i32
    return %c0_i32, %c0_i32_0 : i32, i32
  }
  func.func @transform_8(%arg0: i32) -> (i32, i32) {
    %c0_i32 = arith.constant 0 : i32
    %c0_i32_0 = arith.constant 0 : i32
    %c0_i32_1 = arith.constant 0 : i32
    return %c0_i32, %c0_i32_0 : i32, i32
  }
  func.func @transform_9(%arg0: i32) -> (i32, i32) {
    %c0_i32 = arith.constant 0 : i32
    %c0_i32_0 = arith.constant 0 : i32
    return %arg0, %c0_i32 : i32, i32
  }
}

</mosaic_0001>

<bundles_post_ra>
// kernel: larger_network_forward.1
= control target key start
LH: loop header
LB: loop body
LE: loop exit
PB: predicated region body
PF: predicated region fallthrough
CT: control target
= control target key end

     0   :  { %14 = vsyncpa [#allocation3], 0  ;;  %s9587_s0 = inlined_call_operand.vmem [shape: bf16[8,64], index: 0, kind: input, shape index: {}]   ;;  %s9588_s1 = inlined_call_operand.hbm [shape: bf16[64,512], index: 1, kind: input, shape index: {}]   ;;  %s9589_s2 = inlined_call_operand.hbm [shape: f32[1,512], index: 2, kind: input, shape index: {}]   ;;  %s9590_s3 = inlined_call_operand.hbm [shape: bf16[512,1280], index: 3, kind: input, shape index: {}]   ;;  %s9591_s4 = inlined_call_operand.hbm [shape: f32[1,1280], index: 4, kind: input, shape index: {}]   ;;  %s9592_s5 = inlined_call_operand.hbm [shape: bf16[1280,512], index: 5, kind: input, shape index: {}]   ;;  %s9593_s6 = inlined_call_operand.hbm [shape: f32[1,512], index: 6, kind: input, shape index: {}]   ;;  %s9594_s7 = inlined_call_operand.hbm [shape: bf16[512,128], index: 7, kind: input, shape index: {}]   ;;  %s9595_s8 = inlined_call_operand.hbm [shape: f32[1,128], index: 8, kind: input, shape index: {}]   ;;  %s9596_s9 = inlined_call_operand.hbm [shape: f32[8,128], index: 9, kind: output, shape index: {}]  }
   0x1   :  { %15 = vsyncpa [#allocation6], 0 }
   0x2   :  { %16 = vsyncpa [#allocation9], 0 }
   0x3   :  { %17 = vsyncpa [#allocation12], 0 }
   0x4   :  { %18 = vsyncpa [#allocation15], 0  ;;  %s40_s11 = sshll.u32 %s9589_s2, 4  ;;  %s41_s11 = int_to_ptr.hbm [resolvable:$true] %s40_s11 }
   0x5   :  { %19 = vsyncpa [#allocation4], 0  ;;  %s9288_s12 = smov [#allocation5]   ;;  %s64_s16 = sshll.u32 %s9591_s4, 4  ;;  %s65_s16 = int_to_ptr.hbm [resolvable:$true] %s64_s16 }
   0x6   :  { %s42_s13 = sshll.u32 %s9288_s12, 4  ;;  %s9289_s17 = smov [#allocation8]   ;;  %s43_s13 = int_to_ptr.vmem [resolvable:$true] %s42_s13 }
   0x7   :  { %45 = dma.hbm_to_vmem [thread:$0]  %s41_s11, 64, %s43_s13, [#allocation6]  }
   0x8   :  { %s66_s18 = sshll.u32 %s9289_s17, 4  ;;  %s88_s21 = sshll.u32 %s9593_s6, 4  ;;  %s67_s18 = int_to_ptr.vmem [resolvable:$true] %s66_s18  ;;  %s89_s21 = int_to_ptr.hbm [resolvable:$true] %s88_s21 }
   0x9   :  { %69 = dma.hbm_to_vmem [thread:$0]  %s65_s16, 160, %s67_s18, [#allocation9]  }
   0xa   :  { %s26_s23 = sshll.u32 %s9588_s1, 4  ;;  %s9290_s24 = smov [#allocation11]   ;;  %s27_s23 = int_to_ptr.hbm [resolvable:$true] %s26_s23 }
   0xb   :  { %s90_s25 = sshll.u32 %s9290_s24, 4  ;;  %s9291_s4 = smov [#allocation2]   ;;  %s91_s25 = int_to_ptr.vmem [resolvable:$true] %s90_s25 }
   0xc   :  { %93 = dma.hbm_to_vmem [thread:$0]  %s89_s21, 64, %s91_s25, [#allocation12]  }
   0xd   :  { %s28_s26 = sshll.u32 %s9291_s4, 4  ;;  %s9292_s27 = smov 256   ;;  %s29_s26 = int_to_ptr.vmem [resolvable:$true] %s28_s26 }
   0xe   :  { %s9293_s28 = smov 16   ;;  %s50_s30 = sshll.u32 %s9590_s3, 4  ;;  %s51_s30 = int_to_ptr.hbm [resolvable:$true] %s50_s30 }
   0xf   :  { %34 = dma.hbm_to_vmem [thread:$0]  %s27_s23, 2048, %s29_s26, [#allocation3], %s9292_s27, %s9292_s27, %s9293_s28  }
  0x10   :  { %s9294_s10 = smov [#allocation7]   ;;  %s74_s13 = sshll.u32 %s9592_s5, 4  ;;  %s75_s13 = int_to_ptr.hbm [resolvable:$true] %s74_s13 }
  0x11   :  { %s52_s11 = sshll.u32 %s9294_s10, 4  ;;  %s9295_s14 = smov 640   ;;  %s53_s11 = int_to_ptr.vmem [resolvable:$true] %s52_s11 }
  0x12   :  { %s9296_s15 = smov 40   ;;  %s9297_s16 = smov [#allocation10]  }
  0x13   :  { %58 = dma.hbm_to_vmem [thread:$0]  %s51_s30, 40960, %s53_s11, [#allocation6], %s9295_s14, %s9295_s14, %s9296_s15  }
  0x14   :  { %s76_s17 = sshll.u32 %s9297_s16, 4  ;;  %s98_s20 = sshll.u32 %s9594_s7, 4  ;;  %s77_s17 = int_to_ptr.vmem [resolvable:$true] %s76_s17  ;;  %s99_s20 = int_to_ptr.hbm [resolvable:$true] %s98_s20 }
  0x15   :  { %82 = dma.hbm_to_vmem [thread:$0]  %s75_s13, 40960, %s77_s17, [#allocation9], %s9292_s27, %s9292_s27, %s9293_s28  }
  0x16   :  { %s9298_s3 = smov [#allocation13]   ;;  %s112_s5 = sshll.u32 %s9595_s8, 4  ;;  %s113_s5 = int_to_ptr.hbm [resolvable:$true] %s112_s5 }
  0x17   :  { %s100_s21 = sshll.u32 %s9298_s3, 4  ;;  %s9299_s23 = smov 64   ;;  %s101_s21 = int_to_ptr.vmem [resolvable:$true] %s100_s21 }
  0x18   :  { %s9300_s24 = smov 4   ;;  %s9301_s25 = smov [#allocation14]  }
  0x19   :  { %106 = dma.hbm_to_vmem [thread:$0]  %s99_s20, 4096, %s101_s21, [#allocation12], %s9299_s23, %s9299_s23, %s9300_s24  }
  0x1a   :  { %s114_s4 = sshll.u32 %s9301_s25, 4  ;;  %s115_s4 = int_to_ptr.vmem [resolvable:$true] %s114_s4 }
  0x1b   :  { %117 = dma.hbm_to_vmem [thread:$0]  %s113_s5, 16, %s115_s4, [#allocation15]  }
  0x1c   :  { %9276 = dma.done.wait [#allocation3], 2048  }
  0x1d   :  { %9277 = vsyncadd [#allocation3], 4294965248 }
  0x1e   :  { %9278 = dma.done.wait [#allocation6], 41024  }
  0x1f   :  { %9279 = vsyncadd [#allocation6], 4294926272 }
  0x20   :  { %9280 = dma.done.wait [#allocation9], 41120  }
  0x21   :  { %9281 = vsyncadd [#allocation9], 4294926176 }
  0x22   :  { %9282 = dma.done.wait [#allocation12], 4160  }
  0x23   :  { %9283 = vsyncadd [#allocation12], 4294963136 }
  0x24   :  { %9284 = dma.done.wait [#allocation15], 16  }
  0x25   :  { %9285 = vsyncadd [#allocation15], 4294967280  ;;  %v5648_v0 = vld [vmem:[#allocation2 + $0x60] sm:$0xf]  ;;  %v8368_v1 = vld [vmem:[#allocation2 + $0x6c] sm:$0xf0] }
  0x26   :  { %v8366_v2 = vld [vmem:[#allocation2 + $0x64] sm:$0xf]  ;;  %v5649_v3 = vor.u32 %v8368_v1, %v5648_v0  ;;  %v5650_v4 = vld [vmem:[#allocation2 + $0x70] sm:$0xf0]  ;;  %v5656_v5 = vld [vmem:[#allocation2 + $0x68] sm:$0xf] }
  0x27   :  { %v8369_v6 = vld [vmem:[#allocation2 + $0x74] sm:$0xf0]  ;;  %v5653_v7 = vor.u32 %v8366_v2, %v5650_v4  ;;  %v8367_v9 = vld [vmem:[#allocation2 + $0x6c] sm:$0xf]  ;;  %v5658_v10 = vld [vmem:[#allocation2 + $0x78] sm:$0xf0] }
  0x28   :  { %v5657_v8 = vor.u32 %v8369_v6, %v5656_v5  ;;  %v5632_v11 = vld [vmem:[#allocation2 + $0x40] sm:$0xf]  ;;  %266 = vmatpush.bf16.msra.mxu0 %v5649_v3  ;;  %v5661_v12 = vor.u32 %v8367_v9, %v5658_v10  ;;  %v8364_v13 = vld [vmem:[#allocation2 + $0x4c] sm:$0xf0]  ;;  %v8362_v14 = vld [vmem:[#allocation2 + $0x44] sm:$0xf] }
  0x29   :  { %v5634_v15 = vld [vmem:[#allocation2 + $0x50] sm:$0xf0]  ;;  %279 = vmatpush.bf16.msra.mxu1 %v5653_v7  ;;  %v5633_v16 = vor.u32 %v8364_v13, %v5632_v11  ;;  %v5640_v18 = vld [vmem:[#allocation2 + $0x48] sm:$0xf]  ;;  %v8365_v19 = vld [vmem:[#allocation2 + $0x54] sm:$0xf0] }
  0x2a   :  { %292 = vmatpush.bf16.msra.mxu2 %v5657_v8  ;;  %v5637_v17 = vor.u32 %v8362_v14, %v5634_v15  ;;  %v8363_v20 = vld [vmem:[#allocation2 + $0x4c] sm:$0xf]  ;;  %305 = vmatpush.bf16.msra.mxu3 %v5661_v12  ;;  %v5641_v21 = vor.u32 %v8365_v19, %v5640_v18  ;;  %v5642_v22 = vld [vmem:[#allocation2 + $0x58] sm:$0xf0]  ;;  %v5616_v23 = vld [vmem:[#allocation2 + $0x20] sm:$0xf] }
  0x2b   :  { %v8360_v24 = vld [vmem:[#allocation2 + $0x2c] sm:$0xf0]  ;;  %v5645_v25 = vor.u32 %v8363_v20, %v5642_v22  ;;  %v8358_v26 = vld [vmem:[#allocation2 + $0x24] sm:$0xf]  ;;  %v5618_v27 = vld [vmem:[#allocation2 + $0x30] sm:$0xf0] }
  0x2c   :  { %v5624_v28 = vld [vmem:[#allocation2 + $0x28] sm:$0xf]  ;;  %267 = vmatpush.bf16.msra.mxu0 %v5633_v16  ;;  %v5617_v29 = vor.u32 %v8360_v24, %v5616_v23  ;;  %v8361_v30 = vld [vmem:[#allocation2 + $0x34] sm:$0xf0]  ;;  %v8359_v31 = vld [vmem:[#allocation2 + $0x2c] sm:$0xf]  ;;  %v5621_v33 = vor.u32 %v8358_v26, %v5618_v27 }
  0x2d   :  { %v5626_v32 = vld [vmem:[#allocation2 + $0x38] sm:$0xf0]  ;;  %280 = vmatpush.bf16.msra.mxu1 %v5637_v17  ;;  %v5625_v34 = vor.u32 %v8361_v30, %v5624_v28  ;;  %v5600_v35 = vld [vmem:[#allocation2] sm:$0xf]  ;;  %v8356_v36 = vld [vmem:[#allocation2 + $0xc] sm:$0xf0] }
  0x2e   :  { %293 = vmatpush.bf16.msra.mxu2 %v5641_v21  ;;  %v8354_v37 = vld [vmem:[#allocation2 + $0x4] sm:$0xf]  ;;  %306 = vmatpush.bf16.msra.mxu3 %v5645_v25  ;;  %v5629_v38 = vor.u32 %v8359_v31, %v5626_v32  ;;  %v5602_v39 = vld [vmem:[#allocation2 + $0x10] sm:$0xf0]  ;;  %v5608_v40 = vld [vmem:[#allocation2 + $0x8] sm:$0xf]  ;;  %v5601_v44 = vor.u32 %v8356_v36, %v5600_v35 }
  0x2f   :  { %v8357_v41 = vld [vmem:[#allocation2 + $0x14] sm:$0xf0]  ;;  %v8355_v42 = vld [vmem:[#allocation2 + $0xc] sm:$0xf]  ;;  %v5610_v43 = vld [vmem:[#allocation2 + $0x18] sm:$0xf0]  ;;  %v5605_v48 = vor.u32 %v8354_v37, %v5602_v39 }
  0x30   :  { %268 = vmatpush.bf16.msra.mxu0 %v5617_v29  ;;  %v5948_v45 = vld [vmem:[#allocation7 + $0x230] sm:$0xf]  ;;  %v8445_v46 = vld [vmem:[#allocation7 + $0x254] sm:$0xf0]  ;;  %v5609_v49 = vor.u32 %v8357_v41, %v5608_v40  ;;  %vm258_vm0 = vcmask 523264   ;;  %v5613_v51 = vor.u32 %v8355_v42, %v5610_v43  ;;  %s5584_s29 = sshll.u32 %s9596_s9, 4  ;;  %s5585_s29 = int_to_ptr.hbm [resolvable:$true] %s5584_s29 }
  0x31   :  { %v6268_v47 = vld [vmem:[#allocation7 + $0x4b0] sm:$0xf]  ;;  %281 = vmatpush.bf16.msra.mxu1 %v5621_v33  ;;  %v8525_v50 = vld [vmem:[#allocation7 + $0x4d4] sm:$0xf0]  ;;  %v5949_v52 = vor.u32 %v8445_v46, %v5948_v45  ;;  %v5908_v53 = vld [vmem:[#allocation7 + $0x1e0] sm:$0xf] }
  0x32   :  { %294 = vmatpush.bf16.msra.mxu2 %v5625_v34  ;;  %307 = vmatpush.bf16.msra.mxu3 %v5629_v38  ;;  %v8435_v54 = vld [vmem:[#allocation7 + $0x204] sm:$0xf0]  ;;  %v6588_v55 = vld [vmem:[#allocation7 + $0x730] sm:$0xf]  ;;  %v6269_v56 = vor.u32 %v8525_v50, %v6268_v47  ;;  %v8605_v57 = vld [vmem:[#allocation7 + $0x754] sm:$0xf0] }
  0x33   :  { %v6908_v58 = vld [vmem:[#allocation7 + $0x9b0] sm:$0xf]  ;;  %v8685_v59 = vld [vmem:[#allocation7 + $0x9d4] sm:$0xf0]  ;;  %v151_v60 = vld [vmem:[%s9587_s0] sm:$0xf]  ;;  %v6589_v63 = vor.u32 %v8605_v57, %v6588_v55  ;;  %v5909_v0 = vor.u32 %v8435_v54, %v5908_v53 }
  0x34   :  { %269 = vmatpush.bf16.msra.mxu0 %v5601_v44  ;;  %v6228_v61 = vld [vmem:[#allocation7 + $0x460] sm:$0xf]  ;;  %v8515_v62 = vld [vmem:[#allocation7 + $0x484] sm:$0xf0]  ;;  %v6909_v1 = vor.u32 %v8685_v59, %v6908_v58  ;;  %v5868_v2 = vld [vmem:[#allocation7 + $0x190] sm:$0xf] }
  0x35   :  { %282 = vmatpush.bf16.msra.mxu1 %v5605_v48  ;;  %v6548_v3 = vld [vmem:[#allocation7 + $0x6e0] sm:$0xf]  ;;  %v8595_v4 = vld [vmem:[#allocation7 + $0x704] sm:$0xf0]  ;;  %v6229_v5 = vor.u32 %v8515_v62, %v6228_v61  ;;  %v8425_v6 = vld [vmem:[#allocation7 + $0x1b4] sm:$0xf0] }
  0x36   :  { %295 = vmatpush.bf16.msra.mxu2 %v5609_v49  ;;  %308 = vmatpush.bf16.msra.mxu3 %v5613_v51  ;;  %v6868_v7 = vld [vmem:[#allocation7 + $0x960] sm:$0xf]  ;;  %v8675_v8 = vld [vmem:[#allocation7 + $0x984] sm:$0xf0]  ;;  %v6188_v9 = vld [vmem:[#allocation7 + $0x410] sm:$0xf]  ;;  %v6549_v11 = vor.u32 %v8595_v4, %v6548_v3  ;;  %v5869_v12 = vor.u32 %v8425_v6, %v5868_v2 }
  0x37   :  { %5662 = vmatmul.msk.bf16.vlgmr.msra.gmra.mxu0 %vm258_vm0, %v151_v60  ;;  %v8505_v10 = vld [vmem:[#allocation7 + $0x434] sm:$0xf0]  ;;  %v6869_v13 = vor.u32 %v8675_v8, %v6868_v7  ;;  %v5828_v14 = vld [vmem:[#allocation7 + $0x140] sm:$0xf]  ;;  %v6508_v15 = vld [vmem:[#allocation7 + $0x690] sm:$0xf] }
  0x38   :  { %2266 = vmatpush.bf16.msrb.mxu0 %v5949_v52  ;;  %5663 = vmatmul.msk.bf16.vlgmr.msra.gmra.mxu1 %vm258_vm0, %v151_v60  ;;  %v8585_v16 = vld [vmem:[#allocation7 + $0x6b4] sm:$0xf0]  ;;  %v6189_v17 = vor.u32 %v8505_v10, %v6188_v9  ;;  %v8415_v18 = vld [vmem:[#allocation7 + $0x164] sm:$0xf0]  ;;  %v6828_v19 = vld [vmem:[#allocation7 + $0x910] sm:$0xf] }
  0x39   :  { %2279 = vmatpush.bf16.msrb.mxu1 %v6269_v56  ;;  %5664 = vmatmul.msk.bf16.vlgmr.msra.gmra.mxu2 %vm258_vm0, %v151_v60  ;;  %v8665_v20 = vld [vmem:[#allocation7 + $0x934] sm:$0xf0]  ;;  %v6148_v21 = vld [vmem:[#allocation7 + $0x3c0] sm:$0xf]  ;;  %v8495_v22 = vld [vmem:[#allocation7 + $0x3e4] sm:$0xf0]  ;;  %v6509_v23 = vor.u32 %v8585_v16, %v6508_v15  ;;  %v5829_v24 = vor.u32 %v8415_v18, %v5828_v14 }
  0x3a   :  { %5665 = vmatmul.msk.bf16.vlgmr.msra.gmra.mxu3 %vm258_vm0, %v151_v60  ;;  %2292 = vmatpush.bf16.msrb.mxu2 %v6589_v63  ;;  %v6829_v25 = vor.u32 %v8665_v20, %v6828_v19  ;;  %v5788_v26 = vld [vmem:[#allocation7 + $0xf0] sm:$0xf]  ;;  %v6468_v27 = vld [vmem:[#allocation7 + $0x640] sm:$0xf]  ;;  %v8575_v28 = vld [vmem:[#allocation7 + $0x664] sm:$0xf0]  ;;  %v6149_v29 = vor.u32 %v8495_v22, %v6148_v21 }
  0x3b   :  { %2305 = vmatpush.bf16.msrb.mxu3 %v6909_v1  ;;  %v8405_v30 = vld [vmem:[#allocation7 + $0x114] sm:$0xf0]  ;;  %v6788_v31 = vld [vmem:[#allocation7 + $0x8c0] sm:$0xf]  ;;  %v8655_v32 = vld [vmem:[#allocation7 + $0x8e4] sm:$0xf0]  ;;  %v6469_v35 = vor.u32 %v8575_v28, %v6468_v27 }
  0x3c   :  { %2267 = vmatpush.bf16.msrb.mxu0 %v5909_v0  ;;  %v6108_v33 = vld [vmem:[#allocation7 + $0x370] sm:$0xf]  ;;  %v8485_v34 = vld [vmem:[#allocation7 + $0x394] sm:$0xf0]  ;;  %v5789_v36 = vor.u32 %v8405_v30, %v5788_v26  ;;  %v6789_v37 = vor.u32 %v8655_v32, %v6788_v31  ;;  %v5748_v38 = vld [vmem:[#allocation7 + $0xa0] sm:$0xf] }
  0x3d   :  { %2280 = vmatpush.bf16.msrb.mxu1 %v6229_v5  ;;  %v6428_v39 = vld [vmem:[#allocation7 + $0x5f0] sm:$0xf]  ;;  %v8565_v40 = vld [vmem:[#allocation7 + $0x614] sm:$0xf0]  ;;  %v6109_v41 = vor.u32 %v8485_v34, %v6108_v33  ;;  %v8395_v42 = vld [vmem:[#allocation7 + $0xc4] sm:$0xf0] }
  0x3e   :  { %2293 = vmatpush.bf16.msrb.mxu2 %v6549_v11  ;;  %v6748_v43 = vld [vmem:[#allocation7 + $0x870] sm:$0xf]  ;;  %v8645_v44 = vld [vmem:[#allocation7 + $0x894] sm:$0xf0]  ;;  %v6068_v45 = vld [vmem:[#allocation7 + $0x320] sm:$0xf]  ;;  %v6429_v47 = vor.u32 %v8565_v40, %v6428_v39  ;;  %v5749_v48 = vor.u32 %v8395_v42, %v5748_v38 }
  0x3f   :  { %2306 = vmatpush.bf16.msrb.mxu3 %v6869_v13  ;;  %v8475_v46 = vld [vmem:[#allocation7 + $0x344] sm:$0xf0]  ;;  %v6749_v49 = vor.u32 %v8645_v44, %v6748_v43  ;;  %v5708_v50 = vld [vmem:[#allocation7 + $0x50] sm:$0xf]  ;;  %v6388_v51 = vld [vmem:[#allocation7 + $0x5a0] sm:$0xf] }
  0x40   :  { %2268 = vmatpush.bf16.msrb.mxu0 %v5869_v12  ;;  %v8555_v52 = vld [vmem:[#allocation7 + $0x5c4] sm:$0xf0]  ;;  %v6069_v53 = vor.u32 %v8475_v46, %v6068_v45  ;;  %v8385_v54 = vld [vmem:[#allocation7 + $0x74] sm:$0xf0]  ;;  %v6708_v55 = vld [vmem:[#allocation7 + $0x820] sm:$0xf] }
  0x41   :  { %2281 = vmatpush.bf16.msrb.mxu1 %v6189_v17  ;;  %v8635_v56 = vld [vmem:[#allocation7 + $0x844] sm:$0xf0]  ;;  %v6028_v57 = vld [vmem:[#allocation7 + $0x2d0] sm:$0xf]  ;;  %v8465_v58 = vld [vmem:[#allocation7 + $0x2f4] sm:$0xf0]  ;;  %v6389_v59 = vor.u32 %v8555_v52, %v6388_v51  ;;  %v5709_v61 = vor.u32 %v8385_v54, %v5708_v50 }
  0x42   :  { %2294 = vmatpush.bf16.msrb.mxu2 %v6509_v23  ;;  %v5668_v60 = vld [vmem:[#allocation7] sm:$0xf]  ;;  %v6709_v62 = vor.u32 %v8635_v56, %v6708_v55  ;;  %v8375_v63 = vld [vmem:[#allocation7 + $0x24] sm:$0xf0]  ;;  %v6348_v0 = vld [vmem:[#allocation7 + $0x550] sm:$0xf]  ;;  %v6029_v2 = vor.u32 %v8465_v58, %v6028_v57 }
  0x43   :  { %2307 = vmatpush.bf16.msrb.mxu3 %v6829_v25  ;;  %v8545_v1 = vld [vmem:[#allocation7 + $0x574] sm:$0xf0]  ;;  %v5988_v3 = vld [vmem:[#allocation7 + $0x280] sm:$0xf]  ;;  %v6668_v4 = vld [vmem:[#allocation7 + $0x7d0] sm:$0xf]  ;;  %v5669_v12 = vor.u32 %v8375_v63, %v5668_v60 }
  0x44   :  { %2269 = vmatpush.bf16.msrb.mxu0 %v5829_v24  ;;  %v8625_v5 = vld [vmem:[#allocation7 + $0x7f4] sm:$0xf0]  ;;  %v8455_v6 = vld [vmem:[#allocation7 + $0x2a4] sm:$0xf0]  ;;  %v8440_v7 = vld [vmem:[#allocation7 + $0x234] sm:$0xf]  ;;  %v6349_v11 = vor.u32 %v8545_v1, %v6348_v0 }
  0x45   :  { %2282 = vmatpush.bf16.msrb.mxu1 %v6149_v29  ;;  %v5950_v8 = vld [vmem:[#allocation7 + $0x258] sm:$0xf0]  ;;  %v8520_v9 = vld [vmem:[#allocation7 + $0x4b4] sm:$0xf]  ;;  %v6669_v13 = vor.u32 %v8625_v5, %v6668_v4  ;;  %v8430_v14 = vld [vmem:[#allocation7 + $0x1e4] sm:$0xf]  ;;  %v5989_v18 = vor.u32 %v8455_v6, %v5988_v3 }
  0x46   :  { %2295 = vmatpush.bf16.msrb.mxu2 %v6469_v35  ;;  %v6270_v10 = vld [vmem:[#allocation7 + $0x4d8] sm:$0xf0]  ;;  %v6308_v15 = vld [vmem:[#allocation7 + $0x500] sm:$0xf]  ;;  %v8535_v16 = vld [vmem:[#allocation7 + $0x524] sm:$0xf0]  ;;  %v5953_v19 = vor.u32 %v8440_v7, %v5950_v8 }
  0x47   :  { %2308 = vmatpush.bf16.msrb.mxu3 %v6789_v37  ;;  %v6628_v17 = vld [vmem:[#allocation7 + $0x780] sm:$0xf]  ;;  %v8615_v20 = vld [vmem:[#allocation7 + $0x7a4] sm:$0xf0]  ;;  %v8600_v21 = vld [vmem:[#allocation7 + $0x734] sm:$0xf]  ;;  %v6273_v23 = vor.u32 %v8520_v9, %v6270_v10  ;;  %v6309_v29 = vor.u32 %v8535_v16, %v6308_v15 }
  0x48   :  { %2270 = vmatpush.bf16.msrb.mxu0 %v5789_v36  ;;  %v6590_v22 = vld [vmem:[#allocation7 + $0x758] sm:$0xf0]  ;;  %v5910_v24 = vld [vmem:[#allocation7 + $0x208] sm:$0xf0]  ;;  %v8680_v25 = vld [vmem:[#allocation7 + $0x9b4] sm:$0xf]  ;;  %v6629_v30 = vor.u32 %v8615_v20, %v6628_v17 }
  0x49   :  { %2283 = vmatpush.bf16.msrb.mxu1 %v6109_v41  ;;  %v6910_v26 = vld [vmem:[#allocation7 + $0x9d8] sm:$0xf0]  ;;  %v8510_v27 = vld [vmem:[#allocation7 + $0x464] sm:$0xf]  ;;  %v6230_v28 = vld [vmem:[#allocation7 + $0x488] sm:$0xf0]  ;;  %v6593_v31 = vor.u32 %v8600_v21, %v6590_v22  ;;  %v5913_v33 = vor.u32 %v8430_v14, %v5910_v24 }
  0x4a   :  { %2296 = vmatpush.bf16.msrb.mxu2 %v6429_v47  ;;  %v8420_v32 = vld [vmem:[#allocation7 + $0x194] sm:$0xf]  ;;  %v6913_v34 = vor.u32 %v8680_v25, %v6910_v26  ;;  %v8590_v35 = vld [vmem:[#allocation7 + $0x6e4] sm:$0xf]  ;;  %v6550_v36 = vld [vmem:[#allocation7 + $0x708] sm:$0xf0]  ;;  %v6233_v37 = vor.u32 %v8510_v27, %v6230_v28 }
  0x4b   :  { %2309 = vmatpush.bf16.msrb.mxu3 %v6749_v49  ;;  %v5870_v38 = vld [vmem:[#allocation7 + $0x1b8] sm:$0xf0]  ;;  %v8670_v39 = vld [vmem:[#allocation7 + $0x964] sm:$0xf]  ;;  %v6870_v40 = vld [vmem:[#allocation7 + $0x988] sm:$0xf0]  ;;  %v6553_v43 = vor.u32 %v8590_v35, %v6550_v36 }
  0x4c   :  { %2271 = vmatpush.bf16.msrb.mxu0 %v5749_v48  ;;  %v8500_v41 = vld [vmem:[#allocation7 + $0x414] sm:$0xf]  ;;  %v6190_v42 = vld [vmem:[#allocation7 + $0x438] sm:$0xf0]  ;;  %v5873_v44 = vor.u32 %v8420_v32, %v5870_v38  ;;  %v6873_v45 = vor.u32 %v8670_v39, %v6870_v40  ;;  %v8410_v46 = vld [vmem:[#allocation7 + $0x144] sm:$0xf] }
  0x4d   :  { %2284 = vmatpush.bf16.msrb.mxu1 %v6069_v53  ;;  %v8580_v47 = vld [vmem:[#allocation7 + $0x694] sm:$0xf]  ;;  %v6510_v48 = vld [vmem:[#allocation7 + $0x6b8] sm:$0xf0]  ;;  %v6193_v49 = vor.u32 %v8500_v41, %v6190_v42  ;;  %v5830_v50 = vld [vmem:[#allocation7 + $0x168] sm:$0xf0] }
  0x4e   :  { %2297 = vmatpush.bf16.msrb.mxu2 %v6389_v59  ;;  %v8660_v51 = vld [vmem:[#allocation7 + $0x914] sm:$0xf]  ;;  %v6830_v52 = vld [vmem:[#allocation7 + $0x938] sm:$0xf0]  ;;  %v8490_v53 = vld [vmem:[#allocation7 + $0x3c4] sm:$0xf]  ;;  %v6513_v55 = vor.u32 %v8580_v47, %v6510_v48  ;;  %v5833_v56 = vor.u32 %v8410_v46, %v5830_v50 }
  0x4f   :  { %2310 = vmatpush.bf16.msrb.mxu3 %v6709_v62  ;;  %v6150_v54 = vld [vmem:[#allocation7 + $0x3e8] sm:$0xf0]  ;;  %v6833_v57 = vor.u32 %v8660_v51, %v6830_v52  ;;  %v8400_v58 = vld [vmem:[#allocation7 + $0xf4] sm:$0xf]  ;;  %v8570_v59 = vld [vmem:[#allocation7 + $0x644] sm:$0xf] }
  0x50   :  { %2272 = vmatpush.bf16.msrb.mxu0 %v5709_v61  ;;  %v6470_v60 = vld [vmem:[#allocation7 + $0x668] sm:$0xf0]  ;;  %v6153_v61 = vor.u32 %v8490_v53, %v6150_v54  ;;  %v5790_v62 = vld [vmem:[#allocation7 + $0x118] sm:$0xf0]  ;;  %v8650_v63 = vld [vmem:[#allocation7 + $0x8c4] sm:$0xf] }
  0x51   :  { %2285 = vmatpush.bf16.msrb.mxu1 %v6029_v2  ;;  %v6790_v0 = vld [vmem:[#allocation7 + $0x8e8] sm:$0xf0]  ;;  %v8480_v1 = vld [vmem:[#allocation7 + $0x374] sm:$0xf]  ;;  %v6110_v2 = vld [vmem:[#allocation7 + $0x398] sm:$0xf0]  ;;  %v6473_v3 = vor.u32 %v8570_v59, %v6470_v60  ;;  %v5793_v4 = vor.u32 %v8400_v58, %v5790_v62 }
  0x52   :  { %2298 = vmatpush.bf16.msrb.mxu2 %v6349_v11  ;;  %v6793_v5 = vor.u32 %v8650_v63, %v6790_v0  ;;  %v6113_v6 = vor.u32 %v8480_v1, %v6110_v2  ;;  %v8390_v7 = vld [vmem:[#allocation7 + $0xa4] sm:$0xf]  ;;  %v5750_v8 = vld [vmem:[#allocation7 + $0xc8] sm:$0xf0]  ;;  %v6430_v14 = vld [vmem:[#allocation7 + $0x618] sm:$0xf0] }
  0x53   :  { %2311 = vmatpush.bf16.msrb.mxu3 %v6669_v13  ;;  %v8470_v9 = vld [vmem:[#allocation7 + $0x324] sm:$0xf]  ;;  %v6070_v10 = vld [vmem:[#allocation7 + $0x348] sm:$0xf0]  ;;  %v5753_v11 = vor.u32 %v8390_v7, %v5750_v8  ;;  %v8560_v13 = vld [vmem:[#allocation7 + $0x5f4] sm:$0xf] }
  0x54   :  { %2273 = vmatpush.bf16.msrb.mxu0 %v5669_v12  ;;  %v6073_v12 = vor.u32 %v8470_v9, %v6070_v10  ;;  %v8640_v15 = vld [vmem:[#allocation7 + $0x874] sm:$0xf]  ;;  %v6433_v16 = vor.u32 %v8560_v13, %v6430_v14  ;;  %v6750_v17 = vld [vmem:[#allocation7 + $0x898] sm:$0xf0]  ;;  %v8550_v25 = vld [vmem:[#allocation7 + $0x5a4] sm:$0xf] }
  0x55   :  { %2286 = vmatpush.bf16.msrb.mxu1 %v5989_v18  ;;  %v6753_v18 = vor.u32 %v8640_v15, %v6750_v17  ;;  %v5710_v20 = vld [vmem:[#allocation7 + $0x78] sm:$0xf0]  ;;  %v8460_v22 = vld [vmem:[#allocation7 + $0x2d4] sm:$0xf]  ;;  %v6390_v26 = vld [vmem:[#allocation7 + $0x5c8] sm:$0xf0] }
  0x56   :  { %2299 = vmatpush.bf16.msrb.mxu2 %v6309_v29  ;;  %v8630_v27 = vld [vmem:[#allocation7 + $0x824] sm:$0xf]  ;;  %v6393_v28 = vor.u32 %v8550_v25, %v6390_v26  ;;  %v6710_v29 = vld [vmem:[#allocation7 + $0x848] sm:$0xf0]  ;;  %v6350_v38 = vld [vmem:[#allocation7 + $0x578] sm:$0xf0] }
  0x57   :  { %2312 = vmatpush.bf16.msrb.mxu3 %v6629_v30  ;;  %v6713_v30 = vor.u32 %v8630_v27, %v6710_v29  ;;  %v5670_v32 = vld [vmem:[#allocation7 + $0x28] sm:$0xf0]  ;;  %v8620_v40 = vld [vmem:[#allocation7 + $0x7d4] sm:$0xf]  ;;  %v6670_v41 = vld [vmem:[#allocation7 + $0x7f8] sm:$0xf0] }
  0x58   :  { %2318 = vmatpush.bf16.msra.mxu0 %v5953_v19  ;;  %v8380_v19 = vld [vmem:[#allocation7 + $0x54] sm:$0xf]  ;;  %v5990_v35 = vld [vmem:[#allocation7 + $0x2a8] sm:$0xf0]  ;;  %v6673_v42 = vor.u32 %v8620_v40, %v6670_v41  ;;  %v8610_v46 = vld [vmem:[#allocation7 + $0x784] sm:$0xf] }
  0x59   :  { %2331 = vmatpush.bf16.msra.mxu1 %v6273_v23  ;;  %v5713_v21 = vor.u32 %v8380_v19, %v5710_v20  ;;  %v6030_v23 = vld [vmem:[#allocation7 + $0x2f8] sm:$0xf0]  ;;  %v6630_v47 = vld [vmem:[#allocation7 + $0x7a8] sm:$0xf0]  ;;  %v6276_v58 = vld [vmem:[#allocation7 + $0x4b8] sm:$0xf] }
  0x5a   :  { %2344 = vmatpush.bf16.msra.mxu2 %v6593_v31  ;;  %v6033_v24 = vor.u32 %v8460_v22, %v6030_v23  ;;  %v8370_v31 = vld [vmem:[#allocation7 + $0x4] sm:$0xf]  ;;  %v6633_v48 = vor.u32 %v8610_v46, %v6630_v47  ;;  %v8526_v59 = vld [vmem:[#allocation7 + $0x4dc] sm:$0xf0]  ;;  %v8516_v7 = vld [vmem:[#allocation7 + $0x48c] sm:$0xf0] }
  0x5b   :  { %2357 = vmatpush.bf16.msra.mxu3 %v6913_v34  ;;  %v5673_v34 = vor.u32 %v8370_v31, %v5670_v32  ;;  %v6277_v2 = vor.u32 %v8526_v59, %v6276_v58  ;;  %v6596_v13 = vld [vmem:[#allocation7 + $0x738] sm:$0xf]  ;;  %v8606_v14 = vld [vmem:[#allocation7 + $0x75c] sm:$0xf0]  ;;  %v8596_v31 = vld [vmem:[#allocation7 + $0x70c] sm:$0xf0] }
  0x5c   :  { %2319 = vmatpush.bf16.msra.mxu0 %v5913_v33  ;;  %v8450_v33 = vld [vmem:[#allocation7 + $0x284] sm:$0xf]  ;;  %v6916_v15 = vld [vmem:[#allocation7 + $0x9b8] sm:$0xf]  ;;  %v8686_v19 = vld [vmem:[#allocation7 + $0x9dc] sm:$0xf0]  ;;  %v6597_v26 = vor.u32 %v8606_v14, %v6596_v13 }
  0x5d   :  { %2332 = vmatpush.bf16.msra.mxu1 %v6233_v37  ;;  %v5993_v36 = vor.u32 %v8450_v33, %v5990_v35  ;;  %v8540_v37 = vld [vmem:[#allocation7 + $0x554] sm:$0xf]  ;;  %v5876_v20 = vld [vmem:[#allocation7 + $0x198] sm:$0xf]  ;;  %v6876_v32 = vld [vmem:[#allocation7 + $0x968] sm:$0xf] }
  0x5e   :  { %2345 = vmatpush.bf16.msra.mxu2 %v6553_v43  ;;  %v6353_v39 = vor.u32 %v8540_v37, %v6350_v38  ;;  %v8530_v43 = vld [vmem:[#allocation7 + $0x504] sm:$0xf]  ;;  %v6196_v23 = vld [vmem:[#allocation7 + $0x418] sm:$0xf]  ;;  %v8676_v35 = vld [vmem:[#allocation7 + $0x98c] sm:$0xf0] }
  0x5f   :  { %2358 = vmatpush.bf16.msra.mxu3 %v6873_v45  ;;  %v8416_v37 = vld [vmem:[#allocation7 + $0x16c] sm:$0xf0]  ;;  %v6156_v38 = vld [vmem:[#allocation7 + $0x3c8] sm:$0xf]  ;;  %v8586_v46 = vld [vmem:[#allocation7 + $0x6bc] sm:$0xf0] }
  0x60   :  { %2320 = vmatpush.bf16.msra.mxu0 %v5873_v44  ;;  %v6310_v44 = vld [vmem:[#allocation7 + $0x528] sm:$0xf0]  ;;  %v8386_v13 = vld [vmem:[#allocation7 + $0x7c] sm:$0xf0]  ;;  %v6036_v14 = vld [vmem:[#allocation7 + $0x2d8] sm:$0xf] }
  0x61   :  { %2333 = vmatpush.bf16.msra.mxu1 %v6193_v49  ;;  %v6313_v45 = vor.u32 %v8530_v43, %v6310_v44  ;;  %v168_v49 = vld [vmem:[#allocation5] sm:$0xf]  ;;  %v6877_v43 = vor.u32 %v8676_v35, %v6876_v32  ;;  %s9302_s0 = smov [#allocation16]  }
  0x62   :  { %2346 = vmatpush.bf16.msra.mxu2 %v6513_v55  ;;  %v170_v50 = vperm.slane %v168_v49, 0  ;;  %v171_v51 = vperm.slane %v168_v49, 1  ;;  %v5956_v55 = vld [vmem:[#allocation7 + $0x238] sm:$0xf]  ;;  %v172_v62 = vperm.slane %v168_v49, 2  ;;  %v173_v1 = vperm.slane %v168_v49, 3 }
  0x63   :  { %2359 = vmatpush.bf16.msra.mxu3 %v6833_v57  ;;  %v8666_v49 = vld [vmem:[#allocation7 + $0x93c] sm:$0xf0]  ;;  %v8521_v32 = vld [vmem:[#allocation7 + $0x4bc] sm:$0xf]  ;;  %s5582_s26 = sshll.u32 %s9302_s0, 4  ;;  %s5583_s26 = int_to_ptr.vmem [resolvable:$true] %s5582_s26 }
  0x64   :  { %2321 = vmatpush.bf16.msra.mxu0 %v5833_v56  ;;  %v8446_v56 = vld [vmem:[#allocation7 + $0x25c] sm:$0xf0] }
  0x65   :  { %2334 = vmatpush.bf16.msra.mxu1 %v6153_v61  ;;  %v5957_v63 = vor.u32 %v8446_v56, %v5956_v55  ;;  %v6476_v56 = vld [vmem:[#allocation7 + $0x648] sm:$0xf] }
  0x66   :  { %2347 = vmatpush.bf16.msra.mxu2 %v6473_v3  ;;  %v5916_v3 = vld [vmem:[#allocation7 + $0x1e8] sm:$0xf] }
  0x67   :  { %2360 = vmatpush.bf16.msra.mxu3 %v6793_v5 }
  0x68   :  { %2322 = vmatpush.bf16.msra.mxu0 %v5793_v4  ;;  %v8436_v4 = vld [vmem:[#allocation7 + $0x20c] sm:$0xf0] }
  0x69   :  { %2335 = vmatpush.bf16.msra.mxu1 %v6113_v6  ;;  %v6236_v6 = vld [vmem:[#allocation7 + $0x468] sm:$0xf] }
  0x6a   :  { %2348 = vmatpush.bf16.msra.mxu2 %v6433_v16 }
  0x6b   :  { %2361 = vmatpush.bf16.msra.mxu3 %v6753_v18  ;;  %v6237_v18 = vor.u32 %v8516_v7, %v6236_v6  ;;  %v6436_v6 = vld [vmem:[#allocation7 + $0x5f8] sm:$0xf]  ;;  %v8566_v7 = vld [vmem:[#allocation7 + $0x61c] sm:$0xf0] }
  0x6c   :  { %2323 = vmatpush.bf16.msra.mxu0 %v5753_v11 }
  0x6d   :  { %2336 = vmatpush.bf16.msra.mxu1 %v6073_v12  ;;  %v5917_v12 = vor.u32 %v8436_v4, %v5916_v3 }
  0x6e   :  { %2349 = vmatpush.bf16.msra.mxu2 %v6393_v28  ;;  %v6917_v28 = vor.u32 %v8686_v19, %v6916_v15  ;;  %v8466_v15 = vld [vmem:[#allocation7 + $0x2fc] sm:$0xf0]  ;;  %v8556_v19 = vld [vmem:[#allocation7 + $0x5cc] sm:$0xf0] }
  0x6f   :  { %2362 = vmatpush.bf16.msra.mxu3 %v6713_v30  ;;  %v6556_v30 = vld [vmem:[#allocation7 + $0x6e8] sm:$0xf] }
  0x70   :  { %2324 = vmatpush.bf16.msra.mxu0 %v5713_v21  ;;  %v8426_v21 = vld [vmem:[#allocation7 + $0x1bc] sm:$0xf0]  ;;  %v6557_v41 = vor.u32 %v8596_v31, %v6556_v30  ;;  %v5958_v31 = vld [vmem:[#allocation7 + $0x260] sm:$0xf0] }
  0x71   :  { %2337 = vmatpush.bf16.msra.mxu1 %v6033_v24  ;;  %v8506_v24 = vld [vmem:[#allocation7 + $0x43c] sm:$0xf0]  ;;  %v5877_v29 = vor.u32 %v8426_v21, %v5876_v20  ;;  %v6716_v20 = vld [vmem:[#allocation7 + $0x828] sm:$0xf] }
  0x72   :  { %2350 = vmatpush.bf16.msra.mxu2 %v6353_v39  ;;  %v8496_v39 = vld [vmem:[#allocation7 + $0x3ec] sm:$0xf0] }
  0x73   :  { %2363 = vmatpush.bf16.msra.mxu3 %v6673_v42  ;;  %v6157_v47 = vor.u32 %v8496_v39, %v6156_v38 }
  0x74   :  { %2325 = vmatpush.bf16.msra.mxu0 %v5673_v34  ;;  %v6197_v34 = vor.u32 %v8506_v24, %v6196_v23  ;;  %v8636_v23 = vld [vmem:[#allocation7 + $0x84c] sm:$0xf0]  ;;  %v5676_v24 = vld [vmem:[#allocation7 + $0x8] sm:$0xf] }
  0x75   :  { %2338 = vmatpush.bf16.msra.mxu1 %v5993_v36  ;;  %v5836_v36 = vld [vmem:[#allocation7 + $0x148] sm:$0xf]  ;;  %v6717_v35 = vor.u32 %v8636_v23, %v6716_v20  ;;  %v6838_v23 = vld [vmem:[#allocation7 + $0x940] sm:$0xf0] }
  0x76   :  { %2351 = vmatpush.bf16.msra.mxu2 %v6313_v45  ;;  %v5837_v44 = vor.u32 %v8416_v37, %v5836_v36  ;;  %v6516_v45 = vld [vmem:[#allocation7 + $0x698] sm:$0xf]  ;;  %v8546_v37 = vld [vmem:[#allocation7 + $0x57c] sm:$0xf0] }
  0x77   :  { %2364 = vmatpush.bf16.msra.mxu3 %v6633_v48  ;;  %v6836_v48 = vld [vmem:[#allocation7 + $0x918] sm:$0xf] }
  0x78   :  { %v6837_v55 = vor.u32 %v8666_v49, %v6836_v48  ;;  %v6356_v36 = vld [vmem:[#allocation7 + $0x558] sm:$0xf]  ;;  %v6238_v48 = vld [vmem:[#allocation7 + $0x490] sm:$0xf0] }
  0xb4   :  { %v271_v52 = vpop.f32.mrf.mxu0 }
  0xb5   :  { %v272_v53 = vadd.f32 %v271_v52, %v170_v50  ;;  %v284_v54 = vpop.f32.mrf.mxu1  ;;  %v5796_v50 = vld [vmem:[#allocation7 + $0xf8] sm:$0xf] }
  0xb6   :  { %v285_v57 = vadd.f32 %v284_v54, %v171_v51  ;;  %v8406_v51 = vld [vmem:[#allocation7 + $0x11c] sm:$0xf0]  ;;  %v6116_v52 = vld [vmem:[#allocation7 + $0x378] sm:$0xf]  ;;  %v6517_v54 = vor.u32 %v8586_v46, %v6516_v45  ;;  %v6357_v45 = vor.u32 %v8546_v37, %v6356_v36  ;;  %v5918_v46 = vld [vmem:[#allocation7 + $0x210] sm:$0xf0] }
  0xb7   :  { %v314_v60 = vmax.f32 %v272_v53, 0.0  ;;  %v8486_v53 = vld [vmem:[#allocation7 + $0x39c] sm:$0xf0]  ;;  %v5797_v58 = vor.u32 %v8406_v51, %v5796_v50  ;;  %v6316_v50 = vld [vmem:[#allocation7 + $0x508] sm:$0xf] }
  0xb8   :  { %v315_v61 = vmax.f32 %v285_v57, 0.0  ;;  %v8576_v57 = vld [vmem:[#allocation7 + $0x66c] sm:$0xf0]  ;;  %v6117_v59 = vor.u32 %v8486_v53, %v6116_v52  ;;  %v6636_v52 = vld [vmem:[#allocation7 + $0x788] sm:$0xf] }
  0xb9   :  { %v9384_v0 = vpack.c.bf16 %v314_v60, %v314_v60  ;;  %v6796_v60 = vld [vmem:[#allocation7 + $0x8c8] sm:$0xf]  ;;  %v6477_v3 = vor.u32 %v8576_v57, %v6476_v56  ;;  %v8536_v51 = vld [vmem:[#allocation7 + $0x52c] sm:$0xf0]  ;;  %v8651_v36 = vld [vmem:[#allocation7 + $0x8cc] sm:$0xf] }
  0xba   :  { %v9386_v5 = vpack.c.bf16 %v315_v61, %v315_v61  ;;  %v8656_v61 = vld [vmem:[#allocation7 + $0x8ec] sm:$0xf0]  ;;  %v6798_v37 = vld [vmem:[#allocation7 + $0x8f0] sm:$0xf0] }
  0xbb   :  { %2274 = vmatmul.bf16.vlgmr.msrb.gmra.mxu0 %v9384_v0  ;;  %v6797_v4 = vor.u32 %v8656_v61, %v6796_v60  ;;  %v8616_v53 = vld [vmem:[#allocation7 + $0x7ac] sm:$0xf0]  ;;  %v8421_v60 = vld [vmem:[#allocation7 + $0x19c] sm:$0xf]  ;;  %v6317_v61 = vor.u32 %v8536_v51, %v6316_v50  ;;  %v5718_v51 = vld [vmem:[#allocation7 + $0x80] sm:$0xf0] }
  0xbc   :  { %v297_v8 = vpop.f32.mrf.mxu2  ;;  %2287 = vmatmul.bf16.vlgmr.msrb.gmra.mxu1 %v9386_v5  ;;  %2370 = vmatpush.bf16.msrb.mxu0 %v5957_v63  ;;  %v273_v11 = vpop.f32.mrf.mxu0  ;;  %v8396_v63 = vld [vmem:[#allocation7 + $0xcc] sm:$0xf0]  ;;  %v8381_v50 = vld [vmem:[#allocation7 + $0x5c] sm:$0xf] }
  0xbd   :  { %v298_v9 = vadd.f32 %v297_v8, %v172_v62  ;;  %v310_v10 = vpop.f32.mrf.mxu3  ;;  %2383 = vmatpush.bf16.msrb.mxu1 %v6277_v2  ;;  %v286_v17 = vpop.f32.mrf.mxu1  ;;  %v5756_v62 = vld [vmem:[#allocation7 + $0xa8] sm:$0xf]  ;;  %v8476_v2 = vld [vmem:[#allocation7 + $0x34c] sm:$0xf0]  ;;  %v8646_v11 = vld [vmem:[#allocation7 + $0x89c] sm:$0xf0] }
  0xbe   :  { %v311_v16 = vadd.f32 %v310_v10, %v173_v1  ;;  %v6076_v1 = vld [vmem:[#allocation7 + $0x328] sm:$0xf]  ;;  %v5757_v8 = vor.u32 %v8396_v63, %v5756_v62  ;;  %v6756_v10 = vld [vmem:[#allocation7 + $0x878] sm:$0xf]  ;;  %v5878_v62 = vld [vmem:[#allocation7 + $0x1c0] sm:$0xf0] }
  0xbf   :  { %v316_v22 = vmax.f32 %v298_v9, 0.0  ;;  %v6077_v9 = vor.u32 %v8476_v2, %v6076_v1  ;;  %v6757_v17 = vor.u32 %v8646_v11, %v6756_v10  ;;  %v8501_v63 = vld [vmem:[#allocation7 + $0x41c] sm:$0xf]  ;;  %v6198_v1 = vld [vmem:[#allocation7 + $0x440] sm:$0xf0]  ;;  %v6637_v2 = vor.u32 %v8616_v53, %v6636_v52 }
  0xc0   :  { %v317_v25 = vmax.f32 %v311_v16, 0.0  ;;  %2371 = vmatpush.bf16.msrb.mxu0 %v5917_v12  ;;  %v5716_v12 = vld [vmem:[#allocation7 + $0x58] sm:$0xf]  ;;  %v6437_v16 = vor.u32 %v8566_v7, %v6436_v6  ;;  %v8591_v6 = vld [vmem:[#allocation7 + $0x6ec] sm:$0xf] }
  0xc1   :  { %v9390_v27 = vpack.c.bf16 %v316_v22, %v316_v22  ;;  %2384 = vmatpush.bf16.msrb.mxu1 %v6237_v18  ;;  %v6396_v18 = vld [vmem:[#allocation7 + $0x5a8] sm:$0xf]  ;;  %v5717_v21 = vor.u32 %v8386_v13, %v5716_v12  ;;  %v6037_v22 = vor.u32 %v8466_v15, %v6036_v14  ;;  %v6558_v7 = vld [vmem:[#allocation7 + $0x710] sm:$0xf0]  ;;  %v8671_v10 = vld [vmem:[#allocation7 + $0x96c] sm:$0xf] }
  0xc2   :  { %v9392_v33 = vpack.c.bf16 %v317_v25, %v317_v25  ;;  %v8376_v25 = vld [vmem:[#allocation7 + $0x2c] sm:$0xf0]  ;;  %v6397_v30 = vor.u32 %v8556_v19, %v6396_v18  ;;  %v6878_v11 = vld [vmem:[#allocation7 + $0x990] sm:$0xf0]  ;;  %v8411_v12 = vld [vmem:[#allocation7 + $0x14c] sm:$0xf] }
  0xc3   :  { %2300 = vmatmul.bf16.vlgmr.msrb.gmra.mxu2 %v9390_v27  ;;  %v5677_v38 = vor.u32 %v8376_v25, %v5676_v24  ;;  %v5838_v13 = vld [vmem:[#allocation7 + $0x170] sm:$0xf0]  ;;  %v8491_v14 = vld [vmem:[#allocation7 + $0x3cc] sm:$0xf]  ;;  %v8581_v18 = vld [vmem:[#allocation7 + $0x69c] sm:$0xf] }
  0xc4   :  { %2313 = vmatmul.bf16.vlgmr.msrb.gmra.mxu3 %v9392_v33  ;;  %2396 = vmatpush.bf16.msrb.mxu2 %v6597_v26  ;;  %v299_v40 = vpop.f32.mrf.mxu2  ;;  %v5996_v26 = vld [vmem:[#allocation7 + $0x288] sm:$0xf]  ;;  %v6158_v15 = vld [vmem:[#allocation7 + $0x3f0] sm:$0xf0]  ;;  %v6518_v19 = vld [vmem:[#allocation7 + $0x6c0] sm:$0xf0]  ;;  %v5841_v20 = vor.u32 %v8411_v12, %v5838_v13 }
  0xc5   :  { %2409 = vmatpush.bf16.msrb.mxu3 %v6917_v28  ;;  %v312_v42 = vpop.f32.mrf.mxu3  ;;  %2372 = vmatpush.bf16.msrb.mxu0 %v5877_v29  ;;  %v8456_v28 = vld [vmem:[#allocation7 + $0x2ac] sm:$0xf0]  ;;  %v8441_v29 = vld [vmem:[#allocation7 + $0x23c] sm:$0xf]  ;;  %v6676_v40 = vld [vmem:[#allocation7 + $0x7d8] sm:$0xf] }
  0xc6   :  { %2385 = vmatpush.bf16.msrb.mxu1 %v6197_v34  ;;  %v6278_v34 = vld [vmem:[#allocation7 + $0x4e0] sm:$0xf0]  ;;  %v5997_v39 = vor.u32 %v8456_v28, %v5996_v26  ;;  %v5961_v42 = vor.u32 %v8441_v29, %v5958_v31  ;;  %v8401_v24 = vld [vmem:[#allocation7 + $0xfc] sm:$0xf]  ;;  %v6521_v29 = vor.u32 %v8581_v18, %v6518_v19  ;;  %v8571_v31 = vld [vmem:[#allocation7 + $0x64c] sm:$0xf] }
  0xc7   :  { %v5798_v25 = vld [vmem:[#allocation7 + $0x120] sm:$0xf0]  ;;  %v8481_v26 = vld [vmem:[#allocation7 + $0x37c] sm:$0xf]  ;;  %v5924_v18 = vld [vmem:[#allocation7 + $0x1f0] sm:$0xf] }
  0xc8   :  { %2397 = vmatpush.bf16.msrb.mxu2 %v6557_v41  ;;  %v8626_v41 = vld [vmem:[#allocation7 + $0x7fc] sm:$0xf0]  ;;  %v6118_v28 = vld [vmem:[#allocation7 + $0x3a0] sm:$0xf0]  ;;  %v8461_v52 = vld [vmem:[#allocation7 + $0x2dc] sm:$0xf] }
  0xc9   :  { %2410 = vmatpush.bf16.msrb.mxu3 %v6877_v43  ;;  %2373 = vmatpush.bf16.msrb.mxu0 %v5837_v44  ;;  %v6281_v43 = vor.u32 %v8521_v32, %v6278_v34  ;;  %v8431_v44 = vld [vmem:[#allocation7 + $0x1ec] sm:$0xf]  ;;  %v6677_v49 = vor.u32 %v8626_v41, %v6676_v40  ;;  %v6478_v32 = vld [vmem:[#allocation7 + $0x670] sm:$0xf0]  ;;  %v5801_v34 = vor.u32 %v8401_v24, %v5798_v25  ;;  %v6038_v53 = vld [vmem:[#allocation7 + $0x300] sm:$0xf0] }
  0xca   :  { %2386 = vmatpush.bf16.msrb.mxu1 %v6157_v47  ;;  %v8511_v47 = vld [vmem:[#allocation7 + $0x46c] sm:$0xf]  ;;  %v5921_v56 = vor.u32 %v8431_v44, %v5918_v46  ;;  %v6078_v41 = vld [vmem:[#allocation7 + $0x350] sm:$0xf0]  ;;  %v8561_v44 = vld [vmem:[#allocation7 + $0x5fc] sm:$0xf] }
  0xcb   :  { %2326 = vmatmul.bf16.vlgmr.msra.gmra.mxu0 %v9384_v0  ;;  %v6241_v57 = vor.u32 %v8511_v47, %v6238_v48  ;;  %v8471_v40 = vld [vmem:[#allocation7 + $0x32c] sm:$0xf]  ;;  %v8641_v48 = vld [vmem:[#allocation7 + $0x87c] sm:$0xf]  ;;  %v6318_v25 = vld [vmem:[#allocation7 + $0x530] sm:$0xf0] }
  0xcc   :  { %2398 = vmatpush.bf16.msrb.mxu2 %v6517_v54  ;;  %2339 = vmatmul.bf16.vlgmr.msra.gmra.mxu1 %v9386_v5  ;;  %v8601_v54 = vld [vmem:[#allocation7 + $0x73c] sm:$0xf]  ;;  %v6081_v47 = vor.u32 %v8471_v40, %v6078_v41  ;;  %v8531_v24 = vld [vmem:[#allocation7 + $0x50c] sm:$0xf]  ;;  %v6204_v41 = vld [vmem:[#allocation7 + $0x420] sm:$0xf] }
  0xcd   :  { %2411 = vmatpush.bf16.msrb.mxu3 %v6837_v55  ;;  %2374 = vmatpush.bf16.msrb.mxu0 %v5797_v58  ;;  %v6598_v55 = vld [vmem:[#allocation7 + $0x760] sm:$0xf0]  ;;  %v8681_v58 = vld [vmem:[#allocation7 + $0x9bc] sm:$0xf] }
  0xce   :  { %2387 = vmatpush.bf16.msrb.mxu1 %v6117_v59  ;;  %v6918_v59 = vld [vmem:[#allocation7 + $0x9e0] sm:$0xf0] }
  0xd0   :  { %2399 = vmatpush.bf16.msrb.mxu2 %v6477_v3  ;;  %v6601_v3 = vor.u32 %v8601_v54, %v6598_v55 }
  0xd1   :  { %2412 = vmatpush.bf16.msrb.mxu3 %v6797_v4  ;;  %2375 = vmatpush.bf16.msrb.mxu0 %v5757_v8  ;;  %v6921_v4 = vor.u32 %v8681_v58, %v6918_v59  ;;  %v5881_v8 = vor.u32 %v8421_v60, %v5878_v62  ;;  %v8631_v58 = vld [vmem:[#allocation7 + $0x82c] sm:$0xf]  ;;  %v5721_v59 = vor.u32 %v8381_v50, %v5718_v51  ;;  %v5844_v50 = vld [vmem:[#allocation7 + $0x150] sm:$0xf]  ;;  %v8417_v51 = vld [vmem:[#allocation7 + $0x174] sm:$0xf0] }
  0xd2   :  { %2388 = vmatpush.bf16.msrb.mxu1 %v6077_v9  ;;  %v6201_v9 = vor.u32 %v8501_v63, %v6198_v1  ;;  %v6041_v60 = vor.u32 %v8461_v52, %v6038_v53  ;;  %v8371_v62 = vld [vmem:[#allocation7 + $0xc] sm:$0xf]  ;;  %v5678_v63 = vld [vmem:[#allocation7 + $0x30] sm:$0xf0]  ;;  %v6164_v53 = vld [vmem:[#allocation7 + $0x3d0] sm:$0xf] }
  0xd3   :  { %2352 = vmatmul.bf16.vlgmr.msra.gmra.mxu2 %v9390_v27  ;;  %v8451_v1 = vld [vmem:[#allocation7 + $0x28c] sm:$0xf]  ;;  %v5681_v12 = vor.u32 %v8371_v62, %v5678_v63  ;;  %v5804_v62 = vld [vmem:[#allocation7 + $0x100] sm:$0xf]  ;;  %v8407_v63 = vld [vmem:[#allocation7 + $0x124] sm:$0xf0] }
  0xd4   :  { %2365 = vmatmul.bf16.vlgmr.msra.gmra.mxu3 %v9392_v33  ;;  %2400 = vmatpush.bf16.msrb.mxu2 %v6437_v16  ;;  %v6561_v16 = vor.u32 %v8591_v6, %v6558_v7  ;;  %v8447_v6 = vld [vmem:[#allocation7 + $0x264] sm:$0xf0]  ;;  %v6284_v7 = vld [vmem:[#allocation7 + $0x4c0] sm:$0xf] }
  0xd5   :  { %2413 = vmatpush.bf16.msrb.mxu3 %v6757_v17  ;;  %2376 = vmatpush.bf16.msrb.mxu0 %v5717_v21  ;;  %v6881_v17 = vor.u32 %v8671_v10, %v6878_v11  ;;  %v6161_v21 = vor.u32 %v8491_v14, %v6158_v15  ;;  %v8541_v10 = vld [vmem:[#allocation7 + $0x55c] sm:$0xf]  ;;  %v6358_v11 = vld [vmem:[#allocation7 + $0x580] sm:$0xf0] }
  0xd6   :  { %2389 = vmatpush.bf16.msrb.mxu1 %v6037_v22  ;;  %v8661_v22 = vld [vmem:[#allocation7 + $0x91c] sm:$0xf]  ;;  %v6678_v15 = vld [vmem:[#allocation7 + $0x800] sm:$0xf0]  ;;  %v6361_v19 = vor.u32 %v8541_v10, %v6358_v11  ;;  %v8657_v10 = vld [vmem:[#allocation7 + $0x8f4] sm:$0xf0] }
  0xd7   :  { %v8621_v14 = vld [vmem:[#allocation7 + $0x7dc] sm:$0xf] }
  0xd8   :  { %2401 = vmatpush.bf16.msrb.mxu2 %v6397_v30  ;;  %v6841_v30 = vor.u32 %v8661_v22, %v6838_v23  ;;  %v8517_v22 = vld [vmem:[#allocation7 + $0x494] sm:$0xf0]  ;;  %v6681_v23 = vor.u32 %v8621_v14, %v6678_v15  ;;  %v6084_v15 = vld [vmem:[#allocation7 + $0x330] sm:$0xf] }
  0xd9   :  { %2414 = vmatpush.bf16.msrb.mxu3 %v6717_v35  ;;  %2377 = vmatpush.bf16.msrb.mxu0 %v5677_v38  ;;  %v6121_v35 = vor.u32 %v8481_v26, %v6118_v28  ;;  %v8391_v38 = vld [vmem:[#allocation7 + $0xac] sm:$0xf]  ;;  %v6638_v28 = vld [vmem:[#allocation7 + $0x7b0] sm:$0xf0] }
  0xda   :  { %2390 = vmatpush.bf16.msrb.mxu1 %v5997_v39  ;;  %v5758_v39 = vld [vmem:[#allocation7 + $0xd0] sm:$0xf0]  ;;  %v8611_v26 = vld [vmem:[#allocation7 + $0x78c] sm:$0xf] }
  0xdb   :  { %v5761_v46 = vor.u32 %v8391_v38, %v5758_v39  ;;  %v8427_v38 = vld [vmem:[#allocation7 + $0x1c4] sm:$0xf0]  ;;  %v6641_v39 = vor.u32 %v8611_v26, %v6638_v28  ;;  %v6044_v28 = vld [vmem:[#allocation7 + $0x2e0] sm:$0xf] }
  0xdc   :  { %2402 = vmatpush.bf16.msrb.mxu2 %v6357_v45  ;;  %2378 = vmatmul.bf16.vlgmr.msrb.gmra.mxu0 %v9384_v0  ;;  %v6438_v45 = vld [vmem:[#allocation7 + $0x620] sm:$0xf0] }
  0xdd   :  { %2422 = vmatpush.bf16.msra.mxu0 %v5961_v42  ;;  %2415 = vmatpush.bf16.msrb.mxu3 %v6677_v49  ;;  %v6481_v42 = vor.u32 %v8571_v31, %v6478_v32  ;;  %v6758_v49 = vld [vmem:[#allocation7 + $0x8a0] sm:$0xf0]  ;;  %v6441_v54 = vor.u32 %v8561_v44, %v6438_v45  ;;  %v6564_v44 = vld [vmem:[#allocation7 + $0x6f0] sm:$0xf]  ;;  %v8597_v45 = vld [vmem:[#allocation7 + $0x714] sm:$0xf0] }
  0xde   :  { %2435 = vmatpush.bf16.msra.mxu1 %v6281_v43  ;;  %v6801_v43 = vor.u32 %v8651_v36, %v6798_v37  ;;  %v6761_v55 = vor.u32 %v8641_v48, %v6758_v49  ;;  %v6321_v36 = vor.u32 %v8531_v24, %v6318_v25  ;;  %v5884_v37 = vld [vmem:[#allocation7 + $0x1a0] sm:$0xf]  ;;  %v8677_v48 = vld [vmem:[#allocation7 + $0x994] sm:$0xf0]  ;;  %v6565_v52 = vor.u32 %v8597_v45, %v6564_v44  ;;  %v8387_v25 = vld [vmem:[#allocation7 + $0x84] sm:$0xf0] }
  0xdf   :  { %2391 = vmatmul.bf16.vlgmr.msrb.gmra.mxu1 %v9386_v5  ;;  %v5724_v24 = vld [vmem:[#allocation7 + $0x60] sm:$0xf]  ;;  %v5966_v44 = vld [vmem:[#allocation7 + $0x268] sm:$0xf0]  ;;  %v8522_v45 = vld [vmem:[#allocation7 + $0x4c4] sm:$0xf] }
  0xe0   :  { %2403 = vmatpush.bf16.msrb.mxu2 %v6317_v61  ;;  %v6718_v61 = vld [vmem:[#allocation7 + $0x850] sm:$0xf0] }
  0xe1   :  { %2423 = vmatpush.bf16.msra.mxu0 %v5921_v56  ;;  %2416 = vmatpush.bf16.msrb.mxu3 %v6637_v2  ;;  %v8551_v56 = vld [vmem:[#allocation7 + $0x5ac] sm:$0xf]  ;;  %v5998_v2 = vld [vmem:[#allocation7 + $0x2b0] sm:$0xf0] }
  0xe2   :  { %2436 = vmatpush.bf16.msra.mxu1 %v6241_v57  ;;  %v6398_v57 = vld [vmem:[#allocation7 + $0x5d0] sm:$0xf0]  ;;  %v6001_v13 = vor.u32 %v8451_v1, %v5998_v2  ;;  %v6124_v2 = vld [vmem:[#allocation7 + $0x380] sm:$0xf] }
  0xe3   :  { %2404 = vmatmul.bf16.vlgmr.msrb.gmra.mxu2 %v9390_v27 }
  0xe4   :  { %2448 = vmatpush.bf16.msra.mxu2 %v6601_v3  ;;  %2417 = vmatmul.bf16.vlgmr.msrb.gmra.mxu3 %v9392_v33  ;;  %v5964_v3 = vld [vmem:[#allocation7 + $0x240] sm:$0xf] }
  0xe5   :  { %2461 = vmatpush.bf16.msra.mxu3 %v6921_v4  ;;  %2424 = vmatpush.bf16.msra.mxu0 %v5881_v8  ;;  %v6401_v4 = vor.u32 %v8551_v56, %v6398_v57  ;;  %v8527_v8 = vld [vmem:[#allocation7 + $0x4e4] sm:$0xf0]  ;;  %v6524_v56 = vld [vmem:[#allocation7 + $0x6a0] sm:$0xf] }
  0xe6   :  { %2437 = vmatpush.bf16.msra.mxu1 %v6201_v9  ;;  %v6721_v9 = vor.u32 %v8631_v58, %v6718_v61  ;;  %v8587_v57 = vld [vmem:[#allocation7 + $0x6c4] sm:$0xf0]  ;;  %v5845_v58 = vor.u32 %v8417_v51, %v5844_v50  ;;  %v6684_v51 = vld [vmem:[#allocation7 + $0x7e0] sm:$0xf] }
  0xe7   :  { %v6525_v1 = vor.u32 %v8587_v57, %v6524_v56 }
  0xe8   :  { %2449 = vmatpush.bf16.msra.mxu2 %v6561_v16  ;;  %v5965_v16 = vor.u32 %v8447_v6, %v5964_v3  ;;  %v8487_v3 = vld [vmem:[#allocation7 + $0x3a4] sm:$0xf0]  ;;  %v6484_v6 = vld [vmem:[#allocation7 + $0x650] sm:$0xf] }
  0xe9   :  { %2462 = vmatpush.bf16.msra.mxu3 %v6881_v17  ;;  %2425 = vmatpush.bf16.msra.mxu0 %v5841_v20  ;;  %v6285_v17 = vor.u32 %v8527_v8, %v6284_v7  ;;  %v8437_v20 = vld [vmem:[#allocation7 + $0x214] sm:$0xf0]  ;;  %v5805_v8 = vor.u32 %v8407_v63, %v5804_v62  ;;  %v6125_v11 = vor.u32 %v8487_v3, %v6124_v2  ;;  %v6324_v62 = vld [vmem:[#allocation7 + $0x510] sm:$0xf]  ;;  %v8602_v3 = vld [vmem:[#allocation7 + $0x744] sm:$0xf] }
  0xea   :  { %2438 = vmatpush.bf16.msra.mxu1 %v6161_v21  ;;  %v6244_v21 = vld [vmem:[#allocation7 + $0x470] sm:$0xf]  ;;  %v5925_v31 = vor.u32 %v8437_v20, %v5924_v18  ;;  %v8577_v7 = vld [vmem:[#allocation7 + $0x674] sm:$0xf0]  ;;  %v6444_v18 = vld [vmem:[#allocation7 + $0x600] sm:$0xf] }
  0xeb   :  { %v6245_v32 = vor.u32 %v8517_v22, %v6244_v21  ;;  %v6485_v14 = vor.u32 %v8577_v7, %v6484_v6  ;;  %v6764_v21 = vld [vmem:[#allocation7 + $0x880] sm:$0xf]  ;;  %v8647_v22 = vld [vmem:[#allocation7 + $0x8a4] sm:$0xf0]  ;;  %v8537_v63 = vld [vmem:[#allocation7 + $0x534] sm:$0xf0] }
  0xec   :  { %2450 = vmatpush.bf16.msra.mxu2 %v6521_v29  ;;  %v6604_v29 = vld [vmem:[#allocation7 + $0x740] sm:$0xf]  ;;  %v8617_v2 = vld [vmem:[#allocation7 + $0x7b4] sm:$0xf0]  ;;  %v8682_v7 = vld [vmem:[#allocation7 + $0x9c4] sm:$0xf] }
  0xed   :  { %2463 = vmatpush.bf16.msra.mxu3 %v6841_v30  ;;  %2426 = vmatpush.bf16.msra.mxu0 %v5801_v34  ;;  %v8607_v30 = vld [vmem:[#allocation7 + $0x764] sm:$0xf0]  ;;  %v6924_v34 = vld [vmem:[#allocation7 + $0x9c0] sm:$0xf] }
  0xee   :  { %2439 = vmatpush.bf16.msra.mxu1 %v6121_v35  ;;  %v8687_v35 = vld [vmem:[#allocation7 + $0x9e4] sm:$0xf0]  ;;  %v6605_v40 = vor.u32 %v8607_v30, %v6604_v29  ;;  %v6765_v30 = vor.u32 %v8647_v22, %v6764_v21  ;;  %v8672_v21 = vld [vmem:[#allocation7 + $0x974] sm:$0xf]  ;;  %v6886_v22 = vld [vmem:[#allocation7 + $0x998] sm:$0xf0] }
  0xef   :  { %v8467_v29 = vld [vmem:[#allocation7 + $0x304] sm:$0xf0] }
  0xf0   :  { %2451 = vmatpush.bf16.msra.mxu2 %v6481_v42  ;;  %v8507_v42 = vld [vmem:[#allocation7 + $0x444] sm:$0xf0] }
  0xf1   :  { %2464 = vmatpush.bf16.msra.mxu3 %v6801_v43  ;;  %2427 = vmatpush.bf16.msra.mxu0 %v5761_v46  ;;  %v6925_v43 = vor.u32 %v8687_v35, %v6924_v34  ;;  %v5885_v46 = vor.u32 %v8427_v38, %v5884_v37  ;;  %v6205_v49 = vor.u32 %v8507_v42, %v6204_v41  ;;  %v6724_v35 = vld [vmem:[#allocation7 + $0x830] sm:$0xf]  ;;  %v8457_v41 = vld [vmem:[#allocation7 + $0x2b4] sm:$0xf0] }
  0xf2   :  { %2440 = vmatpush.bf16.msra.mxu1 %v6081_v47  ;;  %v6884_v47 = vld [vmem:[#allocation7 + $0x970] sm:$0xf]  ;;  %v5725_v34 = vor.u32 %v8387_v25, %v5724_v24  ;;  %v6045_v38 = vor.u32 %v8467_v29, %v6044_v28  ;;  %v8412_v24 = vld [vmem:[#allocation7 + $0x154] sm:$0xf]  ;;  %v5846_v25 = vld [vmem:[#allocation7 + $0x178] sm:$0xf0] }
  0xf3   :  { %v5684_v37 = vld [vmem:[#allocation7 + $0x10] sm:$0xf]  ;;  %v8492_v28 = vld [vmem:[#allocation7 + $0x3d4] sm:$0xf]  ;;  %v6166_v29 = vld [vmem:[#allocation7 + $0x3f8] sm:$0xf0] }
  0xf4   :  { %2452 = vmatpush.bf16.msra.mxu2 %v6441_v54  ;;  %v8497_v54 = vld [vmem:[#allocation7 + $0x3f4] sm:$0xf0] }
  0xf5   :  { %2465 = vmatpush.bf16.msra.mxu3 %v6761_v55  ;;  %2428 = vmatpush.bf16.msra.mxu0 %v5721_v59  ;;  %v6885_v55 = vor.u32 %v8677_v48, %v6884_v47  ;;  %v6844_v59 = vld [vmem:[#allocation7 + $0x920] sm:$0xf]  ;;  %v6165_v61 = vor.u32 %v8497_v54, %v6164_v53  ;;  %v6286_v47 = vld [vmem:[#allocation7 + $0x4e8] sm:$0xf0] }
  0xf6   :  { %2441 = vmatpush.bf16.msra.mxu1 %v6041_v60  ;;  %v8667_v60 = vld [vmem:[#allocation7 + $0x944] sm:$0xf0]  ;;  %v6364_v48 = vld [vmem:[#allocation7 + $0x560] sm:$0xf]  ;;  %v6289_v56 = vor.u32 %v8522_v45, %v6286_v47  ;;  %v6486_v45 = vld [vmem:[#allocation7 + $0x678] sm:$0xf0] }
  0xf7   :  { %v8652_v47 = vld [vmem:[#allocation7 + $0x8d4] sm:$0xf] }
  0xf8   :  { %2453 = vmatpush.bf16.msra.mxu2 %v6401_v4  ;;  %v6845_v4 = vor.u32 %v8667_v60, %v6844_v59  ;;  %v8512_v59 = vld [vmem:[#allocation7 + $0x474] sm:$0xf]  ;;  %v6246_v60 = vld [vmem:[#allocation7 + $0x498] sm:$0xf0] }
  0xf9   :  { %2466 = vmatpush.bf16.msra.mxu3 %v6721_v9  ;;  %2429 = vmatpush.bf16.msra.mxu0 %v5681_v12  ;;  %v6804_v9 = vld [vmem:[#allocation7 + $0x8d0] sm:$0xf] }
  0xfa   :  { %2442 = vmatpush.bf16.msra.mxu1 %v6001_v13  ;;  %v5764_v12 = vld [vmem:[#allocation7 + $0xb0] sm:$0xf]  ;;  %v8397_v13 = vld [vmem:[#allocation7 + $0xd4] sm:$0xf0] }
  0xfb   :  { %v5765_v20 = vor.u32 %v8397_v13, %v5764_v12  ;;  %v5886_v12 = vld [vmem:[#allocation7 + $0x1c8] sm:$0xf0] }
  0xfc   :  { %2454 = vmatpush.bf16.msra.mxu2 %v6361_v19  ;;  %2430 = vmatmul.bf16.vlgmr.msra.gmra.mxu0 %v9384_v0  ;;  %v8567_v19 = vld [vmem:[#allocation7 + $0x624] sm:$0xf0] }
  0xfd   :  { %2474 = vmatpush.bf16.msrb.mxu0 %v5965_v16  ;;  %2467 = vmatpush.bf16.msra.mxu3 %v6681_v23  ;;  %v8477_v16 = vld [vmem:[#allocation7 + $0x354] sm:$0xf0]  ;;  %v6445_v26 = vor.u32 %v8567_v19, %v6444_v18  ;;  %v8592_v18 = vld [vmem:[#allocation7 + $0x6f4] sm:$0xf]  ;;  %v6566_v19 = vld [vmem:[#allocation7 + $0x718] sm:$0xf0] }
  0xfe   :  { %2487 = vmatpush.bf16.msrb.mxu1 %v6285_v17  ;;  %v6805_v17 = vor.u32 %v8657_v10, %v6804_v9  ;;  %v6085_v23 = vor.u32 %v8477_v16, %v6084_v15  ;;  %v6249_v9 = vor.u32 %v8512_v59, %v6246_v60  ;;  %v6325_v10 = vor.u32 %v8537_v63, %v6324_v62  ;;  %v8502_v15 = vld [vmem:[#allocation7 + $0x424] sm:$0xf]  ;;  %v6206_v16 = vld [vmem:[#allocation7 + $0x448] sm:$0xf0] }
  0xff   :  { %2443 = vmatmul.bf16.vlgmr.msra.gmra.mxu1 %v9386_v5  ;;  %v8642_v59 = vld [vmem:[#allocation7 + $0x884] sm:$0xf]  ;;  %v6766_v60 = vld [vmem:[#allocation7 + $0x8a8] sm:$0xf0] }
 0x100   :  { %2455 = vmatpush.bf16.msra.mxu2 %v6321_v36  ;;  %v8637_v36 = vld [vmem:[#allocation7 + $0x854] sm:$0xf0]  ;;  %v8382_v62 = vld [vmem:[#allocation7 + $0x64] sm:$0xf]  ;;  %v5726_v63 = vld [vmem:[#allocation7 + $0x88] sm:$0xf0] }
 0x101   :  { %2475 = vmatpush.bf16.msrb.mxu0 %v5925_v31  ;;  %2468 = vmatpush.bf16.msra.mxu3 %v6641_v39  ;;  %v6404_v31 = vld [vmem:[#allocation7 + $0x5b0] sm:$0xf]  ;;  %v8377_v39 = vld [vmem:[#allocation7 + $0x34] sm:$0xf0] }
 0x102   :  { %2488 = vmatpush.bf16.msrb.mxu1 %v6245_v32  ;;  %v8557_v32 = vld [vmem:[#allocation7 + $0x5d4] sm:$0xf0]  ;;  %v5685_v50 = vor.u32 %v8377_v39, %v5684_v37  ;;  %v6169_v37 = vor.u32 %v8492_v28, %v6166_v29  ;;  %v5806_v39 = vld [vmem:[#allocation7 + $0x128] sm:$0xf0] }
 0x103   :  { %2456 = vmatmul.bf16.vlgmr.msra.gmra.mxu2 %v9390_v27  ;;  %v6405_v42 = vor.u32 %v8557_v32, %v6404_v31  ;;  %v8582_v31 = vld [vmem:[#allocation7 + $0x6a4] sm:$0xf]  ;;  %v6526_v32 = vld [vmem:[#allocation7 + $0x6c8] sm:$0xf0] }
 0x104   :  { %2500 = vmatpush.bf16.msrb.mxu2 %v6605_v40  ;;  %2469 = vmatmul.bf16.vlgmr.msra.gmra.mxu3 %v9392_v33  ;;  %v6004_v40 = vld [vmem:[#allocation7 + $0x290] sm:$0xf] }
 0x105   :  { %2513 = vmatpush.bf16.msrb.mxu3 %v6925_v43  ;;  %2476 = vmatpush.bf16.msrb.mxu0 %v5885_v46  ;;  %v8442_v43 = vld [vmem:[#allocation7 + $0x244] sm:$0xf]  ;;  %v6725_v46 = vor.u32 %v8637_v36, %v6724_v35  ;;  %v6005_v53 = vor.u32 %v8457_v41, %v6004_v40  ;;  %v6846_v36 = vld [vmem:[#allocation7 + $0x948] sm:$0xf0]  ;;  %v6529_v40 = vor.u32 %v8582_v31, %v6526_v32 }
 0x106   :  { %2489 = vmatpush.bf16.msrb.mxu1 %v6205_v49  ;;  %v8547_v49 = vld [vmem:[#allocation7 + $0x584] sm:$0xf0]  ;;  %v5969_v54 = vor.u32 %v8442_v43, %v5966_v44  ;;  %v8662_v35 = vld [vmem:[#allocation7 + $0x924] sm:$0xf]  ;;  %v8572_v44 = vld [vmem:[#allocation7 + $0x654] sm:$0xf] }
 0x107   :  { %v6365_v57 = vor.u32 %v8547_v49, %v6364_v48  ;;  %v8482_v41 = vld [vmem:[#allocation7 + $0x384] sm:$0xf]  ;;  %v6849_v43 = vor.u32 %v8662_v35, %v6846_v36  ;;  %v6806_v48 = vld [vmem:[#allocation7 + $0x8f8] sm:$0xf0]  ;;  %v6252_v35 = vld [vmem:[#allocation7 + $0x478] sm:$0xf] }
 0x108   :  { %2501 = vmatpush.bf16.msrb.mxu2 %v6565_v52  ;;  %v8627_v52 = vld [vmem:[#allocation7 + $0x804] sm:$0xf0]  ;;  %v8518_v36 = vld [vmem:[#allocation7 + $0x49c] sm:$0xf0] }
 0x109   :  { %2514 = vmatpush.bf16.msrb.mxu3 %v6885_v55  ;;  %2477 = vmatpush.bf16.msrb.mxu0 %v5845_v58  ;;  %v8432_v55 = vld [vmem:[#allocation7 + $0x1f4] sm:$0xf]  ;;  %v5926_v58 = vld [vmem:[#allocation7 + $0x218] sm:$0xf0] }
 0x10a   :  { %2490 = vmatpush.bf16.msrb.mxu1 %v6165_v61  ;;  %v6685_v61 = vor.u32 %v8627_v52, %v6684_v51  ;;  %v5929_v6 = vor.u32 %v8432_v55, %v5926_v58  ;;  %v5766_v51 = vld [vmem:[#allocation7 + $0xd8] sm:$0xf0]  ;;  %v6489_v52 = vor.u32 %v8572_v44, %v6486_v45  ;;  %v6809_v55 = vor.u32 %v8652_v47, %v6806_v48  ;;  %v6932_v45 = vld [vmem:[#allocation7 + $0x9c8] sm:$0xf] }
 0x10b   :  { %v6253_v47 = vor.u32 %v8518_v36, %v6252_v35  ;;  %v6092_v35 = vld [vmem:[#allocation7 + $0x338] sm:$0xf]  ;;  %v8478_v36 = vld [vmem:[#allocation7 + $0x35c] sm:$0xf0] }
 0x10c   :  { %2502 = vmatpush.bf16.msrb.mxu2 %v6525_v1  ;;  %v6644_v1 = vld [vmem:[#allocation7 + $0x790] sm:$0xf] }
 0x10d   :  { %2515 = vmatpush.bf16.msrb.mxu3 %v6845_v4  ;;  %2478 = vmatpush.bf16.msrb.mxu0 %v5805_v8  ;;  %v6606_v4 = vld [vmem:[#allocation7 + $0x768] sm:$0xf0]  ;;  %v6645_v13 = vor.u32 %v8617_v2, %v6644_v1  ;;  %v8462_v2 = vld [vmem:[#allocation7 + $0x2e4] sm:$0xf] }
 0x10e   :  { %2491 = vmatpush.bf16.msrb.mxu1 %v6125_v11  ;;  %v6926_v8 = vld [vmem:[#allocation7 + $0x9e8] sm:$0xf0]  ;;  %v8422_v11 = vld [vmem:[#allocation7 + $0x1a4] sm:$0xf] }
 0x110   :  { %2503 = vmatpush.bf16.msrb.mxu2 %v6485_v14  ;;  %v6609_v14 = vor.u32 %v8602_v3, %v6606_v4  ;;  %v6046_v3 = vld [vmem:[#allocation7 + $0x308] sm:$0xf0]  ;;  %v6769_v4 = vor.u32 %v8642_v59, %v6766_v60 }
 0x111   :  { %2516 = vmatpush.bf16.msrb.mxu3 %v6805_v17  ;;  %2479 = vmatpush.bf16.msrb.mxu0 %v5765_v20  ;;  %v6929_v17 = vor.u32 %v8682_v7, %v6926_v8  ;;  %v5889_v20 = vor.u32 %v8422_v11, %v5886_v12  ;;  %v6406_v7 = vld [vmem:[#allocation7 + $0x5d8] sm:$0xf0]  ;;  %v5729_v8 = vor.u32 %v8382_v62, %v5726_v63  ;;  %v8372_v11 = vld [vmem:[#allocation7 + $0x14] sm:$0xf]  ;;  %v8678_v62 = vld [vmem:[#allocation7 + $0x99c] sm:$0xf0] }
 0x112   :  { %2492 = vmatpush.bf16.msrb.mxu1 %v6085_v23  ;;  %v6209_v23 = vor.u32 %v8502_v15, %v6206_v16  ;;  %v6049_v12 = vor.u32 %v8462_v2, %v6046_v3  ;;  %v6006_v15 = vld [vmem:[#allocation7 + $0x2b8] sm:$0xf0]  ;;  %v8418_v2 = vld [vmem:[#allocation7 + $0x17c] sm:$0xf0] }
 0x114   :  { %2504 = vmatpush.bf16.msrb.mxu2 %v6445_v26  ;;  %v6569_v26 = vor.u32 %v8592_v18, %v6566_v19  ;;  %v8448_v18 = vld [vmem:[#allocation7 + $0x26c] sm:$0xf0]  ;;  %v6292_v19 = vld [vmem:[#allocation7 + $0x4c8] sm:$0xf] }
 0x115   :  { %2517 = vmatpush.bf16.msrb.mxu3 %v6765_v30  ;;  %2480 = vmatpush.bf16.msrb.mxu0 %v5725_v34  ;;  %v6889_v30 = vor.u32 %v8672_v21, %v6886_v22  ;;  %v5849_v34 = vor.u32 %v8412_v24, %v5846_v25  ;;  %v8528_v21 = vld [vmem:[#allocation7 + $0x4ec] sm:$0xf0]  ;;  %v8542_v22 = vld [vmem:[#allocation7 + $0x564] sm:$0xf] }
 0x116   :  { %2493 = vmatpush.bf16.msrb.mxu1 %v6045_v38  ;;  %v8402_v38 = vld [vmem:[#allocation7 + $0x104] sm:$0xf]  ;;  %v6293_v31 = vor.u32 %v8528_v21, %v6292_v19  ;;  %v6132_v21 = vld [vmem:[#allocation7 + $0x388] sm:$0xf] }
 0x117   :  { %v8622_v25 = vld [vmem:[#allocation7 + $0x7e4] sm:$0xf] }
 0x118   :  { %2505 = vmatpush.bf16.msrb.mxu2 %v6405_v42  ;;  %v6126_v42 = vld [vmem:[#allocation7 + $0x3a8] sm:$0xf0] }
 0x119   :  { %2518 = vmatpush.bf16.msrb.mxu3 %v6725_v46  ;;  %2481 = vmatpush.bf16.msrb.mxu0 %v5685_v50  ;;  %v5809_v46 = vor.u32 %v8402_v38, %v5806_v39  ;;  %v6129_v49 = vor.u32 %v8482_v41, %v6126_v42  ;;  %v8392_v50 = vld [vmem:[#allocation7 + $0xb4] sm:$0xf]  ;;  %v6326_v39 = vld [vmem:[#allocation7 + $0x538] sm:$0xf0]  ;;  %v6612_v42 = vld [vmem:[#allocation7 + $0x748] sm:$0xf] }
 0x11a   :  { %2494 = vmatpush.bf16.msrb.mxu1 %v6005_v53  ;;  %v8472_v53 = vld [vmem:[#allocation7 + $0x334] sm:$0xf]  ;;  %v5769_v58 = vor.u32 %v8392_v50, %v5766_v51  ;;  %v6646_v41 = vld [vmem:[#allocation7 + $0x7b8] sm:$0xf0]  ;;  %v8428_v50 = vld [vmem:[#allocation7 + $0x1cc] sm:$0xf0] }
 0x11b   :  { %v8532_v38 = vld [vmem:[#allocation7 + $0x514] sm:$0xf]  ;;  %v9412_v51 = vld [vmem:[#allocation8] sm:$0xff] }
 0x11c   :  { %2506 = vmatpush.bf16.msrb.mxu2 %v6365_v57  ;;  %2482 = vmatmul.bf16.vlgmr.msrb.gmra.mxu0 %v9384_v0  ;;  %v6446_v57 = vld [vmem:[#allocation7 + $0x628] sm:$0xf0]  ;;  %v6329_v48 = vor.u32 %v8532_v38, %v6326_v39  ;;  %v646_v60 = vperm.slane %v9412_v51, 0  ;;  %v6452_v39 = vld [vmem:[#allocation7 + $0x608] sm:$0xf] }
 0x11d   :  { %2526 = vmatpush.bf16.msra.mxu0 %v5969_v54  ;;  %2519 = vmatpush.bf16.msrb.mxu3 %v6685_v61  ;;  %v6086_v54 = vld [vmem:[#allocation7 + $0x358] sm:$0xf0] }
 0x11e   :  { %2539 = vmatpush.bf16.msra.mxu1 %v6289_v56  ;;  %v8562_v56 = vld [vmem:[#allocation7 + $0x604] sm:$0xf]  ;;  %v6089_v61 = vor.u32 %v8472_v53, %v6086_v54  ;;  %v6212_v54 = vld [vmem:[#allocation7 + $0x428] sm:$0xf] }
 0x11f   :  { %2495 = vmatmul.bf16.vlgmr.msrb.gmra.mxu1 %v9386_v5  ;;  %v6449_v1 = vor.u32 %v8562_v56, %v6446_v57  ;;  %v6572_v57 = vld [vmem:[#allocation7 + $0x6f8] sm:$0xf] }
 0x120   :  { %2507 = vmatpush.bf16.msrb.mxu2 %v6325_v10  ;;  %v6726_v10 = vld [vmem:[#allocation7 + $0x858] sm:$0xf0] }
 0x121   :  { %2527 = vmatpush.bf16.msra.mxu0 %v5929_v6  ;;  %2520 = vmatpush.bf16.msrb.mxu3 %v6645_v13  ;;  %v8552_v6 = vld [vmem:[#allocation7 + $0x5b4] sm:$0xf]  ;;  %v5686_v13 = vld [vmem:[#allocation7 + $0x38] sm:$0xf0] }
 0x122   :  { %2540 = vmatpush.bf16.msra.mxu1 %v6249_v9  ;;  %v8632_v9 = vld [vmem:[#allocation7 + $0x834] sm:$0xf]  ;;  %v6409_v16 = vor.u32 %v8552_v6, %v6406_v7  ;;  %v5689_v24 = vor.u32 %v8372_v11, %v5686_v13  ;;  %v8498_v6 = vld [vmem:[#allocation7 + $0x3fc] sm:$0xf0] }
 0x123   :  { %2508 = vmatmul.bf16.vlgmr.msrb.gmra.mxu2 %v9390_v27 }
 0x124   :  { %2552 = vmatpush.bf16.msra.mxu2 %v6609_v14  ;;  %2521 = vmatmul.bf16.vlgmr.msrb.gmra.mxu3 %v9392_v33  ;;  %v8452_v14 = vld [vmem:[#allocation7 + $0x294] sm:$0xf] }
 0x125   :  { %2565 = vmatpush.bf16.msra.mxu3 %v6929_v17  ;;  %2528 = vmatpush.bf16.msra.mxu0 %v5889_v20  ;;  %v5972_v17 = vld [vmem:[#allocation7 + $0x248] sm:$0xf]  ;;  %v6729_v20 = vor.u32 %v8632_v9, %v6726_v10  ;;  %v6009_v28 = vor.u32 %v8452_v14, %v6006_v15  ;;  %v8588_v10 = vld [vmem:[#allocation7 + $0x6cc] sm:$0xf0] }
 0x126   :  { %2541 = vmatpush.bf16.msra.mxu1 %v6209_v23  ;;  %v6366_v23 = vld [vmem:[#allocation7 + $0x588] sm:$0xf0]  ;;  %v5973_v29 = vor.u32 %v8448_v18, %v5972_v17  ;;  %v6532_v9 = vld [vmem:[#allocation7 + $0x6a8] sm:$0xf]  ;;  %v8668_v15 = vld [vmem:[#allocation7 + $0x94c] sm:$0xf0] }
 0x127   :  { %v6369_v32 = vor.u32 %v8542_v22, %v6366_v23  ;;  %v6852_v14 = vld [vmem:[#allocation7 + $0x928] sm:$0xf]  ;;  %v8408_v18 = vld [vmem:[#allocation7 + $0x12c] sm:$0xf0] }
 0x128   :  { %2553 = vmatpush.bf16.msra.mxu2 %v6569_v26  ;;  %v6686_v26 = vld [vmem:[#allocation7 + $0x808] sm:$0xf0]  ;;  %v5812_v17 = vld [vmem:[#allocation7 + $0x108] sm:$0xf]  ;;  %v8488_v22 = vld [vmem:[#allocation7 + $0x3ac] sm:$0xf0]  ;;  %v6853_v23 = vor.u32 %v8668_v15, %v6852_v14 }
 0x129   :  { %2566 = vmatpush.bf16.msra.mxu3 %v6889_v30  ;;  %2529 = vmatpush.bf16.msra.mxu0 %v5849_v34  ;;  %v5932_v30 = vld [vmem:[#allocation7 + $0x1f8] sm:$0xf]  ;;  %v8438_v34 = vld [vmem:[#allocation7 + $0x21c] sm:$0xf0]  ;;  %v8548_v14 = vld [vmem:[#allocation7 + $0x58c] sm:$0xf0] }
 0x12a   :  { %2542 = vmatpush.bf16.msra.mxu1 %v6169_v37  ;;  %v6689_v37 = vor.u32 %v8622_v25, %v6686_v26  ;;  %v5933_v44 = vor.u32 %v8438_v34, %v5932_v30  ;;  %v8578_v25 = vld [vmem:[#allocation7 + $0x67c] sm:$0xf0]  ;;  %v5813_v26 = vor.u32 %v8408_v18, %v5812_v17  ;;  %v6133_v30 = vor.u32 %v8488_v22, %v6132_v21  ;;  %v6692_v18 = vld [vmem:[#allocation7 + $0x7e8] sm:$0xf]  ;;  %v8433_v22 = vld [vmem:[#allocation7 + $0x1fc] sm:$0xf] }
 0x12c   :  { %2554 = vmatpush.bf16.msra.mxu2 %v6529_v40  ;;  %v8612_v40 = vld [vmem:[#allocation7 + $0x794] sm:$0xf] }
 0x12d   :  { %2567 = vmatpush.bf16.msra.mxu3 %v6849_v43  ;;  %2530 = vmatpush.bf16.msra.mxu0 %v5809_v46  ;;  %v8608_v43 = vld [vmem:[#allocation7 + $0x76c] sm:$0xf0] }
 0x12e   :  { %2543 = vmatpush.bf16.msra.mxu1 %v6129_v49  ;;  %v8688_v46 = vld [vmem:[#allocation7 + $0x9ec] sm:$0xf0]  ;;  %v5892_v49 = vld [vmem:[#allocation7 + $0x1a8] sm:$0xf]  ;;  %v6613_v53 = vor.u32 %v8608_v43, %v6612_v42 }
 0x12f   :  { %v6933_v56 = vor.u32 %v8688_v46, %v6932_v45  ;;  %v5893_v59 = vor.u32 %v8428_v50, %v5892_v49  ;;  %v6772_v43 = vld [vmem:[#allocation7 + $0x888] sm:$0xf]  ;;  %v6093_v45 = vor.u32 %v8478_v36, %v6092_v35  ;;  %v8468_v50 = vld [vmem:[#allocation7 + $0x30c] sm:$0xf0]  ;;  %v8618_v36 = vld [vmem:[#allocation7 + $0x7bc] sm:$0xf0] }
 0x130   :  { %2555 = vmatpush.bf16.msra.mxu2 %v6489_v52  ;;  %v6649_v52 = vor.u32 %v8612_v40, %v6646_v41  ;;  %v8568_v40 = vld [vmem:[#allocation7 + $0x62c] sm:$0xf0]  ;;  %v5732_v46 = vld [vmem:[#allocation7 + $0x68] sm:$0xf] }
 0x131   :  { %2568 = vmatpush.bf16.msra.mxu3 %v6809_v55  ;;  %2531 = vmatpush.bf16.msra.mxu0 %v5769_v58  ;;  %v8508_v55 = vld [vmem:[#allocation7 + $0x44c] sm:$0xf0]  ;;  %v8598_v58 = vld [vmem:[#allocation7 + $0x71c] sm:$0xf0]  ;;  %v6052_v49 = vld [vmem:[#allocation7 + $0x2e8] sm:$0xf] }
 0x132   :  { %2544 = vmatpush.bf16.msra.mxu1 %v6089_v61  ;;  %v6892_v61 = vld [vmem:[#allocation7 + $0x978] sm:$0xf]  ;;  %v6213_v63 = vor.u32 %v8508_v55, %v6212_v54  ;;  %v6573_v3 = vor.u32 %v8598_v58, %v6572_v57  ;;  %v8558_v54 = vld [vmem:[#allocation7 + $0x5dc] sm:$0xf0]  ;;  %v647_v58 = vperm.slane %v9412_v51, 1 }
 0x133   :  { %v6732_v55 = vld [vmem:[#allocation7 + $0x838] sm:$0xf] }
 0x134   :  { %2556 = vmatpush.bf16.msra.mxu2 %v6449_v1  ;;  %v5852_v1 = vld [vmem:[#allocation7 + $0x158] sm:$0xf] }
 0x135   :  { %2569 = vmatpush.bf16.msra.mxu3 %v6769_v4  ;;  %2532 = vmatpush.bf16.msra.mxu0 %v5729_v8  ;;  %v6172_v4 = vld [vmem:[#allocation7 + $0x3d8] sm:$0xf]  ;;  %v6893_v8 = vor.u32 %v8678_v62, %v6892_v61  ;;  %v5853_v13 = vor.u32 %v8418_v2, %v5852_v1  ;;  %v8378_v1 = vld [vmem:[#allocation7 + $0x3c] sm:$0xf0] }
 0x136   :  { %2545 = vmatpush.bf16.msra.mxu1 %v6049_v12  ;;  %v6012_v2 = vld [vmem:[#allocation7 + $0x298] sm:$0xf] }
 0x138   :  { %2557 = vmatpush.bf16.msra.mxu2 %v6409_v16  ;;  %v2275_v7 = vpop.f32.mrf.mxu0  ;;  %v6173_v16 = vor.u32 %v8498_v6, %v6172_v4  ;;  %v8443_v6 = vld [vmem:[#allocation7 + $0x24c] sm:$0xf] }
 0x139   :  { %2570 = vmatpush.bf16.msra.mxu3 %v6729_v20  ;;  %2533 = vmatpush.bf16.msra.mxu0 %v5689_v24  ;;  %v2276_v11 = vadd.f32 %v2275_v7, %v646_v60  ;;  %v2288_v12 = vpop.f32.mrf.mxu1  ;;  %v6533_v20 = vor.u32 %v8588_v10, %v6532_v9  ;;  %v6492_v24 = vld [vmem:[#allocation7 + $0x658] sm:$0xf]  ;;  %v5974_v7 = vld [vmem:[#allocation7 + $0x270] sm:$0xf0] }
 0x13a   :  { %2546 = vmatpush.bf16.msra.mxu1 %v6009_v28  ;;  %v6812_v28 = vld [vmem:[#allocation7 + $0x8d8] sm:$0xf]  ;;  %v6493_v34 = vor.u32 %v8578_v25, %v6492_v24  ;;  %v5977_v21 = vor.u32 %v8443_v6, %v5974_v7  ;;  %v8583_v6 = vld [vmem:[#allocation7 + $0x6ac] sm:$0xf]  ;;  %v6534_v7 = vld [vmem:[#allocation7 + $0x6d0] sm:$0xf0] }
 0x13b   :  { %v2289_v19 = vadd.f32 %v2288_v12, %v2276_v11  ;;  %v5692_v60 = vld [vmem:[#allocation7 + $0x18] sm:$0xf]  ;;  %v6294_v12 = vld [vmem:[#allocation7 + $0x4f0] sm:$0xf0] }
 0x13c   :  { %2558 = vmatpush.bf16.msra.mxu2 %v6369_v32  ;;  %2534 = vmatmul.bf16.vlgmr.msra.gmra.mxu0 %v9384_v0  ;;  %v8398_v32 = vld [vmem:[#allocation7 + $0xdc] sm:$0xf0]  ;;  %v5693_v17 = vor.u32 %v8378_v1, %v5692_v60  ;;  %v8493_v1 = vld [vmem:[#allocation7 + $0x3dc] sm:$0xf] }
 0x13d   :  { %2578 = vmatpush.bf16.msrb.mxu0 %v5973_v29  ;;  %2571 = vmatpush.bf16.msra.mxu3 %v6689_v37  ;;  %v8658_v29 = vld [vmem:[#allocation7 + $0x8fc] sm:$0xf0] }
 0x13e   :  { %2591 = vmatpush.bf16.msrb.mxu1 %v6293_v31  ;;  %v5772_v31 = vld [vmem:[#allocation7 + $0xb8] sm:$0xf]  ;;  %v6813_v38 = vor.u32 %v8658_v29, %v6812_v28  ;;  %v8513_v28 = vld [vmem:[#allocation7 + $0x47c] sm:$0xf]  ;;  %v6254_v29 = vld [vmem:[#allocation7 + $0x4a0] sm:$0xf0] }
 0x13f   :  { %2547 = vmatmul.bf16.vlgmr.msra.gmra.mxu1 %v9386_v5  ;;  %v5773_v42 = vor.u32 %v8398_v32, %v5772_v31  ;;  %v6332_v31 = vld [vmem:[#allocation7 + $0x518] sm:$0xf]  ;;  %v8538_v32 = vld [vmem:[#allocation7 + $0x53c] sm:$0xf0] }
 0x140   :  { %2559 = vmatpush.bf16.msra.mxu2 %v6329_v48  ;;  %v2277_v37 = vpop.f32.mrf.mxu0  ;;  %v6453_v48 = vor.u32 %v8568_v40, %v6452_v39 }
 0x141   :  { %2579 = vmatpush.bf16.msrb.mxu0 %v5933_v44  ;;  %2572 = vmatpush.bf16.msra.mxu3 %v6649_v52  ;;  %v2290_v41 = vpop.f32.mrf.mxu1  ;;  %v8648_v44 = vld [vmem:[#allocation7 + $0x8ac] sm:$0xf0]  ;;  %v8603_v37 = vld [vmem:[#allocation7 + $0x74c] sm:$0xf] }
 0x142   :  { %2592 = vmatpush.bf16.msrb.mxu1 %v6253_v47  ;;  %v8388_v47 = vld [vmem:[#allocation7 + $0x8c] sm:$0xf0]  ;;  %v6773_v52 = vor.u32 %v8648_v44, %v6772_v43  ;;  %v8683_v41 = vld [vmem:[#allocation7 + $0x9cc] sm:$0xf]  ;;  %v6257_v43 = vor.u32 %v8513_v28, %v6254_v29  ;;  %v6333_v44 = vor.u32 %v8538_v32, %v6332_v31  ;;  %v6814_v31 = vld [vmem:[#allocation7 + $0x900] sm:$0xf0] }
 0x143   :  { %2560 = vmatmul.bf16.vlgmr.msra.gmra.mxu2 %v9390_v27  ;;  %v5733_v57 = vor.u32 %v8388_v47, %v5732_v46  ;;  %v5894_v46 = vld [vmem:[#allocation7 + $0x1d0] sm:$0xf0] }
 0x144   :  { %2604 = vmatpush.bf16.msrb.mxu2 %v6613_v53  ;;  %2573 = vmatmul.bf16.vlgmr.msra.gmra.mxu3 %v9392_v33  ;;  %v6412_v53 = vld [vmem:[#allocation7 + $0x5b8] sm:$0xf] }
 0x145   :  { %2617 = vmatpush.bf16.msrb.mxu3 %v6933_v56  ;;  %2580 = vmatpush.bf16.msrb.mxu0 %v5893_v59  ;;  %v8638_v59 = vld [vmem:[#allocation7 + $0x85c] sm:$0xf0]  ;;  %v6413_v4 = vor.u32 %v8558_v54, %v6412_v53 }
 0x146   :  { %2593 = vmatpush.bf16.msrb.mxu1 %v6213_v63  ;;  %v2301_v56 = vpop.f32.mrf.mxu2  ;;  %v6053_v63 = vor.u32 %v8468_v50, %v6052_v49  ;;  %v6733_v11 = vor.u32 %v8638_v59, %v6732_v55  ;;  %v8503_v50 = vld [vmem:[#allocation7 + $0x42c] sm:$0xf]  ;;  %v8593_v55 = vld [vmem:[#allocation7 + $0x6fc] sm:$0xf]  ;;  %v6894_v59 = vld [vmem:[#allocation7 + $0x9a0] sm:$0xf0] }
 0x147   :  { %v2302_v61 = vadd.f32 %v2301_v56, %v2289_v19  ;;  %v2314_v62 = vpop.f32.mrf.mxu3  ;;  %v8628_v19 = vld [vmem:[#allocation7 + $0x80c] sm:$0xf0]  ;;  %v6574_v56 = vld [vmem:[#allocation7 + $0x720] sm:$0xf0] }
 0x148   :  { %2605 = vmatpush.bf16.msrb.mxu2 %v6573_v3  ;;  %v8458_v3 = vld [vmem:[#allocation7 + $0x2bc] sm:$0xf0]  ;;  %v2327_v10 = vpop.f32.mrf.mxu0 }
 0x149   :  { %2618 = vmatpush.bf16.msrb.mxu3 %v6893_v8  ;;  %2581 = vmatpush.bf16.msrb.mxu0 %v5853_v13  ;;  %v8523_v8 = vld [vmem:[#allocation7 + $0x4cc] sm:$0xf]  ;;  %v9420_v9 = vadd.f32 %v2314_v62, %v2302_v61  ;;  %v6372_v13 = vld [vmem:[#allocation7 + $0x568] sm:$0xf]  ;;  %v2328_v15 = vadd.f32 %v2327_v10, %v647_v58  ;;  %v8673_v58 = vld [vmem:[#allocation7 + $0x97c] sm:$0xf] }
 0x14a   :  { %2594 = vmatpush.bf16.msrb.mxu1 %v6173_v16  ;;  %v2340_v16 = vpop.f32.mrf.mxu1  ;;  %v6297_v24 = vor.u32 %v8523_v8, %v6294_v12  ;;  %v6373_v25 = vor.u32 %v8548_v14, %v6372_v13  ;;  %v8413_v61 = vld [vmem:[#allocation7 + $0x15c] sm:$0xf]  ;;  %v5854_v62 = vld [vmem:[#allocation7 + $0x180] sm:$0xf0]  ;;  %v8663_v13 = vld [vmem:[#allocation7 + $0x92c] sm:$0xf] }
 0x14b   :  { %v5857_v12 = vor.u32 %v8413_v61, %v5854_v62  ;;  %v6854_v14 = vld [vmem:[#allocation7 + $0x950] sm:$0xf0]  ;;  %v8633_v61 = vld [vmem:[#allocation7 + $0x83c] sm:$0xf]  ;;  %v6734_v62 = vld [vmem:[#allocation7 + $0x860] sm:$0xf0] }
 0x14c   :  { %2606 = vmatpush.bf16.msrb.mxu2 %v6533_v20  ;;  %v6013_v20 = vor.u32 %v8458_v3, %v6012_v2  ;;  %v6174_v2 = vld [vmem:[#allocation7 + $0x400] sm:$0xf0] }
 0x14d   :  { %2619 = vmatpush.bf16.msrb.mxu3 %v6853_v23  ;;  %2582 = vmatpush.bf16.msrb.mxu0 %v5813_v26  ;;  %v2341_v23 = vadd.f32 %v2340_v16, %v2328_v15  ;;  %v5934_v26 = vld [vmem:[#allocation7 + $0x220] sm:$0xf0]  ;;  %v6177_v15 = vor.u32 %v8493_v1, %v6174_v2  ;;  %v8403_v16 = vld [vmem:[#allocation7 + $0x10c] sm:$0xf] }
 0x14e   :  { %2595 = vmatpush.bf16.msrb.mxu1 %v6133_v30  ;;  %v6693_v30 = vor.u32 %v8628_v19, %v6692_v18  ;;  %v2303_v35 = vpop.f32.mrf.mxu2  ;;  %v5937_v40 = vor.u32 %v8433_v22, %v5934_v26  ;;  %v6537_v19 = vor.u32 %v8583_v6, %v6534_v7  ;;  %v5694_v2 = vld [vmem:[#allocation7 + $0x40] sm:$0xf0]  ;;  %v5980_v7 = vld [vmem:[#allocation7 + $0x250] sm:$0xf] }
 0x14f   :  { %v2316_v39 = vpop.f32.mrf.mxu3  ;;  %v5774_v35 = vld [vmem:[#allocation7 + $0xe0] sm:$0xf0] }
 0x150   :  { %2607 = vmatpush.bf16.msrb.mxu2 %v6493_v34  ;;  %v6652_v34 = vld [vmem:[#allocation7 + $0x798] sm:$0xf]  ;;  %v2329_v47 = vpop.f32.mrf.mxu0  ;;  %v6094_v39 = vld [vmem:[#allocation7 + $0x360] sm:$0xf0] }
 0x151   :  { %2620 = vmatpush.bf16.msrb.mxu3 %v6813_v38  ;;  %2583 = vmatpush.bf16.msrb.mxu0 %v5773_v42  ;;  %v6614_v38 = vld [vmem:[#allocation7 + $0x770] sm:$0xf0] }
 0x152   :  { %2596 = vmatpush.bf16.msrb.mxu1 %v6093_v45  ;;  %v6934_v42 = vld [vmem:[#allocation7 + $0x9f0] sm:$0xf0]  ;;  %v8423_v45 = vld [vmem:[#allocation7 + $0x1ac] sm:$0xf]  ;;  %v6617_v49 = vor.u32 %v8603_v37, %v6614_v38  ;;  %v2342_v53 = vpop.f32.mrf.mxu1  ;;  %v8473_v38 = vld [vmem:[#allocation7 + $0x33c] sm:$0xf] }
 0x153   :  { %v6937_v54 = vor.u32 %v8683_v41, %v6934_v42  ;;  %v8563_v42 = vld [vmem:[#allocation7 + $0x60c] sm:$0xf]  ;;  %v6774_v47 = vld [vmem:[#allocation7 + $0x8b0] sm:$0xf0] }
 0x154   :  { %2608 = vmatpush.bf16.msrb.mxu2 %v6453_v48  ;;  %v6653_v48 = vor.u32 %v8618_v36, %v6652_v34  ;;  %v8393_v34 = vld [vmem:[#allocation7 + $0xbc] sm:$0xf]  ;;  %v8463_v53 = vld [vmem:[#allocation7 + $0x2ec] sm:$0xf] }
 0x155   :  { %2621 = vmatpush.bf16.msrb.mxu3 %v6773_v52  ;;  %2584 = vmatpush.bf16.msrb.mxu0 %v5733_v57  ;;  %v6214_v52 = vld [vmem:[#allocation7 + $0x450] sm:$0xf0]  ;;  %v5897_v57 = vor.u32 %v8423_v45, %v5894_v46  ;;  %v5777_v45 = vor.u32 %v8393_v34, %v5774_v35  ;;  %v8643_v46 = vld [vmem:[#allocation7 + $0x88c] sm:$0xf]  ;;  %v8533_v34 = vld [vmem:[#allocation7 + $0x51c] sm:$0xf] }
 0x156   :  { %2597 = vmatpush.bf16.msrb.mxu1 %v6053_v63  ;;  %v6217_v60 = vor.u32 %v8503_v50, %v6214_v52  ;;  %v6577_v63 = vor.u32 %v8593_v55, %v6574_v56  ;;  %v2353_v3 = vpop.f32.mrf.mxu2  ;;  %v5734_v50 = vld [vmem:[#allocation7 + $0x90] sm:$0xf0]  ;;  %v6777_v56 = vor.u32 %v8643_v46, %v6774_v47  ;;  %v6334_v35 = vld [vmem:[#allocation7 + $0x540] sm:$0xf0]  ;;  %v8429_v46 = vld [vmem:[#allocation7 + $0x1d4] sm:$0xf0] }
 0x157   :  { %v2354_v8 = vadd.f32 %v2353_v3, %v2341_v23  ;;  %v2366_v10 = vpop.f32.mrf.mxu3  ;;  %v6857_v23 = vor.u32 %v8663_v13, %v6854_v14  ;;  %v8453_v3 = vld [vmem:[#allocation7 + $0x29c] sm:$0xf]  ;;  %v8543_v13 = vld [vmem:[#allocation7 + $0x56c] sm:$0xf]  ;;  %v6374_v14 = vld [vmem:[#allocation7 + $0x590] sm:$0xf0] }
 0x158   :  { %2609 = vmatpush.bf16.msrb.mxu2 %v6413_v4  ;;  %v6897_v4 = vor.u32 %v8673_v58, %v6894_v59  ;;  %v6414_v58 = vld [vmem:[#allocation7 + $0x5e0] sm:$0xf0] }
 0x159   :  { %2622 = vmatpush.bf16.msrb.mxu3 %v6733_v11  ;;  %2585 = vmatpush.bf16.msrb.mxu0 %v5693_v17  ;;  %v648_v11 = vperm.slane %v9412_v51, 2  ;;  %v5814_v17 = vld [vmem:[#allocation7 + $0x130] sm:$0xf0]  ;;  %v9427_v18 = vadd.f32 %v2366_v10, %v2354_v8  ;;  %v2379_v22 = vpop.f32.mrf.mxu0  ;;  %v8449_v8 = vld [vmem:[#allocation7 + $0x274] sm:$0xf0] }
 0x15a   :  { %2598 = vmatpush.bf16.msrb.mxu1 %v6013_v20  ;;  %v8483_v20 = vld [vmem:[#allocation7 + $0x38c] sm:$0xf]  ;;  %v5817_v29 = vor.u32 %v8403_v16, %v5814_v17  ;;  %v6300_v10 = vld [vmem:[#allocation7 + $0x4d0] sm:$0xf] }
 0x15b   :  { %v2380_v26 = vadd.f32 %v2379_v22, %v648_v11  ;;  %v6737_v11 = vor.u32 %v8633_v61, %v6734_v62  ;;  %v5860_v61 = vld [vmem:[#allocation7 + $0x160] sm:$0xf]  ;;  %v8419_v62 = vld [vmem:[#allocation7 + $0x184] sm:$0xf0] }
 0x15c   :  { %2610 = vmatpush.bf16.msrb.mxu2 %v6373_v25  ;;  %2586 = vmatmul.bf16.vlgmr.msrb.gmra.mxu0 %v9384_v0  ;;  %v6494_v25 = vld [vmem:[#allocation7 + $0x680] sm:$0xf0]  ;;  %v2392_v28 = vpop.f32.mrf.mxu1 }
 0x15d   :  { %2630 = vmatpush.bf16.msra.mxu0 %v5977_v21  ;;  %2623 = vmatpush.bf16.msrb.mxu3 %v6693_v30  ;;  %v6134_v21 = vld [vmem:[#allocation7 + $0x3b0] sm:$0xf0]  ;;  %v8653_v30 = vld [vmem:[#allocation7 + $0x8dc] sm:$0xf]  ;;  %v2393_v36 = vadd.f32 %v2392_v28, %v2380_v26  ;;  %v6377_v26 = vor.u32 %v8543_v13, %v6374_v14  ;;  %v8439_v28 = vld [vmem:[#allocation7 + $0x224] sm:$0xf0] }
 0x15e   :  { %2643 = vmatpush.bf16.msra.mxu1 %v6297_v24  ;;  %v8573_v24 = vld [vmem:[#allocation7 + $0x65c] sm:$0xf]  ;;  %v6137_v32 = vor.u32 %v8483_v20, %v6134_v21  ;;  %v6817_v41 = vor.u32 %v8653_v30, %v6814_v31  ;;  %v6694_v20 = vld [vmem:[#allocation7 + $0x810] sm:$0xf0]  ;;  %v8519_v30 = vld [vmem:[#allocation7 + $0x4a4] sm:$0xf0] }
 0x15f   :  { %2599 = vmatmul.bf16.vlgmr.msrb.gmra.mxu1 %v9386_v5  ;;  %v6497_v37 = vor.u32 %v8573_v24, %v6494_v25  ;;  %v5940_v24 = vld [vmem:[#allocation7 + $0x200] sm:$0xf]  ;;  %v5820_v13 = vld [vmem:[#allocation7 + $0x110] sm:$0xf]  ;;  %v8409_v14 = vld [vmem:[#allocation7 + $0x134] sm:$0xf0] }
 0x160   :  { %2611 = vmatpush.bf16.msrb.mxu2 %v6333_v44  ;;  %v2368_v44 = vpop.f32.mrf.mxu3 }
 0x161   :  { %2631 = vmatpush.bf16.msra.mxu0 %v5937_v40  ;;  %2624 = vmatpush.bf16.msrb.mxu3 %v6653_v48  ;;  %v2355_v40 = vpop.f32.mrf.mxu2  ;;  %v6097_v48 = vor.u32 %v8473_v38, %v6094_v39  ;;  %v2381_v55 = vpop.f32.mrf.mxu0  ;;  %v6654_v38 = vld [vmem:[#allocation7 + $0x7c0] sm:$0xf0]  ;;  %v8609_v39 = vld [vmem:[#allocation7 + $0x774] sm:$0xf0]  ;;  %v6337_v44 = vor.u32 %v8533_v34, %v6334_v35 }
 0x162   :  { %2644 = vmatpush.bf16.msra.mxu1 %v6257_v43  ;;  %v6454_v43 = vld [vmem:[#allocation7 + $0x630] sm:$0xf0]  ;;  %v5941_v40 = vor.u32 %v8439_v28, %v5940_v24  ;;  %v6580_v55 = vld [vmem:[#allocation7 + $0x700] sm:$0xf]  ;;  %v8659_v28 = vld [vmem:[#allocation7 + $0x904] sm:$0xf0] }
 0x163   :  { %2612 = vmatmul.bf16.vlgmr.msrb.gmra.mxu2 %v9390_v27  ;;  %v6457_v52 = vor.u32 %v8563_v42, %v6454_v43  ;;  %v8689_v42 = vld [vmem:[#allocation7 + $0x9f4] sm:$0xf0] }
 0x164   :  { %2656 = vmatpush.bf16.msra.mxu2 %v6617_v49  ;;  %2625 = vmatmul.bf16.vlgmr.msrb.gmra.mxu3 %v9392_v33  ;;  %v8383_v49 = vld [vmem:[#allocation7 + $0x6c] sm:$0xf]  ;;  %v2394_v59 = vpop.f32.mrf.mxu1 }
 0x165   :  { %2669 = vmatpush.bf16.msra.mxu3 %v6937_v54  ;;  %2632 = vmatpush.bf16.msra.mxu0 %v5897_v57  ;;  %v6054_v54 = vld [vmem:[#allocation7 + $0x310] sm:$0xf0]  ;;  %v8553_v57 = vld [vmem:[#allocation7 + $0x5bc] sm:$0xf]  ;;  %v8679_v59 = vld [vmem:[#allocation7 + $0x9a4] sm:$0xf0] }
 0x166   :  { %2645 = vmatpush.bf16.msra.mxu1 %v6217_v60  ;;  %v5737_v60 = vor.u32 %v8383_v49, %v5734_v50  ;;  %v6057_v1 = vor.u32 %v8463_v53, %v6054_v54  ;;  %v6417_v6 = vor.u32 %v8553_v57, %v6414_v58  ;;  %v6220_v49 = vld [vmem:[#allocation7 + $0x430] sm:$0xf]  ;;  %v8509_v50 = vld [vmem:[#allocation7 + $0x454] sm:$0xf0]  ;;  %v6900_v58 = vld [vmem:[#allocation7 + $0x980] sm:$0xf] }
 0x168   :  { %2657 = vmatpush.bf16.msra.mxu2 %v6577_v63  ;;  %v8373_v63 = vld [vmem:[#allocation7 + $0x1c] sm:$0xf]  ;;  %v2418_v16 = vpop.f32.mrf.mxu3 }
 0x169   :  { %2670 = vmatpush.bf16.msra.mxu3 %v6897_v4  ;;  %2633 = vmatpush.bf16.msra.mxu0 %v5857_v12  ;;  %v6014_v4 = vld [vmem:[#allocation7 + $0x2c0] sm:$0xf0]  ;;  %v8529_v12 = vld [vmem:[#allocation7 + $0x4f4] sm:$0xf0]  ;;  %v5697_v17 = vor.u32 %v8373_v63, %v5694_v2  ;;  %v8499_v2 = vld [vmem:[#allocation7 + $0x404] sm:$0xf0] }
 0x16a   :  { %2646 = vmatpush.bf16.msra.mxu1 %v6177_v15  ;;  %v2405_v15 = vpop.f32.mrf.mxu2  ;;  %v6017_v22 = vor.u32 %v8453_v3, %v6014_v4  ;;  %v6301_v25 = vor.u32 %v8529_v12, %v6300_v10  ;;  %v6901_v3 = vor.u32 %v8679_v59, %v6900_v58  ;;  %v6540_v4 = vld [vmem:[#allocation7 + $0x6b0] sm:$0xf]  ;;  %v8639_v58 = vld [vmem:[#allocation7 + $0x864] sm:$0xf0]  ;;  %v5700_v59 = vld [vmem:[#allocation7 + $0x20] sm:$0xf] }
 0x16b   :  { %v2406_v21 = vadd.f32 %v2405_v15, %v2393_v36  ;;  %v6620_v36 = vld [vmem:[#allocation7 + $0x750] sm:$0xf] }
 0x16c   :  { %2658 = vmatpush.bf16.msra.mxu2 %v6537_v19  ;;  %v8623_v19 = vld [vmem:[#allocation7 + $0x7ec] sm:$0xf]  ;;  %v6860_v10 = vld [vmem:[#allocation7 + $0x930] sm:$0xf] }
 0x16d   :  { %2671 = vmatpush.bf16.msra.mxu3 %v6857_v23  ;;  %2634 = vmatpush.bf16.msra.mxu0 %v5817_v29  ;;  %v5981_v23 = vor.u32 %v8449_v8, %v5980_v7  ;;  %v6260_v29 = vld [vmem:[#allocation7 + $0x480] sm:$0xf]  ;;  %v9429_v31 = vadd.f32 %v2418_v16, %v2406_v21  ;;  %v649_v7 = vperm.slane %v9412_v51, 3  ;;  %v5861_v8 = vor.u32 %v8419_v62, %v5860_v61  ;;  %v6140_v16 = vld [vmem:[#allocation7 + $0x390] sm:$0xf] }
 0x16e   :  { %2647 = vmatpush.bf16.msra.mxu1 %v6137_v32  ;;  %v6697_v32 = vor.u32 %v8623_v19, %v6694_v20  ;;  %v6261_v43 = vor.u32 %v8519_v30, %v6260_v29  ;;  %v6500_v21 = vld [vmem:[#allocation7 + $0x660] sm:$0xf]  ;;  %v8379_v61 = vld [vmem:[#allocation7 + $0x44] sm:$0xf0] }
 0x16f   :  { %v5780_v30 = vld [vmem:[#allocation7 + $0xc0] sm:$0xf] }
 0x170   :  { %2659 = vmatpush.bf16.msra.mxu2 %v6497_v37  ;;  %v8613_v37 = vld [vmem:[#allocation7 + $0x79c] sm:$0xf]  ;;  %v2420_v53 = vpop.f32.mrf.mxu3  ;;  %v6020_v62 = vld [vmem:[#allocation7 + $0x2a0] sm:$0xf] }
 0x171   :  { %2672 = vmatpush.bf16.msra.mxu3 %v6817_v41  ;;  %2635 = vmatpush.bf16.msra.mxu0 %v5777_v45  ;;  %v6940_v41 = vld [vmem:[#allocation7 + $0x9d0] sm:$0xf]  ;;  %v6657_v47 = vor.u32 %v8613_v37, %v6654_v38  ;;  %v6100_v37 = vld [vmem:[#allocation7 + $0x340] sm:$0xf]  ;;  %v8479_v38 = vld [vmem:[#allocation7 + $0x364] sm:$0xf0] }
 0x172   :  { %2648 = vmatpush.bf16.msra.mxu1 %v6097_v48  ;;  %v5900_v45 = vld [vmem:[#allocation7 + $0x1b0] sm:$0xf]  ;;  %v6621_v48 = vor.u32 %v8609_v39, %v6620_v36  ;;  %v6941_v54 = vor.u32 %v8689_v42, %v6940_v41  ;;  %v6420_v53 = vld [vmem:[#allocation7 + $0x5c0] sm:$0xf] }
 0x173   :  { %v5901_v57 = vor.u32 %v8429_v46, %v5900_v45  ;;  %v6460_v39 = vld [vmem:[#allocation7 + $0x610] sm:$0xf]  ;;  %v8389_v46 = vld [vmem:[#allocation7 + $0x94] sm:$0xf0] }
 0x174   :  { %2660 = vmatpush.bf16.msra.mxu2 %v6457_v52  ;;  %v2407_v52 = vpop.f32.mrf.mxu2  ;;  %v6780_v42 = vld [vmem:[#allocation7 + $0x890] sm:$0xf] }
 0x175   :  { %2673 = vmatpush.bf16.msra.mxu3 %v6777_v56  ;;  %2636 = vmatpush.bf16.msra.mxu0 %v5737_v60  ;;  %v8599_v56 = vld [vmem:[#allocation7 + $0x724] sm:$0xf0]  ;;  %v6221_v60 = vor.u32 %v8509_v50, %v6220_v49  ;;  %v5740_v45 = vld [vmem:[#allocation7 + $0x70] sm:$0xf]  ;;  %v8469_v49 = vld [vmem:[#allocation7 + $0x314] sm:$0xf0] }
 0x176   :  { %2649 = vmatpush.bf16.msra.mxu1 %v6057_v1  ;;  %v6581_v63 = vor.u32 %v8599_v56, %v6580_v55  ;;  %v6180_v1 = vld [vmem:[#allocation7 + $0x3e0] sm:$0xf]  ;;  %v5741_v56 = vor.u32 %v8389_v46, %v5740_v45 }
 0x177   :  { %v6181_v12 = vor.u32 %v8499_v2, %v6180_v1  ;;  %v8444_v2 = vld [vmem:[#allocation7 + $0x254] sm:$0xf] }
 0x178   :  { %2661 = vmatpush.bf16.msra.mxu2 %v6417_v6  ;;  %v8589_v6 = vld [vmem:[#allocation7 + $0x6d4] sm:$0xf0] }
 0x179   :  { %2674 = vmatpush.bf16.msra.mxu3 %v6737_v11  ;;  %2637 = vmatpush.bf16.msra.mxu0 %v5697_v17  ;;  %v8669_v11 = vld [vmem:[#allocation7 + $0x954] sm:$0xf0]  ;;  %v6541_v15 = vor.u32 %v8589_v6, %v6540_v4  ;;  %v2431_v19 = vpop.f32.mrf.mxu0  ;;  %v8524_v4 = vld [vmem:[#allocation7 + $0x4d4] sm:$0xf] }
 0x17a   :  { %2650 = vmatpush.bf16.msra.mxu1 %v6017_v22  ;;  %v8489_v17 = vld [vmem:[#allocation7 + $0x3b4] sm:$0xf0]  ;;  %v6861_v20 = vor.u32 %v8669_v11, %v6860_v10  ;;  %v8579_v22 = vld [vmem:[#allocation7 + $0x684] sm:$0xf0]  ;;  %v6380_v10 = vld [vmem:[#allocation7 + $0x570] sm:$0xf] }
 0x17b   :  { %v6141_v29 = vor.u32 %v8489_v17, %v6140_v16  ;;  %v6501_v35 = vor.u32 %v8579_v22, %v6500_v21  ;;  %v8549_v11 = vld [vmem:[#allocation7 + $0x594] sm:$0xf0] }
 0x17c   :  { %2662 = vmatpush.bf16.msra.mxu2 %v6377_v26  ;;  %2638 = vmatmul.bf16.vlgmr.msra.gmra.mxu0 %v9384_v0  ;;  %v2444_v24 = vpop.f32.mrf.mxu1  ;;  %v6820_v26 = vld [vmem:[#allocation7 + $0x8e0] sm:$0xf]  ;;  %v8629_v16 = vld [vmem:[#allocation7 + $0x814] sm:$0xf0] }
 0x17d   :  { %2682 = vmatpush.bf16.msrb.mxu0 %v5981_v23  ;;  %2675 = vmatpush.bf16.msra.mxu3 %v6697_v32  ;;  %v2432_v23 = vadd.f32 %v2431_v19, %v649_v7  ;;  %v8399_v32 = vld [vmem:[#allocation7 + $0xe4] sm:$0xf0]  ;;  %v6821_v36 = vor.u32 %v8659_v28, %v6820_v26  ;;  %v6262_v26 = vld [vmem:[#allocation7 + $0x4a8] sm:$0xf0] }
 0x17e   :  { %2695 = vmatpush.bf16.msrb.mxu1 %v6301_v25  ;;  %v5821_v25 = vor.u32 %v8409_v14, %v5820_v13  ;;  %v5781_v41 = vor.u32 %v8399_v32, %v5780_v30  ;;  %v5701_v14 = vor.u32 %v8379_v61, %v5700_v59  ;;  %v8539_v30 = vld [vmem:[#allocation7 + $0x544] sm:$0xf0]  ;;  %v6660_v32 = vld [vmem:[#allocation7 + $0x7a0] sm:$0xf]  ;;  %v5862_v59 = vld [vmem:[#allocation7 + $0x188] sm:$0xf0] }
 0x17f   :  { %2651 = vmatmul.bf16.vlgmr.msra.gmra.mxu1 %v9386_v5  ;;  %v2445_v34 = vadd.f32 %v2444_v24, %v2432_v23  ;;  %v6381_v23 = vor.u32 %v8549_v11, %v6380_v10  ;;  %v5942_v24 = vld [vmem:[#allocation7 + $0x228] sm:$0xf0]  ;;  %v8494_v61 = vld [vmem:[#allocation7 + $0x3e4] sm:$0xf]  ;;  %v8404_v10 = vld [vmem:[#allocation7 + $0x114] sm:$0xf] }
 0x180   :  { %2663 = vmatpush.bf16.msra.mxu2 %v6337_v44  ;;  %v6101_v44 = vor.u32 %v8479_v38, %v6100_v37  ;;  %v6622_v37 = vld [vmem:[#allocation7 + $0x778] sm:$0xf0] }
 0x181   :  { %2683 = vmatpush.bf16.msrb.mxu0 %v5941_v40  ;;  %2676 = vmatpush.bf16.msra.mxu3 %v6657_v47  ;;  %v8569_v40 = vld [vmem:[#allocation7 + $0x634] sm:$0xf0]  ;;  %v2433_v50 = vpop.f32.mrf.mxu0  ;;  %v5822_v11 = vld [vmem:[#allocation7 + $0x138] sm:$0xf0] }
 0x182   :  { %2696 = vmatpush.bf16.msrb.mxu1 %v6261_v43  ;;  %v8649_v43 = vld [vmem:[#allocation7 + $0x8b4] sm:$0xf0]  ;;  %v6461_v47 = vor.u32 %v8569_v40, %v6460_v39  ;;  %v6942_v39 = vld [vmem:[#allocation7 + $0x9f8] sm:$0xf0] }
 0x183   :  { %2664 = vmatmul.bf16.vlgmr.msra.gmra.mxu2 %v9390_v27  ;;  %v6781_v52 = vor.u32 %v8649_v43, %v6780_v42  ;;  %v8424_v42 = vld [vmem:[#allocation7 + $0x1b4] sm:$0xf]  ;;  %v5902_v43 = vld [vmem:[#allocation7 + $0x1d8] sm:$0xf0] }
 0x184   :  { %2708 = vmatpush.bf16.msrb.mxu2 %v6621_v48  ;;  %2677 = vmatmul.bf16.vlgmr.msra.gmra.mxu3 %v9392_v33  ;;  %v6060_v48 = vld [vmem:[#allocation7 + $0x2f0] sm:$0xf]  ;;  %v2446_v55 = vpop.f32.mrf.mxu1 }
 0x185   :  { %2721 = vmatpush.bf16.msrb.mxu3 %v6941_v54  ;;  %2684 = vmatpush.bf16.msrb.mxu0 %v5901_v57  ;;  %v8559_v54 = vld [vmem:[#allocation7 + $0x5e4] sm:$0xf0]  ;;  %v6740_v57 = vld [vmem:[#allocation7 + $0x840] sm:$0xf]  ;;  %v8674_v55 = vld [vmem:[#allocation7 + $0x984] sm:$0xf] }
 0x186   :  { %2697 = vmatpush.bf16.msrb.mxu1 %v6221_v60  ;;  %v6061_v60 = vor.u32 %v8469_v49, %v6060_v48  ;;  %v6421_v1 = vor.u32 %v8559_v54, %v6420_v53  ;;  %v2457_v6 = vpop.f32.mrf.mxu2  ;;  %v6741_v7 = vor.u32 %v8639_v58, %v6740_v57  ;;  %v6222_v48 = vld [vmem:[#allocation7 + $0x458] sm:$0xf0]  ;;  %v6582_v53 = vld [vmem:[#allocation7 + $0x728] sm:$0xf0]  ;;  %v5905_v54 = vor.u32 %v8424_v42, %v5902_v43  ;;  %v8414_v58 = vld [vmem:[#allocation7 + $0x164] sm:$0xf] }
 0x187   :  { %v2470_v13 = vpop.f32.mrf.mxu3  ;;  %v8384_v42 = vld [vmem:[#allocation7 + $0x74] sm:$0xf]  ;;  %v5742_v43 = vld [vmem:[#allocation7 + $0x98] sm:$0xf0] }
 0x188   :  { %2709 = vmatpush.bf16.msrb.mxu2 %v6581_v63  ;;  %v8459_v63 = vld [vmem:[#allocation7 + $0x2c4] sm:$0xf0] }
 0x189   :  { %2722 = vmatpush.bf16.msrb.mxu3 %v6901_v3  ;;  %2685 = vmatpush.bf16.msrb.mxu0 %v5861_v8  ;;  %v5982_v3 = vld [vmem:[#allocation7 + $0x278] sm:$0xf0]  ;;  %v6021_v17 = vor.u32 %v8459_v63, %v6020_v62  ;;  %v6182_v62 = vld [vmem:[#allocation7 + $0x408] sm:$0xf0] }
 0x18a   :  { %2698 = vmatpush.bf16.msrb.mxu1 %v6181_v12  ;;  %v6302_v8 = vld [vmem:[#allocation7 + $0x4f8] sm:$0xf0]  ;;  %v2458_v12 = vadd.f32 %v2457_v6, %v2445_v34  ;;  %v5985_v19 = vor.u32 %v8444_v2, %v5982_v3  ;;  %v8619_v34 = vld [vmem:[#allocation7 + $0x7c4] sm:$0xf0]  ;;  %v650_v3 = vperm.slane %v9412_v51, 4 }
 0x18b   :  { %v6305_v22 = vor.u32 %v8524_v4, %v6302_v8  ;;  %v6661_v45 = vor.u32 %v8619_v34, %v6660_v32  ;;  %v6542_v2 = vld [vmem:[#allocation7 + $0x6d8] sm:$0xf0]  ;;  %v5865_v4 = vor.u32 %v8414_v58, %v5862_v59  ;;  %v8664_v6 = vld [vmem:[#allocation7 + $0x934] sm:$0xf]  ;;  %v6185_v8 = vor.u32 %v8494_v61, %v6182_v62  ;;  %v8474_v32 = vld [vmem:[#allocation7 + $0x344] sm:$0xf] }
 0x18c   :  { %2710 = vmatpush.bf16.msrb.mxu2 %v6541_v15  ;;  %v6700_v15 = vld [vmem:[#allocation7 + $0x7f0] sm:$0xf]  ;;  %v9436_v21 = vadd.f32 %v2470_v13, %v2458_v12  ;;  %v8484_v13 = vld [vmem:[#allocation7 + $0x394] sm:$0xf]  ;;  %v6102_v34 = vld [vmem:[#allocation7 + $0x368] sm:$0xf0] }
 0x18d   :  { %2723 = vmatpush.bf16.msrb.mxu3 %v6861_v20  ;;  %2686 = vmatpush.bf16.msrb.mxu0 %v5821_v25  ;;  %v8434_v20 = vld [vmem:[#allocation7 + $0x204] sm:$0xf]  ;;  %v6701_v28 = vor.u32 %v8629_v16, %v6700_v15  ;;  %v5702_v58 = vld [vmem:[#allocation7 + $0x48] sm:$0xf0] }
 0x18e   :  { %2699 = vmatpush.bf16.msrb.mxu1 %v6141_v29  ;;  %v8514_v25 = vld [vmem:[#allocation7 + $0x484] sm:$0xf]  ;;  %v6340_v29 = vld [vmem:[#allocation7 + $0x520] sm:$0xf]  ;;  %v5945_v38 = vor.u32 %v8434_v20, %v5942_v24  ;;  %v6822_v24 = vld [vmem:[#allocation7 + $0x908] sm:$0xf0] }
 0x18f   :  { %v6265_v40 = vor.u32 %v8514_v25, %v6262_v26  ;;  %v2472_v49 = vpop.f32.mrf.mxu3  ;;  %v8394_v26 = vld [vmem:[#allocation7 + $0xc4] sm:$0xf]  ;;  %v7060_v62 = vld [vmem:[#allocation10 + $0xe0] sm:$0xf] }
 0x190   :  { %2711 = vmatpush.bf16.msrb.mxu2 %v6501_v35  ;;  %v8604_v35 = vld [vmem:[#allocation7 + $0x754] sm:$0xf]  ;;  %v8554_v49 = vld [vmem:[#allocation7 + $0x5c4] sm:$0xf] }
 0x191   :  { %2724 = vmatpush.bf16.msrb.mxu3 %v6821_v36  ;;  %2687 = vmatpush.bf16.msrb.mxu0 %v5781_v41  ;;  %v8684_v36 = vld [vmem:[#allocation7 + $0x9d4] sm:$0xf]  ;;  %v6341_v41 = vor.u32 %v8539_v30, %v6340_v29  ;;  %v6625_v46 = vor.u32 %v8604_v35, %v6622_v37  ;;  %v8454_v59 = vld [vmem:[#allocation7 + $0x2a4] sm:$0xf] }
 0x192   :  { %2700 = vmatpush.bf16.msrb.mxu1 %v6101_v44  ;;  %v2459_v44 = vpop.f32.mrf.mxu2  ;;  %v6945_v50 = vor.u32 %v8684_v36, %v6942_v39  ;;  %v8564_v37 = vld [vmem:[#allocation7 + $0x614] sm:$0xf] }
 0x193   :  { %v8644_v39 = vld [vmem:[#allocation7 + $0x894] sm:$0xf] }
 0x194   :  { %2712 = vmatpush.bf16.msrb.mxu2 %v6461_v47  ;;  %v8504_v47 = vld [vmem:[#allocation7 + $0x434] sm:$0xf] }
 0x195   :  { %2725 = vmatpush.bf16.msrb.mxu3 %v6781_v52  ;;  %2688 = vmatpush.bf16.msrb.mxu0 %v5741_v56  ;;  %v8594_v52 = vld [vmem:[#allocation7 + $0x704] sm:$0xf]  ;;  %v6902_v56 = vld [vmem:[#allocation7 + $0x9a8] sm:$0xf0]  ;;  %v6225_v57 = vor.u32 %v8504_v47, %v6222_v48 }
 0x196   :  { %2701 = vmatpush.bf16.msrb.mxu1 %v6061_v60  ;;  %v6585_v60 = vor.u32 %v8594_v52, %v6582_v53  ;;  %v6905_v63 = vor.u32 %v8674_v55, %v6902_v56  ;;  %v5745_v53 = vor.u32 %v8384_v42, %v5742_v43  ;;  %v6742_v55 = vld [vmem:[#allocation7 + $0x868] sm:$0xf0]  ;;  %v8374_v56 = vld [vmem:[#allocation7 + $0x24] sm:$0xf] }
 0x197   :  { %v7156_v43 = vld [vmem:[#allocation10 + $0x1a0] sm:$0xf] }
 0x198   :  { %2713 = vmatpush.bf16.msrb.mxu2 %v6421_v1  ;;  %v8584_v1 = vld [vmem:[#allocation7 + $0x6b4] sm:$0xf] }
 0x199   :  { %2726 = vmatpush.bf16.msrb.mxu3 %v6741_v7  ;;  %2689 = vmatpush.bf16.msrb.mxu0 %v5701_v14  ;;  %v6862_v7 = vld [vmem:[#allocation7 + $0x958] sm:$0xf0]  ;;  %v6545_v12 = vor.u32 %v8584_v1, %v6542_v2  ;;  %v2483_v15 = vpop.f32.mrf.mxu0  ;;  %v7188_v1 = vld [vmem:[#allocation10 + $0x1e0] sm:$0xf] }
 0x19a   :  { %2702 = vmatpush.bf16.msrb.mxu1 %v6021_v17  ;;  %v6142_v14 = vld [vmem:[#allocation7 + $0x3b8] sm:$0xf0]  ;;  %v6865_v16 = vor.u32 %v8664_v6, %v6862_v7  ;;  %v8574_v17 = vld [vmem:[#allocation7 + $0x664] sm:$0xf]  ;;  %v2484_v20 = vadd.f32 %v2483_v15, %v650_v3  ;;  %v8544_v6 = vld [vmem:[#allocation7 + $0x574] sm:$0xf] }
 0x19b   :  { %v6145_v25 = vor.u32 %v8484_v13, %v6142_v14  ;;  %v6382_v7 = vld [vmem:[#allocation7 + $0x598] sm:$0xf0]  ;;  %v7044_v15 = vld [vmem:[#allocation10 + $0xc0] sm:$0xf] }
 0x19c   :  { %2714 = vmatpush.bf16.msrb.mxu2 %v6381_v23  ;;  %2690 = vmatmul.bf16.vlgmr.msrb.gmra.mxu0 %v9384_v0  ;;  %v2496_v51 = vpop.f32.mrf.mxu1  ;;  %v8654_v23 = vld [vmem:[#allocation7 + $0x8e4] sm:$0xf] }
 0x19d   :  { %2734 = vmatpush.bf16.msra.mxu0 %v5985_v19  ;;  %2727 = vmatpush.bf16.msrb.mxu3 %v6701_v28  ;;  %v6502_v19 = vld [vmem:[#allocation7 + $0x688] sm:$0xf0]  ;;  %v9443_v29 = vadd.f32 %v2496_v51, %v2484_v20  ;;  %v6825_v35 = vor.u32 %v8654_v23, %v6822_v24  ;;  %v8748_v51 = vld [vmem:[#allocation10 + $0x1cc] sm:$0xf0]  ;;  %v8534_v23 = vld [vmem:[#allocation7 + $0x524] sm:$0xf] }
 0x19e   :  { %2747 = vmatpush.bf16.msra.mxu1 %v6305_v22  ;;  %v5825_v22 = vor.u32 %v8404_v10, %v5822_v11  ;;  %v5782_v28 = vld [vmem:[#allocation7 + $0xe8] sm:$0xf0]  ;;  %v6505_v30 = vor.u32 %v8574_v17, %v6502_v19  ;;  %v5705_v10 = vor.u32 %v8374_v56, %v5702_v58  ;;  %v8624_v11 = vld [vmem:[#allocation7 + $0x7f4] sm:$0xf]  ;;  %v6385_v17 = vor.u32 %v8544_v6, %v6382_v7  ;;  %v8716_v19 = vld [vmem:[#allocation10 + $0xcc] sm:$0xf0] }
 0x19f   :  { %2703 = vmatmul.bf16.vlgmr.msrb.gmra.mxu1 %v9386_v5  ;;  %v5785_v36 = vor.u32 %v8394_v26, %v5782_v28  ;;  %v7172_v20 = vld [vmem:[#allocation10 + $0x1c0] sm:$0xf]  ;;  %v8736_v7 = vld [vmem:[#allocation10 + $0x16c] sm:$0xf0] }
 0x1a0   :  { %2715 = vmatpush.bf16.msrb.mxu2 %v6341_v41  ;;  %v6105_v41 = vor.u32 %v8474_v32, %v6102_v34  ;;  %v6342_v24 = vld [vmem:[#allocation7 + $0x548] sm:$0xf0]  ;;  %v7045_v32 = vor.u32 %v8716_v19, %v7044_v15  ;;  %v8700_v19 = vld [vmem:[#allocation10 + $0x4c] sm:$0xf0] }
 0x1a1   :  { %2735 = vmatpush.bf16.msra.mxu0 %v5945_v38  ;;  %2728 = vmatpush.bf16.msrb.mxu3 %v6661_v45  ;;  %v6462_v38 = vld [vmem:[#allocation7 + $0x638] sm:$0xf0]  ;;  %v8464_v45 = vld [vmem:[#allocation7 + $0x2f4] sm:$0xf]  ;;  %v2485_v47 = vpop.f32.mrf.mxu0  ;;  %v6662_v26 = vld [vmem:[#allocation7 + $0x7c8] sm:$0xf0] }
 0x1a2   :  { %2748 = vmatpush.bf16.msra.mxu1 %v6265_v40  ;;  %v6782_v40 = vld [vmem:[#allocation7 + $0x8b8] sm:$0xf0]  ;;  %v6465_v44 = vor.u32 %v8564_v37, %v6462_v38  ;;  %v7316_v28 = vld [vmem:[#allocation10 + $0x2e0] sm:$0xf]  ;;  %v7173_v37 = vor.u32 %v8748_v51, %v7172_v20  ;;  %v6345_v38 = vor.u32 %v8534_v23, %v6342_v24 }
 0x1a3   :  { %2716 = vmatmul.bf16.vlgmr.msrb.gmra.mxu2 %v9390_v27  ;;  %v6785_v48 = vor.u32 %v8644_v39, %v6782_v40  ;;  %v7444_v34 = vld [vmem:[#allocation10 + $0x3e0] sm:$0xf]  ;;  %v8712_v39 = vld [vmem:[#allocation10 + $0xac] sm:$0xf0] }
 0x1a4   :  { %2760 = vmatpush.bf16.msra.mxu2 %v6625_v46  ;;  %2729 = vmatmul.bf16.vlgmr.msrb.gmra.mxu3 %v9392_v33  ;;  %v6062_v46 = vld [vmem:[#allocation7 + $0x318] sm:$0xf0]  ;;  %v2498_v52 = vpop.f32.mrf.mxu1  ;;  %v7300_v47 = vld [vmem:[#allocation10 + $0x2c0] sm:$0xf] }
 0x1a5   :  { %2773 = vmatpush.bf16.msra.mxu3 %v6945_v50  ;;  %2736 = vmatpush.bf16.msra.mxu0 %v5905_v54  ;;  %v6422_v50 = vld [vmem:[#allocation7 + $0x5e8] sm:$0xf0]  ;;  %v8634_v54 = vld [vmem:[#allocation7 + $0x844] sm:$0xf]  ;;  %v8812_v52 = vld [vmem:[#allocation10 + $0x3cc] sm:$0xf0] }
 0x1a6   :  { %2749 = vmatpush.bf16.msra.mxu1 %v6225_v57  ;;  %v6065_v57 = vor.u32 %v8464_v45, %v6062_v46  ;;  %v6425_v61 = vor.u32 %v8554_v49, %v6422_v50  ;;  %v9445_v2 = vpop.f32.mrf.mxu2  ;;  %v6745_v3 = vor.u32 %v8634_v54, %v6742_v55  ;;  %v7428_v50 = vld [vmem:[#allocation10 + $0x3c0] sm:$0xf]  ;;  %v8708_v55 = vld [vmem:[#allocation10 + $0x8c] sm:$0xf0] }
 0x1a7   :  { %v7012_v54 = vld [vmem:[#allocation10 + $0x80] sm:$0xf]  ;;  %v7429_v58 = vor.u32 %v8812_v52, %v7428_v50  ;;  %v8724_v52 = vld [vmem:[#allocation10 + $0x10c] sm:$0xf0] }
 0x1a8   :  { %2761 = vmatpush.bf16.msra.mxu2 %v6585_v60  ;;  %v6022_v60 = vld [vmem:[#allocation7 + $0x2c8] sm:$0xf0] }
 0x1a9   :  { %2774 = vmatpush.bf16.msra.mxu3 %v6905_v63  ;;  %2737 = vmatpush.bf16.msra.mxu0 %v5865_v4  ;;  %v8720_v63 = vld [vmem:[#allocation10 + $0xec] sm:$0xf0]  ;;  %v6025_v13 = vor.u32 %v8454_v59, %v6022_v60  ;;  %v7140_v56 = vld [vmem:[#allocation10 + $0x180] sm:$0xf]  ;;  %v7013_v60 = vor.u32 %v8708_v55, %v7012_v54 }
 0x1aa   :  { %2750 = vmatpush.bf16.msra.mxu1 %v6185_v8  ;;  %v8752_v4 = vld [vmem:[#allocation10 + $0x1ec] sm:$0xf0]  ;;  %v9447_v8 = vpop.f32.mrf.mxu3  ;;  %v7061_v14 = vor.u32 %v8720_v63, %v7060_v62  ;;  %v7124_v6 = vld [vmem:[#allocation10 + $0x160] sm:$0xf] }
 0x1ab   :  { %v8776_v59 = vld [vmem:[#allocation10 + $0x2ac] sm:$0xf0]  ;;  %v7396_v15 = vld [vmem:[#allocation10 + $0x380] sm:$0xf] }
 0x1ac   :  { %2762 = vmatpush.bf16.msra.mxu2 %v6545_v12  ;;  %v6702_v12 = vld [vmem:[#allocation7 + $0x818] sm:$0xf0]  ;;  %v7108_v51 = vld [vmem:[#allocation10 + $0x140] sm:$0xf] }
 0x1ad   :  { %2775 = vmatpush.bf16.msra.mxu3 %v6865_v16  ;;  %2738 = vmatpush.bf16.msra.mxu0 %v5825_v22  ;;  %v7189_v16 = vor.u32 %v8752_v4, %v7188_v1  ;;  %v6705_v22 = vor.u32 %v8624_v11, %v6702_v12  ;;  %v8808_v62 = vld [vmem:[#allocation10 + $0x3ac] sm:$0xf0]  ;;  %v6996_v1 = vld [vmem:[#allocation10 + $0x60] sm:$0xf] }
 0x1ae   :  { %2751 = vmatpush.bf16.msra.mxu1 %v6145_v25  ;;  %v8614_v25 = vld [vmem:[#allocation7 + $0x7a4] sm:$0xf]  ;;  %v2511_v40 = vpop.f32.mrf.mxu2  ;;  %v7268_v12 = vld [vmem:[#allocation10 + $0x280] sm:$0xf]  ;;  %v8848_v55 = vld [vmem:[#allocation10 + $0x4ec] sm:$0xf0] }
 0x1af   :  { %v7252_v24 = vld [vmem:[#allocation10 + $0x260] sm:$0xf] }
 0x1b0   :  { %2763 = vmatpush.bf16.msra.mxu2 %v6505_v30  ;;  %v8784_v30 = vld [vmem:[#allocation10 + $0x2ec] sm:$0xf0]  ;;  %v7076_v50 = vld [vmem:[#allocation10 + $0x100] sm:$0xf] }
 0x1b1   :  { %2776 = vmatpush.bf16.msra.mxu3 %v6825_v35  ;;  %2739 = vmatpush.bf16.msra.mxu0 %v5785_v36  ;;  %v8816_v35 = vld [vmem:[#allocation10 + $0x3ec] sm:$0xf0]  ;;  %v7028_v36 = vld [vmem:[#allocation10 + $0xa0] sm:$0xf]  ;;  %v7317_v42 = vor.u32 %v8784_v30, %v7316_v28 }
 0x1b2   :  { %2752 = vmatpush.bf16.msra.mxu1 %v6105_v41  ;;  %v6665_v41 = vor.u32 %v8614_v25, %v6662_v26  ;;  %v2524_v45 = vpop.f32.mrf.mxu3  ;;  %v7445_v46 = vor.u32 %v8816_v35, %v7444_v34  ;;  %v7029_v49 = vor.u32 %v8712_v39, %v7028_v36  ;;  %v8768_v25 = vld [vmem:[#allocation10 + $0x26c] sm:$0xf0]  ;;  %v7380_v28 = vld [vmem:[#allocation10 + $0x360] sm:$0xf] }
 0x1b3   :  { %v8800_v30 = vld [vmem:[#allocation10 + $0x36c] sm:$0xf0]  ;;  %v6964_v34 = vld [vmem:[#allocation10 + $0x20] sm:$0xf] }
 0x1b4   :  { %2764 = vmatpush.bf16.msra.mxu2 %v6465_v44  ;;  %v8744_v44 = vld [vmem:[#allocation10 + $0x1ac] sm:$0xf0]  ;;  %v7381_v40 = vor.u32 %v8800_v30, %v7380_v28  ;;  %v7364_v45 = vld [vmem:[#allocation10 + $0x340] sm:$0xf] }
 0x1b5   :  { %2777 = vmatpush.bf16.msra.mxu3 %v6785_v48  ;;  %2740 = vmatpush.bf16.msra.mxu0 %v5745_v53  ;;  %v8780_v48 = vld [vmem:[#allocation10 + $0x2cc] sm:$0xf0]  ;;  %v7157_v53 = vor.u32 %v8744_v44, %v7156_v43  ;;  %v7572_v54 = vld [vmem:[#allocation10 + $0x4e0] sm:$0xf] }
 0x1b6   :  { %2753 = vmatpush.bf16.msra.mxu1 %v6065_v57  ;;  %v8740_v57 = vld [vmem:[#allocation10 + $0x18c] sm:$0xf0]  ;;  %v7540_v30 = vld [vmem:[#allocation10 + $0x4a0] sm:$0xf] }
 0x1b7   :  { %v7141_v63 = vor.u32 %v8740_v57, %v7140_v56  ;;  %v8696_v35 = vld [vmem:[#allocation10 + $0x2c] sm:$0xf0] }
 0x1b8   :  { %2765 = vmatpush.bf16.msra.mxu2 %v6425_v61  ;;  %v7412_v61 = vld [vmem:[#allocation10 + $0x3a0] sm:$0xf]  ;;  %v8728_v36 = vld [vmem:[#allocation10 + $0x12c] sm:$0xf0]  ;;  %v6965_v44 = vor.u32 %v8696_v35, %v6964_v34  ;;  %v2788_v34 = vmax.f32 %v9429_v31, 0.0 }
 0x1b9   :  { %2778 = vmatpush.bf16.msra.mxu3 %v6745_v3  ;;  %2741 = vmatpush.bf16.msra.mxu0 %v5705_v10  ;;  %v8704_v3 = vld [vmem:[#allocation10 + $0x6c] sm:$0xf0]  ;;  %v9453_v10 = vpop.f32.mrf.mxu0  ;;  %v7413_v11 = vor.u32 %v8808_v62, %v7412_v61  ;;  %v7348_v62 = vld [vmem:[#allocation10 + $0x320] sm:$0xf] }
 0x1ba   :  { %2754 = vmatpush.bf16.msra.mxu1 %v6025_v13  ;;  %v8940_v31 = vld [vmem:[#allocation10 + $0x7cc] sm:$0xf0] }
 0x1bc   :  { %2766 = vmatpush.bf16.msra.mxu2 %v6385_v17  ;;  %2742 = vmatmul.bf16.vlgmr.msra.gmra.mxu0 %v9384_v0  ;;  %v7301_v0 = vor.u32 %v8780_v48, %v7300_v47  ;;  %v9455_v13 = vpop.f32.mrf.mxu1  ;;  %v6980_v17 = vld [vmem:[#allocation10 + $0x40] sm:$0xf] }
 0x1bd   :  { %4736 = vmatpush.bf16.msrb.mxu0 %v7061_v14  ;;  %2779 = vmatpush.bf16.msra.mxu3 %v6705_v22  ;;  %v6997_v14 = vor.u32 %v8704_v3, %v6996_v1  ;;  %v8732_v22 = vld [vmem:[#allocation10 + $0x14c] sm:$0xf0]  ;;  %v6981_v26 = vor.u32 %v8700_v19, %v6980_v17  ;;  %v6948_v47 = vld [vmem:[#allocation10] sm:$0xf]  ;;  %v2786_v1 = vmax.f32 %v9420_v9, 0.0  ;;  %v2787_v3 = vmax.f32 %v9427_v18, 0.0 }
 0x1be   :  { %4749 = vmatpush.bf16.msrb.mxu1 %v7189_v16  ;;  %v7125_v16 = vor.u32 %v8736_v7, %v7124_v6  ;;  %v7573_v6 = vor.u32 %v8848_v55, %v7572_v54  ;;  %v7556_v7 = vld [vmem:[#allocation10 + $0x4c0] sm:$0xf]  ;;  %v8756_v17 = vld [vmem:[#allocation10 + $0x20c] sm:$0xf0]  ;;  %v9475_v55 = vld [vmem:[#allocation8] sm:$0xff] }
 0x1bf   :  { %2755 = vmatmul.bf16.vlgmr.msra.gmra.mxu1 %v9386_v5  ;;  %v7284_v5 = vld [vmem:[#allocation10 + $0x2a0] sm:$0xf]  ;;  %v9463_v18 = vpack.c.bf16 %v2786_v1, %v2786_v1 }
 0x1c0   :  { %2767 = vmatpush.bf16.msra.mxu2 %v6345_v38  ;;  %v7285_v4 = vor.u32 %v8776_v59, %v7284_v5  ;;  %v7092_v38 = vld [vmem:[#allocation10 + $0x120] sm:$0xf]  ;;  %v8760_v59 = vld [vmem:[#allocation10 + $0x22c] sm:$0xf0] }
 0x1c1   :  { %4737 = vmatpush.bf16.msrb.mxu0 %v7045_v32  ;;  %2780 = vmatpush.bf16.msra.mxu3 %v6665_v41  ;;  %v7109_v32 = vor.u32 %v8732_v22, %v7108_v51  ;;  %v2537_v39 = vpop.f32.mrf.mxu0  ;;  %v7236_v41 = vld [vmem:[#allocation10 + $0x240] sm:$0xf]  ;;  %v7093_v48 = vor.u32 %v8728_v36, %v7092_v38  ;;  %v8912_v51 = vld [vmem:[#allocation10 + $0x6ec] sm:$0xf0] }
 0x1c2   :  { %4750 = vmatpush.bf16.msrb.mxu1 %v7173_v37  ;;  %v7253_v37 = vor.u32 %v8768_v25, %v7252_v24  ;;  %v7220_v5 = vld [vmem:[#allocation10 + $0x220] sm:$0xf]  ;;  %v8944_v24 = vld [vmem:[#allocation10 + $0x7ec] sm:$0xf0]  ;;  %v9465_v25 = vpack.c.bf16 %v2787_v3, %v2787_v3 }
 0x1c3   :  { %2768 = vmatmul.bf16.vlgmr.msra.gmra.mxu2 %v9390_v27  ;;  %v8772_v27 = vld [vmem:[#allocation10 + $0x28c] sm:$0xf0]  ;;  %v7332_v19 = vld [vmem:[#allocation10 + $0x300] sm:$0xf] }
 0x1c4   :  { %4762 = vmatpush.bf16.msrb.mxu2 %v7317_v42  ;;  %2781 = vmatmul.bf16.vlgmr.msra.gmra.mxu3 %v9392_v33  ;;  %v8804_v33 = vld [vmem:[#allocation10 + $0x38c] sm:$0xf0]  ;;  %v7269_v20 = vor.u32 %v8772_v27, %v7268_v12  ;;  %v2550_v43 = vpop.f32.mrf.mxu1  ;;  %v7221_v12 = vor.u32 %v8760_v59, %v7220_v5  ;;  %v7828_v9 = vld [vmem:[#allocation10 + $0x6e0] sm:$0xf] }
 0x1c5   :  { %4775 = vmatpush.bf16.msrb.mxu3 %v7445_v46  ;;  %4738 = vmatpush.bf16.msrb.mxu0 %v7029_v49  ;;  %v7397_v23 = vor.u32 %v8804_v33, %v7396_v15  ;;  %v8764_v42 = vld [vmem:[#allocation10 + $0x24c] sm:$0xf0]  ;;  %v7829_v38 = vor.u32 %v8912_v51, %v7828_v9  ;;  %v7668_v36 = vld [vmem:[#allocation10 + $0x5a0] sm:$0xf] }
 0x1c6   :  { %4751 = vmatpush.bf16.msrb.mxu1 %v7157_v53  ;;  %v8796_v46 = vld [vmem:[#allocation10 + $0x34c] sm:$0xf0]  ;;  %v7237_v53 = vor.u32 %v8764_v42, %v7236_v41  ;;  %v9457_v56 = vpop.f32.mrf.mxu2  ;;  %v7812_v43 = vld [vmem:[#allocation10 + $0x6c0] sm:$0xf] }
 0x1c7   :  { %v8692_v49 = vld [vmem:[#allocation10 + $0xc] sm:$0xf0]  ;;  %v7365_v57 = vor.u32 %v8796_v46, %v7364_v45  ;;  %v7940_v46 = vld [vmem:[#allocation10 + $0x7c0] sm:$0xf] }
 0x1c8   :  { %4763 = vmatpush.bf16.msrb.mxu2 %v7301_v0  ;;  %v7700_v0 = vld [vmem:[#allocation10 + $0x5e0] sm:$0xf]  ;;  %v6949_v61 = vor.u32 %v8692_v49, %v6948_v47  ;;  %v8844_v27 = vld [vmem:[#allocation10 + $0x4cc] sm:$0xf0] }
 0x1c9   :  { %4776 = vmatpush.bf16.msrb.mxu3 %v7429_v58  ;;  %4739 = vmatpush.bf16.msrb.mxu0 %v7013_v60  ;;  %v8880_v58 = vld [vmem:[#allocation10 + $0x5ec] sm:$0xf0]  ;;  %v9459_v60 = vpop.f32.mrf.mxu3  ;;  %v7557_v22 = vor.u32 %v8844_v27, %v7556_v7  ;;  %v7508_v1 = vld [vmem:[#allocation10 + $0x460] sm:$0xf] }
 0x1ca   :  { %4752 = vmatpush.bf16.msrb.mxu1 %v7141_v63  ;;  %v8792_v63 = vld [vmem:[#allocation10 + $0x32c] sm:$0xf0]  ;;  %v7492_v9 = vld [vmem:[#allocation10 + $0x440] sm:$0xf] }
 0x1cb   :  { %v8876_v15 = vld [vmem:[#allocation10 + $0x5cc] sm:$0xf0]  ;;  %v7349_v33 = vor.u32 %v8792_v63, %v7348_v62 }
 0x1cc   :  { %4764 = vmatpush.bf16.msrb.mxu2 %v7285_v4  ;;  %v7077_v4 = vor.u32 %v8724_v52, %v7076_v50  ;;  %v8872_v39 = vld [vmem:[#allocation10 + $0x5ac] sm:$0xf0]  ;;  %v9471_v50 = vpack.c.bf16 %v2788_v34, %v2788_v34  ;;  %v7652_v52 = vld [vmem:[#allocation10 + $0x580] sm:$0xf] }
 0x1cd   :  { %4777 = vmatpush.bf16.msrb.mxu3 %v7413_v11  ;;  %4740 = vmatpush.bf16.msrb.mxu0 %v6997_v14  ;;  %v7701_v11 = vor.u32 %v8880_v58, %v7700_v0  ;;  %v7684_v14 = vld [vmem:[#allocation10 + $0x5c0] sm:$0xf]  ;;  %v7669_v47 = vor.u32 %v8872_v39, %v7668_v36  ;;  %v8836_v49 = vld [vmem:[#allocation10 + $0x48c] sm:$0xf0]  ;;  %v651_v0 = vperm.slane %v9475_v55, 5 }
 0x1ce   :  { %4753 = vmatpush.bf16.msrb.mxu1 %v7125_v16  ;;  %v7204_v16 = vld [vmem:[#allocation10 + $0x200] sm:$0xf]  ;;  %v2563_v35 = vpop.f32.mrf.mxu2  ;;  %v8904_v5 = vld [vmem:[#allocation10 + $0x6ac] sm:$0xf0] }
 0x1cf   :  { %v7205_v28 = vor.u32 %v8756_v17, %v7204_v16  ;;  %v7796_v58 = vld [vmem:[#allocation10 + $0x6a0] sm:$0xf]  ;;  %v8936_v62 = vld [vmem:[#allocation10 + $0x7ac] sm:$0xf0] }
 0x1d0   :  { %4765 = vmatpush.bf16.msrb.mxu2 %v7269_v20  ;;  %v8788_v20 = vld [vmem:[#allocation10 + $0x30c] sm:$0xf0]  ;;  %v7908_v17 = vld [vmem:[#allocation10 + $0x780] sm:$0xf] }
 0x1d1   :  { %4778 = vmatpush.bf16.msrb.mxu3 %v7397_v23  ;;  %4741 = vmatpush.bf16.msrb.mxu0 %v6981_v26  ;;  %v7956_v23 = vld [vmem:[#allocation10 + $0x7e0] sm:$0xf]  ;;  %v7685_v26 = vor.u32 %v8876_v15, %v7684_v14  ;;  %v2576_v41 = vpop.f32.mrf.mxu3  ;;  %v8832_v3 = vld [vmem:[#allocation10 + $0x46c] sm:$0xf0] }
 0x1d2   :  { %4754 = vmatpush.bf16.msrb.mxu1 %v7109_v32  ;;  %v8840_v32 = vld [vmem:[#allocation10 + $0x4ac] sm:$0xf0]  ;;  %v7957_v42 = vor.u32 %v8944_v24, %v7956_v23  ;;  %v7780_v14 = vld [vmem:[#allocation10 + $0x680] sm:$0xf]  ;;  %v7509_v16 = vor.u32 %v8832_v3, %v7508_v1 }
 0x1d3   :  { %v7541_v45 = vor.u32 %v8840_v32, %v7540_v30  ;;  %v8864_v7 = vld [vmem:[#allocation10 + $0x56c] sm:$0xf0]  ;;  %v7620_v24 = vld [vmem:[#allocation10 + $0x540] sm:$0xf] }
 0x1d4   :  { %4766 = vmatpush.bf16.msrb.mxu2 %v7253_v37  ;;  %v7333_v37 = vor.u32 %v8788_v20, %v7332_v19  ;;  %v8900_v15 = vld [vmem:[#allocation10 + $0x68c] sm:$0xf0]  ;;  %v7764_v30 = vld [vmem:[#allocation10 + $0x660] sm:$0xf] }
 0x1d5   :  { %4779 = vmatpush.bf16.msrb.mxu3 %v7381_v40  ;;  %4742 = vmatpush.bf16.msrb.mxu0 %v6965_v44  ;;  %v2789_v40 = vmax.f32 %v9436_v21, 0.0  ;;  %v8908_v44 = vld [vmem:[#allocation10 + $0x6cc] sm:$0xf0]  ;;  %v7781_v23 = vor.u32 %v8900_v15, %v7780_v14  ;;  %v7892_v35 = vld [vmem:[#allocation10 + $0x760] sm:$0xf] }
 0x1d6   :  { %4755 = vmatpush.bf16.msrb.mxu1 %v7093_v48  ;;  %v7524_v48 = vld [vmem:[#allocation10 + $0x480] sm:$0xf]  ;;  %v7813_v21 = vor.u32 %v8908_v44, %v7812_v43  ;;  %v8932_v19 = vld [vmem:[#allocation10 + $0x78c] sm:$0xf0] }
 0x1d7   :  { %v9473_v54 = vpack.c.bf16 %v2789_v40, %v2789_v40  ;;  %v7525_v59 = vor.u32 %v8836_v49, %v7524_v48  ;;  %v8828_v51 = vld [vmem:[#allocation10 + $0x44c] sm:$0xf0]  ;;  %v7476_v40 = vld [vmem:[#allocation10 + $0x420] sm:$0xf] }
 0x1d8   :  { %4767 = vmatpush.bf16.msrb.mxu2 %v7237_v53  ;;  %v8868_v53 = vld [vmem:[#allocation10 + $0x58c] sm:$0xf0]  ;;  %v7493_v34 = vor.u32 %v8828_v51, %v7492_v9  ;;  %v7604_v43 = vld [vmem:[#allocation10 + $0x520] sm:$0xf] }
 0x1d9   :  { %4780 = vmatpush.bf16.msrb.mxu3 %v7365_v57  ;;  %4743 = vmatpush.bf16.msrb.mxu0 %v6949_v61  ;;  %v7941_v57 = vor.u32 %v8940_v31, %v7940_v46  ;;  %v7924_v61 = vld [vmem:[#allocation10 + $0x7a0] sm:$0xf]  ;;  %v7653_v63 = vor.u32 %v8868_v53, %v7652_v52  ;;  %v8896_v32 = vld [vmem:[#allocation10 + $0x66c] sm:$0xf0] }
 0x1da   :  { %4756 = vmatpush.bf16.msrb.mxu1 %v7077_v4  ;;  %v7797_v4 = vor.u32 %v8904_v5, %v7796_v58  ;;  %v7925_v27 = vor.u32 %v8936_v62, %v7924_v61  ;;  %v8824_v41 = vld [vmem:[#allocation10 + $0x42c] sm:$0xf0]  ;;  %v7748_v31 = vld [vmem:[#allocation10 + $0x640] sm:$0xf] }
 0x1db   :  { %v8856_v44 = vld [vmem:[#allocation10 + $0x52c] sm:$0xf0]  ;;  %v7477_v49 = vor.u32 %v8824_v41, %v7476_v40  ;;  %v7460_v53 = vld [vmem:[#allocation10 + $0x400] sm:$0xf] }
 0x1dc   :  { %4768 = vmatpush.bf16.msrb.mxu2 %v7221_v12  ;;  %4744 = vmatmul.bf16.vlgmr.msrb.gmra.mxu0 %v9463_v18  ;;  %v2587_v12 = vpop.f32.mrf.mxu0  ;;  %v7605_v52 = vor.u32 %v8856_v44, %v7604_v43  ;;  %v8084_v61 = vld [vmem:[#allocation10 + $0x8e0] sm:$0xf]  ;;  %v8976_v62 = vld [vmem:[#allocation10 + $0x8ec] sm:$0xf0] }
 0x1dd   :  { %4788 = vmatpush.bf16.msra.mxu0 %v7573_v6  ;;  %4781 = vmatpush.bf16.msrb.mxu3 %v7349_v33  ;;  %v7636_v6 = vld [vmem:[#allocation10 + $0x560] sm:$0xf]  ;;  %v2600_v33 = vpop.f32.mrf.mxu1  ;;  %v8085_v15 = vor.u32 %v8976_v62, %v8084_v61  ;;  %v8968_v40 = vld [vmem:[#allocation10 + $0x8ac] sm:$0xf0]  ;;  %v7030_v61 = vld [vmem:[#allocation10 + $0xb0] sm:$0xf0] }
 0x1de   :  { %4801 = vmatpush.bf16.msra.mxu1 %v7701_v11  ;;  %v2536_v11 = vadd.f32 %v9453_v10, %v651_v0  ;;  %v7637_v20 = vor.u32 %v8864_v7, %v7636_v6  ;;  %v8860_v10 = vld [vmem:[#allocation10 + $0x54c] sm:$0xf0]  ;;  %v7732_v3 = vld [vmem:[#allocation10 + $0x620] sm:$0xf] }
 0x1df   :  { %4757 = vmatmul.bf16.vlgmr.msrb.gmra.mxu1 %v9465_v25  ;;  %v7621_v39 = vor.u32 %v8860_v10, %v7620_v24  ;;  %v8820_v0 = vld [vmem:[#allocation10 + $0x40c] sm:$0xf0]  ;;  %v7860_v7 = vld [vmem:[#allocation10 + $0x720] sm:$0xf] }
 0x1e0   :  { %4769 = vmatpush.bf16.msrb.mxu2 %v7205_v28  ;;  %v7909_v28 = vor.u32 %v8932_v19, %v7908_v17  ;;  %v8884_v17 = vld [vmem:[#allocation10 + $0x60c] sm:$0xf0]  ;;  %v8068_v19 = vld [vmem:[#allocation10 + $0x8c0] sm:$0xf] }
 0x1e1   :  { %4789 = vmatpush.bf16.msra.mxu0 %v7557_v22  ;;  %4782 = vmatpush.bf16.msrb.mxu3 %v7333_v37  ;;  %v652_v22 = vperm.slane %v9475_v55, 6  ;;  %v8928_v37 = vld [vmem:[#allocation10 + $0x76c] sm:$0xf0]  ;;  %v8196_v44 = vld [vmem:[#allocation10 + $0x9c0] sm:$0xf] }
 0x1e2   :  { %4802 = vmatpush.bf16.msra.mxu1 %v7685_v26  ;;  %v2549_v26 = vadd.f32 %v9455_v13, %v2536_v11  ;;  %v7765_v13 = vor.u32 %v8896_v32, %v7764_v30  ;;  %v7893_v46 = vor.u32 %v8928_v37, %v7892_v35  ;;  %v8920_v11 = vld [vmem:[#allocation10 + $0x72c] sm:$0xf0]  ;;  %v7190_v35 = vld [vmem:[#allocation10 + $0x1f0] sm:$0xf0] }
 0x1e3   :  { %4770 = vmatmul.bf16.vlgmr.msrb.gmra.mxu2 %v9471_v50  ;;  %v7861_v51 = vor.u32 %v8920_v11, %v7860_v7  ;;  %v9008_v24 = vld [vmem:[#allocation10 + $0x9ec] sm:$0xf0] }
 0x1e4   :  { %4814 = vmatpush.bf16.msra.mxu2 %v7829_v38  ;;  %4783 = vmatmul.bf16.vlgmr.msrb.gmra.mxu3 %v9473_v54  ;;  %v2510_v38 = vadd.f32 %v9445_v2, %v9443_v29  ;;  %v2562_v36 = vadd.f32 %v9457_v56, %v2549_v26  ;;  %v7876_v29 = vld [vmem:[#allocation10 + $0x740] sm:$0xf]  ;;  %v8924_v2 = vld [vmem:[#allocation10 + $0x74c] sm:$0xf0]  ;;  %v8718_v26 = vld [vmem:[#allocation10 + $0xe4] sm:$0xf] }
 0x1e5   :  { %4827 = vmatpush.bf16.msra.mxu3 %v7957_v42  ;;  %4790 = vmatpush.bf16.msra.mxu0 %v7541_v45  ;;  %v2588_v42 = vadd.f32 %v2587_v12, %v652_v22  ;;  %v2589_v45 = vpop.f32.mrf.mxu0  ;;  %v2602_v48 = vpop.f32.mrf.mxu1  ;;  %v7877_v1 = vor.u32 %v8924_v2, %v7876_v29  ;;  %v7844_v22 = vld [vmem:[#allocation10 + $0x700] sm:$0xf]  ;;  %v8916_v10 = vld [vmem:[#allocation10 + $0x70c] sm:$0xf0]  ;;  %v7174_v29 = vld [vmem:[#allocation10 + $0x1d0] sm:$0xf0] }
 0x1e6   :  { %4803 = vmatpush.bf16.msra.mxu1 %v7669_v47  ;;  %v8892_v47 = vld [vmem:[#allocation10 + $0x64c] sm:$0xf0]  ;;  %v2523_v56 = vadd.f32 %v9447_v8, %v2510_v38 }
 0x1e7   :  { %v2601_v58 = vadd.f32 %v2600_v33, %v2588_v42  ;;  %v7749_v5 = vor.u32 %v8892_v47, %v7748_v31  ;;  %v2626_v8 = vpop.f32.mrf.mxu3  ;;  %v7716_v33 = vld [vmem:[#allocation10 + $0x600] sm:$0xf]  ;;  %v8714_v31 = vld [vmem:[#allocation10 + $0xc4] sm:$0xf]  ;;  %v7046_v47 = vld [vmem:[#allocation10 + $0xd0] sm:$0xf0] }
 0x1e8   :  { %4815 = vmatpush.bf16.msra.mxu2 %v7813_v21  ;;  %v2575_v21 = vadd.f32 %v9459_v60, %v2562_v36  ;;  %v7461_v60 = vor.u32 %v8820_v0, %v7460_v53  ;;  %v2790_v12 = vmax.f32 %v2523_v56, 0.0  ;;  %v7717_v36 = vor.u32 %v8884_v17, %v7716_v33  ;;  %v9004_v48 = vld [vmem:[#allocation10 + $0x9cc] sm:$0xf0]  ;;  %v7142_v17 = vld [vmem:[#allocation10 + $0x190] sm:$0xf0] }
 0x1e9   :  { %4828 = vmatpush.bf16.msra.mxu3 %v7941_v57  ;;  %4791 = vmatpush.bf16.msra.mxu0 %v7525_v59  ;;  %v7588_v57 = vld [vmem:[#allocation10 + $0x500] sm:$0xf]  ;;  %v8852_v59 = vld [vmem:[#allocation10 + $0x50c] sm:$0xf0]  ;;  %v8197_v56 = vor.u32 %v9004_v48, %v8196_v44  ;;  %v7049_v0 = vor.u32 %v8714_v31, %v7046_v47  ;;  %v8698_v44 = vld [vmem:[#allocation10 + $0x44] sm:$0xf] }
 0x1ea   :  { %4804 = vmatpush.bf16.msra.mxu1 %v7653_v63  ;;  %v2613_v63 = vpop.f32.mrf.mxu2  ;;  %v7589_v14 = vor.u32 %v8852_v59, %v7588_v57  ;;  %v9488_v32 = vpack.c.bf16 %v2790_v12, %v2790_v12  ;;  %v8180_v57 = vld [vmem:[#allocation10 + $0x9a0] sm:$0xf]  ;;  %v8710_v59 = vld [vmem:[#allocation10 + $0xa4] sm:$0xf]  ;;  %v8996_v7 = vld [vmem:[#allocation10 + $0x98c] sm:$0xf0] }
 0x1eb   :  { %v2614_v6 = vadd.f32 %v2613_v63, %v2601_v58  ;;  %v9000_v58 = vld [vmem:[#allocation10 + $0x9ac] sm:$0xf0]  ;;  %v8742_v63 = vld [vmem:[#allocation10 + $0x1a4] sm:$0xf]  ;;  %v7110_v48 = vld [vmem:[#allocation10 + $0x150] sm:$0xf0] }
 0x1ec   :  { %4816 = vmatpush.bf16.msra.mxu2 %v7797_v4  ;;  %v8888_v4 = vld [vmem:[#allocation10 + $0x62c] sm:$0xf0]  ;;  %v8181_v62 = vor.u32 %v9000_v58, %v8180_v57  ;;  %v8730_v47 = vld [vmem:[#allocation10 + $0x144] sm:$0xf]  ;;  %v8116_v57 = vld [vmem:[#allocation10 + $0x920] sm:$0xf] }
 0x1ed   :  { %4829 = vmatpush.bf16.msra.mxu3 %v7925_v27  ;;  %4792 = vmatpush.bf16.msra.mxu0 %v7509_v16  ;;  %v2791_v27 = vmax.f32 %v2575_v21, 0.0  ;;  %v7733_v16 = vor.u32 %v8888_v4, %v7732_v3  ;;  %v2627_v9 = vadd.f32 %v2626_v8, %v2614_v6  ;;  %v8036_v21 = vld [vmem:[#allocation10 + $0x880] sm:$0xf]  ;;  %v8960_v6 = vld [vmem:[#allocation10 + $0x86c] sm:$0xf0]  ;;  %v7033_v8 = vor.u32 %v8710_v59, %v7030_v61 }
 0x1ee   :  { %4805 = vmatpush.bf16.msra.mxu1 %v7637_v20  ;;  %v8972_v20 = vld [vmem:[#allocation10 + $0x8cc] sm:$0xf0]  ;;  %v8020_v4 = vld [vmem:[#allocation10 + $0x860] sm:$0xf]  ;;  %v7113_v59 = vor.u32 %v8730_v47, %v7110_v48  ;;  %v8694_v61 = vld [vmem:[#allocation10 + $0x24] sm:$0xf] }
 0x1ef   :  { %v8069_v37 = vor.u32 %v8972_v20, %v8068_v19  ;;  %v9490_v38 = vpack.c.bf16 %v2791_v27, %v2791_v27  ;;  %v2792_v41 = vmax.f32 %v2627_v9, 0.0  ;;  %v2628_v45 = vpop.f32.mrf.mxu3  ;;  %v8706_v27 = vld [vmem:[#allocation10 + $0x84] sm:$0xf]  ;;  %v8021_v19 = vor.u32 %v8960_v6, %v8020_v4  ;;  %v8004_v20 = vld [vmem:[#allocation10 + $0x840] sm:$0xf] }
 0x1f0   :  { %4817 = vmatpush.bf16.msra.mxu2 %v7781_v23  ;;  %v8212_v23 = vld [vmem:[#allocation10 + $0x9e0] sm:$0xf]  ;;  %v8956_v9 = vld [vmem:[#allocation10 + $0x84c] sm:$0xf0]  ;;  %v6982_v45 = vld [vmem:[#allocation10 + $0x50] sm:$0xf0] }
 0x1f1   :  { %4830 = vmatpush.bf16.msra.mxu3 %v7909_v28  ;;  %4793 = vmatpush.bf16.msra.mxu0 %v7493_v34  ;;  %v7062_v28 = vld [vmem:[#allocation10 + $0xf0] sm:$0xf0]  ;;  %v8213_v30 = vor.u32 %v9008_v24, %v8212_v23  ;;  %v8750_v34 = vld [vmem:[#allocation10 + $0x1e4] sm:$0xf]  ;;  %v9494_v53 = vpack.c.bf16 %v2792_v41, %v2792_v41  ;;  %v8148_v23 = vld [vmem:[#allocation10 + $0x960] sm:$0xf] }
 0x1f2   :  { %4806 = vmatpush.bf16.msra.mxu1 %v7621_v39  ;;  %v8052_v39 = vld [vmem:[#allocation10 + $0x8a0] sm:$0xf]  ;;  %v2615_v42 = vpop.f32.mrf.mxu2  ;;  %v7065_v43 = vor.u32 %v8718_v26, %v7062_v28  ;;  %v8992_v24 = vld [vmem:[#allocation10 + $0x96c] sm:$0xf0]  ;;  %v8702_v26 = vld [vmem:[#allocation10 + $0x64] sm:$0xf] }
 0x1f3   :  { %v8053_v2 = vor.u32 %v8968_v40, %v8052_v39  ;;  %v6998_v28 = vld [vmem:[#allocation10 + $0x70] sm:$0xf0]  ;;  %v8952_v39 = vld [vmem:[#allocation10 + $0x82c] sm:$0xf0]  ;;  %v8726_v4 = vld [vmem:[#allocation10 + $0x124] sm:$0xf] }
 0x1f4   :  { %4818 = vmatpush.bf16.msra.mxu2 %v7765_v13  ;;  %v7845_v13 = vor.u32 %v8916_v10, %v7844_v22  ;;  %v7001_v41 = vor.u32 %v8702_v26, %v6998_v28  ;;  %v8988_v42 = vld [vmem:[#allocation10 + $0x94c] sm:$0xf0]  ;;  %v7094_v6 = vld [vmem:[#allocation10 + $0x130] sm:$0xf0]  ;;  %v8878_v26 = vld [vmem:[#allocation10 + $0x5e4] sm:$0xf] }
 0x1f5   :  { %4831 = vmatpush.bf16.msra.mxu3 %v7893_v46  ;;  %4794 = vmatpush.bf16.msra.mxu0 %v7477_v49  ;;  %v7193_v46 = vor.u32 %v8750_v34, %v7190_v35  ;;  %v8746_v49 = vld [vmem:[#allocation10 + $0x1c4] sm:$0xf]  ;;  %v7126_v35 = vld [vmem:[#allocation10 + $0x170] sm:$0xf0]  ;;  %v8984_v58 = vld [vmem:[#allocation10 + $0x92c] sm:$0xf0] }
 0x1f6   :  { %4807 = vmatpush.bf16.msra.mxu1 %v7605_v52  ;;  %v8964_v52 = vld [vmem:[#allocation10 + $0x88c] sm:$0xf0]  ;;  %v8734_v34 = vld [vmem:[#allocation10 + $0x164] sm:$0xf]  ;;  %v7702_v28 = vld [vmem:[#allocation10 + $0x5f0] sm:$0xf0] }
 0x1f7   :  { %v8037_v3 = vor.u32 %v8964_v52, %v8036_v21  ;;  %v6985_v52 = vor.u32 %v8698_v44, %v6982_v45  ;;  %v7558_v44 = vld [vmem:[#allocation10 + $0x4d0] sm:$0xf0]  ;;  %v8810_v45 = vld [vmem:[#allocation10 + $0x3c4] sm:$0xf] }
 0x1f8   :  { %4819 = vmatpush.bf16.msra.mxu2 %v7749_v5  ;;  %v7177_v5 = vor.u32 %v8746_v49, %v7174_v29  ;;  %v7972_v29 = vld [vmem:[#allocation10 + $0x800] sm:$0xf]  ;;  %v7686_v47 = vld [vmem:[#allocation10 + $0x5d0] sm:$0xf0] }
 0x1f9   :  { %4832 = vmatpush.bf16.msra.mxu3 %v7877_v1  ;;  %4795 = vmatpush.bf16.msra.mxu0 %v7461_v60  ;;  %v7158_v1 = vld [vmem:[#allocation10 + $0x1b0] sm:$0xf0]  ;;  %v8164_v60 = vld [vmem:[#allocation10 + $0x980] sm:$0xf]  ;;  %v2639_v11 = vpop.f32.mrf.mxu0 }
 0x1fa   :  { %4808 = vmatpush.bf16.msra.mxu1 %v7589_v14  ;;  %v7161_v12 = vor.u32 %v8742_v63, %v7158_v1  ;;  %v7014_v14 = vld [vmem:[#allocation10 + $0x90] sm:$0xf0]  ;;  %v8117_v63 = vor.u32 %v8984_v58, %v8116_v57  ;;  %v8838_v57 = vld [vmem:[#allocation10 + $0x4a4] sm:$0xf] }
 0x1fb   :  { %v7017_v22 = vor.u32 %v8706_v27, %v7014_v14  ;;  %v7542_v58 = vld [vmem:[#allocation10 + $0x4b0] sm:$0xf0] }
 0x1fc   :  { %4820 = vmatpush.bf16.msra.mxu2 %v7733_v16  ;;  %4796 = vmatmul.bf16.vlgmr.msra.gmra.mxu0 %v9488_v32  ;;  %v2652_v33 = vpop.f32.mrf.mxu1  ;;  %v8738_v16 = vld [vmem:[#allocation10 + $0x184] sm:$0xf] }
 0x1fd   :  { %4840 = vmatpush.bf16.msrb.mxu0 %v8085_v15  ;;  %4833 = vmatpush.bf16.msra.mxu3 %v7861_v51  ;;  %v8165_v15 = vor.u32 %v8996_v7, %v8164_v60  ;;  %v653_v51 = vperm.slane %v9475_v55, 7  ;;  %v7145_v10 = vor.u32 %v8738_v16, %v7142_v17  ;;  %v8132_v55 = vld [vmem:[#allocation10 + $0x940] sm:$0xf]  ;;  %v8690_v7 = vld [vmem:[#allocation10 + $0x4] sm:$0xf] }
 0x1fe   :  { %4853 = vmatpush.bf16.msrb.mxu1 %v8213_v30  ;;  %v8149_v30 = vor.u32 %v8992_v24, %v8148_v23  ;;  %v8100_v16 = vld [vmem:[#allocation10 + $0x900] sm:$0xf]  ;;  %v8980_v17 = vld [vmem:[#allocation10 + $0x90c] sm:$0xf0]  ;;  %v7574_v24 = vld [vmem:[#allocation10 + $0x4f0] sm:$0xf0] }
 0x1ff   :  { %4809 = vmatmul.bf16.vlgmr.msra.gmra.mxu1 %v9490_v38  ;;  %v2640_v40 = vadd.f32 %v2639_v11, %v653_v51  ;;  %v6950_v11 = vld [vmem:[#allocation10 + $0x10] sm:$0xf0]  ;;  %v8101_v51 = vor.u32 %v8980_v17, %v8100_v16  ;;  %v8762_v17 = vld [vmem:[#allocation10 + $0x244] sm:$0xf] }
 0x200   :  { %4821 = vmatpush.bf16.msra.mxu2 %v7717_v36  ;;  %v7988_v36 = vld [vmem:[#allocation10 + $0x820] sm:$0xf] }
 0x201   :  { %4841 = vmatpush.bf16.msrb.mxu0 %v8069_v37  ;;  %4834 = vmatpush.bf16.msra.mxu3 %v7845_v13  ;;  %v8005_v37 = vor.u32 %v8956_v9, %v8004_v20  ;;  %v2641_v13 = vpop.f32.mrf.mxu0  ;;  %v7989_v49 = vor.u32 %v8952_v39, %v7988_v36  ;;  %v2653_v21 = vadd.f32 %v2652_v33, %v2640_v40  ;;  %v7302_v33 = vld [vmem:[#allocation10 + $0x2d0] sm:$0xf0]  ;;  %v8846_v9 = vld [vmem:[#allocation10 + $0x4e4] sm:$0xf] }
 0x202   :  { %4854 = vmatpush.bf16.msrb.mxu1 %v8197_v56  ;;  %v8782_v56 = vld [vmem:[#allocation10 + $0x2e4] sm:$0xf]  ;;  %v7078_v20 = vld [vmem:[#allocation10 + $0x110] sm:$0xf0] }
 0x203   :  { %4822 = vmatmul.bf16.vlgmr.msra.gmra.mxu2 %v9494_v53  ;;  %v8774_v36 = vld [vmem:[#allocation10 + $0x2a4] sm:$0xf]  ;;  %v7286_v39 = vld [vmem:[#allocation10 + $0x2b0] sm:$0xf0] }
 0x204   :  { %4866 = vmatpush.bf16.msrb.mxu2 %v7065_v43  ;;  %v7129_v43 = vor.u32 %v8734_v34, %v7126_v35  ;;  %v2654_v31 = vpop.f32.mrf.mxu1  ;;  %v7289_v48 = vor.u32 %v8774_v36, %v7286_v39  ;;  %v7222_v36 = vld [vmem:[#allocation10 + $0x230] sm:$0xf0] }
 0x205   :  { %4879 = vmatpush.bf16.msrb.mxu3 %v7193_v46  ;;  %4842 = vmatpush.bf16.msrb.mxu0 %v8053_v2  ;;  %v8133_v46 = vor.u32 %v8988_v42, %v8132_v55  ;;  %v8948_v2 = vld [vmem:[#allocation10 + $0x80c] sm:$0xf0]  ;;  %v7577_v55 = vor.u32 %v8846_v9, %v7574_v24  ;;  %v8842_v42 = vld [vmem:[#allocation10 + $0x4c4] sm:$0xf] }
 0x206   :  { %4855 = vmatpush.bf16.msrb.mxu1 %v8181_v62  ;;  %v6966_v62 = vld [vmem:[#allocation10 + $0x30] sm:$0xf0]  ;;  %v8874_v31 = vld [vmem:[#allocation10 + $0x5c4] sm:$0xf] }
 0x207   :  { %v6969_v14 = vor.u32 %v8694_v61, %v6966_v62  ;;  %v7670_v61 = vld [vmem:[#allocation10 + $0x5b0] sm:$0xf0]  ;;  %v8830_v24 = vld [vmem:[#allocation10 + $0x464] sm:$0xf] }
 0x208   :  { %4867 = vmatpush.bf16.msrb.mxu2 %v7049_v0  ;;  %v7318_v0 = vld [vmem:[#allocation10 + $0x2f0] sm:$0xf0] }
 0x209   :  { %4880 = vmatpush.bf16.msrb.mxu3 %v7177_v5  ;;  %4843 = vmatpush.bf16.msrb.mxu0 %v8037_v3  ;;  %v2665_v5 = vpop.f32.mrf.mxu2  ;;  %v2678_v3 = vpop.f32.mrf.mxu3  ;;  %v7321_v60 = vor.u32 %v8782_v56, %v7318_v0  ;;  %v7561_v56 = vor.u32 %v8842_v42, %v7558_v44  ;;  %v7689_v0 = vor.u32 %v8874_v31, %v7686_v47  ;;  %v7494_v44 = vld [vmem:[#allocation10 + $0x450] sm:$0xf0]  ;;  %v8858_v31 = vld [vmem:[#allocation10 + $0x544] sm:$0xf] }
 0x20a   :  { %4856 = vmatpush.bf16.msrb.mxu1 %v8165_v15  ;;  %v2666_v1 = vadd.f32 %v2665_v5, %v2653_v21  ;;  %v8722_v15 = vld [vmem:[#allocation10 + $0x104] sm:$0xf]  ;;  %v7622_v47 = vld [vmem:[#allocation10 + $0x550] sm:$0xf0] }
 0x20b   :  { %v8806_v21 = vld [vmem:[#allocation10 + $0x3a4] sm:$0xf] }
 0x20c   :  { %4868 = vmatpush.bf16.msrb.mxu2 %v7033_v8  ;;  %v7973_v8 = vor.u32 %v8948_v2, %v7972_v29  ;;  %v2679_v27 = vadd.f32 %v2678_v3, %v2666_v1  ;;  %v8770_v29 = vld [vmem:[#allocation10 + $0x284] sm:$0xf]  ;;  %v7270_v2 = vld [vmem:[#allocation10 + $0x290] sm:$0xf0]  ;;  %v7545_v3 = vor.u32 %v8838_v57, %v7542_v58  ;;  %v7625_v57 = vor.u32 %v8858_v31, %v7622_v47 }
 0x20d   :  { %4881 = vmatpush.bf16.msrb.mxu3 %v7161_v12  ;;  %4844 = vmatpush.bf16.msrb.mxu0 %v8021_v19  ;;  %v8778_v12 = vld [vmem:[#allocation10 + $0x2c4] sm:$0xf]  ;;  %v7097_v19 = vor.u32 %v8726_v4, %v7094_v6  ;;  %v7273_v62 = vor.u32 %v8770_v29, %v7270_v2  ;;  %v7254_v1 = vld [vmem:[#allocation10 + $0x270] sm:$0xf0] }
 0x20e   :  { %4857 = vmatpush.bf16.msrb.mxu1 %v8149_v30  ;;  %v2793_v23 = vmax.f32 %v2679_v27, 0.0  ;;  %v7305_v30 = vor.u32 %v8778_v12, %v7302_v33  ;;  %v8802_v4 = vld [vmem:[#allocation10 + $0x384] sm:$0xf]  ;;  %v7398_v6 = vld [vmem:[#allocation10 + $0x390] sm:$0xf0] }
 0x20f   :  { %v7526_v12 = vld [vmem:[#allocation10 + $0x490] sm:$0xf0]  ;;  %v7401_v27 = vor.u32 %v8802_v4, %v7398_v6  ;;  %v8822_v58 = vld [vmem:[#allocation10 + $0x424] sm:$0xf] }
 0x210   :  { %4869 = vmatpush.bf16.msrb.mxu2 %v7017_v22  ;;  %v8814_v22 = vld [vmem:[#allocation10 + $0x3e4] sm:$0xf]  ;;  %v9498_v35 = vpack.c.bf16 %v2793_v23, %v2793_v23  ;;  %v7654_v33 = vld [vmem:[#allocation10 + $0x590] sm:$0xf0] }
 0x211   :  { %4882 = vmatpush.bf16.msrb.mxu3 %v7145_v10  ;;  %4845 = vmatpush.bf16.msrb.mxu0 %v8005_v37  ;;  %v7446_v10 = vld [vmem:[#allocation10 + $0x3f0] sm:$0xf0]  ;;  %v6953_v37 = vor.u32 %v8690_v7, %v6950_v11  ;;  %v2667_v40 = vpop.f32.mrf.mxu2  ;;  %v2680_v13 = vpop.f32.mrf.mxu3  ;;  %v8834_v11 = vld [vmem:[#allocation10 + $0x484] sm:$0xf] }
 0x212   :  { %4858 = vmatpush.bf16.msrb.mxu1 %v8133_v46  ;;  %v7449_v34 = vor.u32 %v8814_v22, %v7446_v10  ;;  %4835 = vmatmul.bf16.vlgmr.msra.gmra.mxu3 %v9498_v35  ;;  %v7430_v46 = vld [vmem:[#allocation10 + $0x3d0] sm:$0xf0]  ;;  %v7529_v9 = vor.u32 %v8834_v11, %v7526_v12  ;;  %v8910_v4 = vld [vmem:[#allocation10 + $0x6e4] sm:$0xf] }
 0x213   :  { %v7382_v22 = vld [vmem:[#allocation10 + $0x370] sm:$0xf0]  ;;  %v8818_v11 = vld [vmem:[#allocation10 + $0x404] sm:$0xf] }
 0x214   :  { %4870 = vmatpush.bf16.msrb.mxu2 %v7001_v41  ;;  %v7081_v41 = vor.u32 %v8722_v15, %v7078_v20  ;;  %v8866_v15 = vld [vmem:[#allocation10 + $0x584] sm:$0xf]  ;;  %v7510_v10 = vld [vmem:[#allocation10 + $0x470] sm:$0xf0] }
 0x215   :  { %4883 = vmatpush.bf16.msrb.mxu3 %v7129_v43  ;;  %4846 = vmatpush.bf16.msrb.mxu0 %v7989_v49  ;;  %v7705_v43 = vor.u32 %v8878_v26, %v7702_v28  ;;  %v7433_v49 = vor.u32 %v8810_v45, %v7430_v46  ;;  %v7657_v23 = vor.u32 %v8866_v15, %v7654_v33  ;;  %v8862_v28 = vld [vmem:[#allocation10 + $0x564] sm:$0xf]  ;;  %v7206_v29 = vld [vmem:[#allocation10 + $0x210] sm:$0xf0] }
 0x216   :  { %4859 = vmatpush.bf16.msrb.mxu1 %v8117_v63  ;;  %v8766_v63 = vld [vmem:[#allocation10 + $0x264] sm:$0xf]  ;;  %v7513_v40 = vor.u32 %v8830_v24, %v7510_v10  ;;  %v7830_v6 = vld [vmem:[#allocation10 + $0x6f0] sm:$0xf0] }
 0x217   :  { %v7257_v16 = vor.u32 %v8766_v63, %v7254_v1  ;;  %v8854_v63 = vld [vmem:[#allocation10 + $0x524] sm:$0xf]  ;;  %v7606_v1 = vld [vmem:[#allocation10 + $0x530] sm:$0xf0] }
 0x218   :  { %4871 = vmatpush.bf16.msrb.mxu2 %v6985_v52  ;;  %v7414_v52 = vld [vmem:[#allocation10 + $0x3b0] sm:$0xf0]  ;;  %v8786_v12 = vld [vmem:[#allocation10 + $0x304] sm:$0xf] }
 0x219   :  { %4884 = vmatpush.bf16.msrb.mxu3 %v7113_v59  ;;  %4847 = vmatpush.bf16.msrb.mxu0 %v7973_v8  ;;  %v7417_v5 = vor.u32 %v8806_v21, %v7414_v52  ;;  %v8870_v59 = vld [vmem:[#allocation10 + $0x5a4] sm:$0xf]  ;;  %v9502_v8 = vld [vmem:[#allocation8 + $0x8] sm:$0x3]  ;;  %v7350_v52 = vld [vmem:[#allocation10 + $0x330] sm:$0xf0] }
 0x21a   :  { %4860 = vmatpush.bf16.msrb.mxu1 %v8101_v51  ;;  %v7673_v7 = vor.u32 %v8870_v59, %v7670_v61  ;;  %v654_v20 = vperm.slane %v9502_v8, 0  ;;  %v8798_v51 = vld [vmem:[#allocation10 + $0x364] sm:$0xf]  ;;  %v7462_v15 = vld [vmem:[#allocation10 + $0x410] sm:$0xf0] }
 0x21b   :  { %v7385_v26 = vor.u32 %v8798_v51, %v7382_v22  ;;  %v8790_v21 = vld [vmem:[#allocation10 + $0x324] sm:$0xf]  ;;  %v7833_v51 = vor.u32 %v8910_v4, %v7830_v6  ;;  %v7465_v10 = vor.u32 %v8818_v11, %v7462_v15  ;;  %v8054_v47 = vld [vmem:[#allocation10 + $0x8b0] sm:$0xf0] }
 0x21c   :  { %4872 = vmatpush.bf16.msrb.mxu2 %v6969_v14  ;;  %v2704_v14 = vpop.f32.mrf.mxu1  ;;  %v7353_v59 = vor.u32 %v8790_v21, %v7350_v52  ;;  %v8850_v33 = vld [vmem:[#allocation10 + $0x504] sm:$0xf]  ;;  %v7750_v15 = vld [vmem:[#allocation10 + $0x650] sm:$0xf0] }
 0x21d   :  { %4892 = vmatpush.bf16.msra.mxu0 %v7321_v60  ;;  %4885 = vmatpush.bf16.msrb.mxu3 %v7097_v19  ;;  %v2691_v60 = vpop.f32.mrf.mxu0  ;;  %v7238_v19 = vld [vmem:[#allocation10 + $0x250] sm:$0xf0]  ;;  %v9006_v22 = vld [vmem:[#allocation10 + $0x9e4] sm:$0xf] }
 0x21e   :  { %4905 = vmatpush.bf16.msra.mxu1 %v7449_v34  ;;  %v7241_v34 = vor.u32 %v8762_v17, %v7238_v19  ;;  %v2692_v39 = vadd.f32 %v2691_v60, %v654_v20  ;;  %v8974_v20 = vld [vmem:[#allocation10 + $0x8e4] sm:$0xf] }
 0x21f   :  { %v8966_v31 = vld [vmem:[#allocation10 + $0x8a4] sm:$0xf] }
 0x220   :  { %4873 = vmatpush.bf16.msrb.mxu2 %v6953_v37  ;;  %v8758_v37 = vld [vmem:[#allocation10 + $0x224] sm:$0xf]  ;;  %v2705_v2 = vadd.f32 %v2704_v14, %v2692_v39  ;;  %v7609_v14 = vor.u32 %v8854_v63, %v7606_v1  ;;  %v8057_v21 = vor.u32 %v8966_v31, %v8054_v47  ;;  %v7766_v1 = vld [vmem:[#allocation10 + $0x670] sm:$0xf0] }
 0x221   :  { %4893 = vmatpush.bf16.msra.mxu0 %v7305_v30  ;;  %4886 = vmatpush.bf16.msrb.mxu3 %v7081_v41  ;;  %v7638_v30 = vld [vmem:[#allocation10 + $0x570] sm:$0xf0]  ;;  %v8794_v41 = vld [vmem:[#allocation10 + $0x344] sm:$0xf] }
 0x222   :  { %4906 = vmatpush.bf16.msra.mxu1 %v7433_v49  ;;  %v7641_v13 = vor.u32 %v8862_v28, %v7638_v30  ;;  %v8754_v49 = vld [vmem:[#allocation10 + $0x204] sm:$0xf]  ;;  %v7814_v28 = vld [vmem:[#allocation10 + $0x6d0] sm:$0xf0] }
 0x223   :  { %4874 = vmatmul.bf16.vlgmr.msrb.gmra.mxu2 %v9463_v18  ;;  %v8894_v63 = vld [vmem:[#allocation10 + $0x664] sm:$0xf] }
 0x224   :  { %4918 = vmatpush.bf16.msra.mxu2 %v7577_v55  ;;  %v7366_v55 = vld [vmem:[#allocation10 + $0x350] sm:$0xf0]  ;;  %v2706_v46 = vpop.f32.mrf.mxu1  ;;  %4887 = vmatmul.bf16.vlgmr.msrb.gmra.mxu3 %v9465_v25  ;;  %v7769_v11 = vor.u32 %v8894_v63, %v7766_v1  ;;  %v8817_v63 = vld [vmem:[#allocation10 + $0x3f4] sm:$0xf0]  ;;  %v8938_v1 = vld [vmem:[#allocation10 + $0x7c4] sm:$0xf] }
 0x225   :  { %4931 = vmatpush.bf16.msra.mxu3 %v7705_v43  ;;  %4894 = vmatpush.bf16.msra.mxu0 %v7289_v48  ;;  %v2693_v42 = vpop.f32.mrf.mxu0  ;;  %v8826_v43 = vld [vmem:[#allocation10 + $0x444] sm:$0xf]  ;;  %v7369_v45 = vor.u32 %v8794_v41, %v7366_v55  ;;  %v7225_v48 = vor.u32 %v8758_v37, %v7222_v36  ;;  %v8070_v41 = vld [vmem:[#allocation10 + $0x8d0] sm:$0xf0] }
 0x226   :  { %4907 = vmatpush.bf16.msra.mxu1 %v7417_v5  ;;  %v7478_v5 = vld [vmem:[#allocation10 + $0x430] sm:$0xf0]  ;;  %v9002_v42 = vld [vmem:[#allocation10 + $0x9c4] sm:$0xf] }
 0x228   :  { %4919 = vmatpush.bf16.msra.mxu2 %v7561_v56  ;;  %v7497_v56 = vor.u32 %v8826_v43, %v7494_v44  ;;  %v8902_v43 = vld [vmem:[#allocation10 + $0x6a4] sm:$0xf]  ;;  %v7798_v44 = vld [vmem:[#allocation10 + $0x6b0] sm:$0xf0] }
 0x229   :  { %4932 = vmatpush.bf16.msra.mxu3 %v7689_v0  ;;  %4895 = vmatpush.bf16.msra.mxu0 %v7273_v62  ;;  %v2717_v0 = vpop.f32.mrf.mxu2  ;;  %v2730_v62 = vpop.f32.mrf.mxu3 }
 0x22a   :  { %4908 = vmatpush.bf16.msra.mxu1 %v7401_v27  ;;  %v2718_v61 = vadd.f32 %v2717_v0, %v2705_v2  ;;  %v7334_v27 = vld [vmem:[#allocation10 + $0x310] sm:$0xf0]  ;;  %v8898_v2 = vld [vmem:[#allocation10 + $0x684] sm:$0xf] }
 0x22b   :  { %v7337_v17 = vor.u32 %v8786_v12, %v7334_v27  ;;  %v8990_v12 = vld [vmem:[#allocation10 + $0x964] sm:$0xf]  ;;  %v8150_v27 = vld [vmem:[#allocation10 + $0x970] sm:$0xf0] }
 0x22c   :  { %4920 = vmatpush.bf16.msra.mxu2 %v7545_v3  ;;  %v7209_v3 = vor.u32 %v8754_v49, %v7206_v29  ;;  %v2731_v60 = vadd.f32 %v2730_v62, %v2718_v61  ;;  %v8998_v49 = vld [vmem:[#allocation10 + $0x9a4] sm:$0xf]  ;;  %v8182_v29 = vld [vmem:[#allocation10 + $0x9b0] sm:$0xf0] }
 0x22d   :  { %4933 = vmatpush.bf16.msra.mxu3 %v7673_v7  ;;  %4896 = vmatpush.bf16.msra.mxu0 %v7257_v16  ;;  %v7481_v7 = vor.u32 %v8822_v58, %v7478_v5  ;;  %v7590_v16 = vld [vmem:[#allocation10 + $0x510] sm:$0xf0]  ;;  %v8185_v0 = vor.u32 %v8998_v49, %v8182_v29  ;;  %v8994_v61 = vld [vmem:[#allocation10 + $0x984] sm:$0xf]  ;;  %v8721_v49 = vld [vmem:[#allocation10 + $0xf4] sm:$0xf0] }
 0x22e   :  { %4909 = vmatpush.bf16.msra.mxu1 %v7385_v26  ;;  %v2794_v19 = vmax.f32 %v2731_v60, 0.0  ;;  %v8906_v26 = vld [vmem:[#allocation10 + $0x6c4] sm:$0xf]  ;;  %v8038_v58 = vld [vmem:[#allocation10 + $0x890] sm:$0xf0] }
 0x22f   :  { %v7817_v55 = vor.u32 %v8906_v26, %v7814_v28  ;;  %v8166_v62 = vld [vmem:[#allocation10 + $0x990] sm:$0xf0]  ;;  %v8958_v60 = vld [vmem:[#allocation10 + $0x864] sm:$0xf] }
 0x230   :  { %4921 = vmatpush.bf16.msra.mxu2 %v7529_v9  ;;  %v8086_v9 = vld [vmem:[#allocation10 + $0x8f0] sm:$0xf0]  ;;  %v9506_v24 = vpack.c.bf16 %v2794_v19, %v2794_v19  ;;  %v8169_v6 = vor.u32 %v8994_v61, %v8166_v62  ;;  %v8954_v19 = vld [vmem:[#allocation10 + $0x844] sm:$0xf]  ;;  %v7452_v62 = vld [vmem:[#allocation10 + $0x3e8] sm:$0xf] }
 0x231   :  { %4934 = vmatpush.bf16.msra.mxu3 %v7657_v23  ;;  %4897 = vmatpush.bf16.msra.mxu0 %v7241_v34  ;;  %v8214_v23 = vld [vmem:[#allocation10 + $0x9f0] sm:$0xf0]  ;;  %v2719_v30 = vpop.f32.mrf.mxu2  ;;  %v7593_v34 = vor.u32 %v8850_v33, %v7590_v16  ;;  %v8089_v37 = vor.u32 %v8974_v20, %v8086_v9  ;;  %v2732_v36 = vpop.f32.mrf.mxu3  ;;  %v8946_v29 = vld [vmem:[#allocation10 + $0x804] sm:$0xf] }
 0x232   :  { %4910 = vmatpush.bf16.msra.mxu1 %v7369_v45  ;;  %4848 = vmatmul.bf16.vlgmr.msrb.gmra.mxu0 %v9506_v24  ;;  %v8217_v39 = vor.u32 %v9006_v22, %v8214_v23  ;;  %v8006_v20 = vld [vmem:[#allocation10 + $0x850] sm:$0xf0]  ;;  %v8986_v22 = vld [vmem:[#allocation10 + $0x944] sm:$0xf] }
 0x233   :  { %v8134_v23 = vld [vmem:[#allocation10 + $0x950] sm:$0xf0]  ;;  %v8009_v30 = vor.u32 %v8954_v19, %v8006_v20  ;;  %v8950_v36 = vld [vmem:[#allocation10 + $0x824] sm:$0xf]  ;;  %v8813_v20 = vld [vmem:[#allocation10 + $0x3d4] sm:$0xf0] }
 0x234   :  { %4922 = vmatpush.bf16.msra.mxu2 %v7513_v40  ;;  %v8970_v40 = vld [vmem:[#allocation10 + $0x8c4] sm:$0xf]  ;;  %v7734_v26 = vld [vmem:[#allocation10 + $0x630] sm:$0xf0] }
 0x235   :  { %4935 = vmatpush.bf16.msra.mxu3 %v7641_v13  ;;  %4898 = vmatpush.bf16.msra.mxu0 %v7225_v48  ;;  %v8198_v13 = vld [vmem:[#allocation10 + $0x9d0] sm:$0xf0]  ;;  %v8073_v45 = vor.u32 %v8970_v40, %v8070_v41  ;;  %v7801_v48 = vor.u32 %v8902_v43, %v7798_v44  ;;  %v8882_v43 = vld [vmem:[#allocation10 + $0x604] sm:$0xf] }
 0x236   :  { %4911 = vmatpush.bf16.msra.mxu1 %v7353_v59  ;;  %v8201_v46 = vor.u32 %v9002_v42, %v8198_v13  ;;  %v8982_v42 = vld [vmem:[#allocation10 + $0x924] sm:$0xf]  ;;  %v8118_v13 = vld [vmem:[#allocation10 + $0x930] sm:$0xf0] }
 0x237   :  { %v7718_v44 = vld [vmem:[#allocation10 + $0x610] sm:$0xf0] }
 0x238   :  { %4923 = vmatpush.bf16.msra.mxu2 %v7497_v56  ;;  %v7782_v56 = vld [vmem:[#allocation10 + $0x690] sm:$0xf0] }
 0x239   :  { %4936 = vmatpush.bf16.msra.mxu3 %v7625_v57  ;;  %4899 = vmatpush.bf16.msra.mxu0 %v7209_v3  ;;  %v2743_v52 = vpop.f32.mrf.mxu0  ;;  %v8962_v57 = vld [vmem:[#allocation10 + $0x884] sm:$0xf]  ;;  %v7785_v59 = vor.u32 %v8898_v2, %v7782_v56  ;;  %v655_v3 = vperm.slane %v9502_v8, 1  ;;  %v8153_v8 = vor.u32 %v8990_v12, %v8150_v27  ;;  %v8121_v2 = vor.u32 %v8982_v42, %v8118_v13  ;;  %v7974_v56 = vld [vmem:[#allocation10 + $0x810] sm:$0xf0] }
 0x23a   :  { %4912 = vmatpush.bf16.msra.mxu1 %v7337_v17  ;;  %v8041_v4 = vor.u32 %v8962_v57, %v8038_v58  ;;  %v7721_v57 = vor.u32 %v8882_v43, %v7718_v44  ;;  %v7324_v58 = vld [vmem:[#allocation10 + $0x2e8] sm:$0xf]  ;;  %v7910_v42 = vld [vmem:[#allocation10 + $0x790] sm:$0xf0]  ;;  %v8709_v43 = vld [vmem:[#allocation10 + $0x94] sm:$0xf0] }
 0x23b   :  { %v2744_v33 = vadd.f32 %v2743_v52, %v655_v3  ;;  %v8102_v52 = vld [vmem:[#allocation10 + $0x910] sm:$0xf0]  ;;  %v7020_v13 = vld [vmem:[#allocation10 + $0x88] sm:$0xf] }
 0x23c   :  { %4924 = vmatpush.bf16.msra.mxu2 %v7481_v7  ;;  %v2756_v5 = vpop.f32.mrf.mxu1  ;;  %v8022_v7 = vld [vmem:[#allocation10 + $0x870] sm:$0xf0] }
 0x23d   :  { %4937 = vmatpush.bf16.msra.mxu3 %v7609_v14  ;;  %4944 = vmatpush.bf16.msrb.mxu0 %v7833_v51  ;;  %v8890_v14 = vld [vmem:[#allocation10 + $0x644] sm:$0xf]  ;;  %v8025_v16 = vor.u32 %v8958_v60, %v8022_v7  ;;  %v2757_v28 = vadd.f32 %v2756_v5, %v2744_v33  ;;  %v8785_v5 = vld [vmem:[#allocation10 + $0x2f4] sm:$0xf0]  ;;  %v7052_v60 = vld [vmem:[#allocation10 + $0xc8] sm:$0xf] }
 0x23e   :  { %v7753_v51 = vor.u32 %v8890_v14, %v7750_v15  ;;  %v8717_v7 = vld [vmem:[#allocation10 + $0xd4] sm:$0xf0]  ;;  %v7325_v14 = vor.u32 %v8785_v5, %v7324_v58  ;;  %v7453_v15 = vor.u32 %v8817_v63, %v7452_v62  ;;  %v7308_v33 = vld [vmem:[#allocation10 + $0x2c8] sm:$0xf]  ;;  %v8926_v58 = vld [vmem:[#allocation10 + $0x764] sm:$0xf] }
 0x23f   :  { %v7053_v19 = vor.u32 %v8717_v7, %v7052_v60  ;;  %v7894_v5 = vld [vmem:[#allocation10 + $0x770] sm:$0xf0]  ;;  %v7260_v62 = vld [vmem:[#allocation10 + $0x268] sm:$0xf] }
 0x240   :  { %4925 = vmatpush.bf16.msra.mxu2 %v7465_v10  ;;  %v8886_v10 = vld [vmem:[#allocation10 + $0x624] sm:$0xf]  ;;  %v7897_v60 = vor.u32 %v8926_v58, %v7894_v5  ;;  %v6988_v7 = vld [vmem:[#allocation10 + $0x48] sm:$0xf] }
 0x241   :  { %4938 = vmatpush.bf16.msra.mxu3 %v7593_v34  ;;  %4945 = vmatpush.bf16.msrb.mxu0 %v7817_v55  ;;  %v2745_v17 = vpop.f32.mrf.mxu0  ;;  %v7737_v55 = vor.u32 %v8886_v10, %v7734_v26  ;;  %v8713_v10 = vld [vmem:[#allocation10 + $0xb4] sm:$0xf0]  ;;  %v7340_v58 = vld [vmem:[#allocation10 + $0x308] sm:$0xf] }
 0x242   :  { %4900 = vmatmul.bf16.vlgmr.msra.gmra.mxu0 %v9471_v50  ;;  %v7436_v17 = vld [vmem:[#allocation10 + $0x3c8] sm:$0xf] }
 0x243   :  { %4926 = vmatmul.bf16.vlgmr.msra.gmra.mxu2 %v9488_v32 }
 0x244   :  { %4970 = vmatpush.bf16.msrb.mxu2 %v8089_v37  ;;  %4939 = vmatmul.bf16.vlgmr.msra.gmra.mxu3 %v9490_v38  ;;  %v2758_v9 = vpop.f32.mrf.mxu1  ;;  %v8137_v37 = vor.u32 %v8986_v22, %v8134_v23  ;;  %v7926_v22 = vld [vmem:[#allocation10 + $0x7b0] sm:$0xf0]  ;;  %v7036_v23 = vld [vmem:[#allocation10 + $0xa8] sm:$0xf] }
 0x245   :  { %4983 = vmatpush.bf16.msrb.mxu3 %v8217_v39  ;;  %4946 = vmatpush.bf16.msrb.mxu0 %v7801_v48  ;;  %v7990_v39 = vld [vmem:[#allocation10 + $0x830] sm:$0xf0]  ;;  %v7068_v48 = vld [vmem:[#allocation10 + $0xe8] sm:$0xf]  ;;  %v9516_v9 = vld [vmem:[#allocation11] sm:$0xf] }
 0x246   :  { %v2769_v34 = vpop.f32.mrf.mxu2  ;;  %v7993_v47 = vor.u32 %v8950_v36, %v7990_v39  ;;  %v7069_v61 = vor.u32 %v8721_v49, %v7068_v48  ;;  %v7037_v39 = vor.u32 %v8713_v10, %v7036_v23  ;;  %v6972_v23 = vld [vmem:[#allocation10 + $0x28] sm:$0xf]  ;;  %v8697_v10 = vld [vmem:[#allocation10 + $0x34] sm:$0xf0] }
 0x247   :  { %v2770_v40 = vadd.f32 %v2769_v34, %v2757_v28  ;;  %v2782_v41 = vpop.f32.mrf.mxu3  ;;  %v7437_v28 = vor.u32 %v8813_v20, %v7436_v17  ;;  %v7292_v34 = vld [vmem:[#allocation10 + $0x2a8] sm:$0xf] }
 0x248   :  { %4971 = vmatpush.bf16.msrb.mxu2 %v8073_v45  ;;  %v8942_v45 = vld [vmem:[#allocation10 + $0x7e4] sm:$0xf]  ;;  %v7372_v20 = vld [vmem:[#allocation10 + $0x348] sm:$0xf] }
 0x249   :  { %4984 = vmatpush.bf16.msrb.mxu3 %v8201_v46  ;;  %4947 = vmatpush.bf16.msrb.mxu0 %v7785_v59  ;;  %v7958_v46 = vld [vmem:[#allocation10 + $0x7f0] sm:$0xf0]  ;;  %v2783_v31 = vadd.f32 %v2782_v41, %v2770_v40  ;;  %v7420_v40 = vld [vmem:[#allocation10 + $0x3a8] sm:$0xf]  ;;  %v8809_v41 = vld [vmem:[#allocation10 + $0x3b4] sm:$0xf0] }
 0x24a   :  { %v7961_v59 = vor.u32 %v8942_v45, %v7958_v46  ;;  %v7421_v46 = vor.u32 %v8809_v41, %v7420_v40  ;;  %v6973_v41 = vor.u32 %v8697_v10, %v6972_v23  ;;  %v8941_v23 = vld [vmem:[#allocation10 + $0x7d4] sm:$0xf0]  ;;  %v7164_v10 = vld [vmem:[#allocation10 + $0x1a8] sm:$0xf] }
 0x24c   :  { %4972 = vmatpush.bf16.msrb.mxu2 %v8057_v21  ;;  %v8978_v21 = vld [vmem:[#allocation10 + $0x904] sm:$0xf] }
 0x24d   :  { %4985 = vmatpush.bf16.msrb.mxu3 %v8185_v0  ;;  %4948 = vmatpush.bf16.msrb.mxu0 %v7769_v11  ;;  %v2795_v0 = vmax.f32 %v2783_v31, 0.0  ;;  %v8105_v12 = vor.u32 %v8978_v21, %v8102_v52  ;;  %v7276_v31 = vld [vmem:[#allocation10 + $0x288] sm:$0xf]  ;;  %v8805_v21 = vld [vmem:[#allocation10 + $0x394] sm:$0xf0] }
 0x24e   :  { %v2771_v11 = vpop.f32.mrf.mxu2  ;;  %v7004_v52 = vld [vmem:[#allocation10 + $0x68] sm:$0xf] }
 0x24f   :  { %v9513_v3 = vpack.c.bf16 %v2795_v0, %v2795_v0  ;;  %v2784_v27 = vpop.f32.mrf.mxu3  ;;  %v8705_v0 = vld [vmem:[#allocation10 + $0x74] sm:$0xf0] }
 0x250   :  { %4973 = vmatpush.bf16.msrb.mxu2 %v8041_v4  ;;  %v7977_v4 = vor.u32 %v8946_v29, %v7974_v56  ;;  %v7021_v29 = vor.u32 %v8709_v43, %v7020_v13  ;;  %v7404_v56 = vld [vmem:[#allocation10 + $0x388] sm:$0xf]  ;;  %v7005_v63 = vor.u32 %v8705_v0, %v7004_v52  ;;  %v8701_v11 = vld [vmem:[#allocation10 + $0x54] sm:$0xf0]  ;;  %v7878_v27 = vld [vmem:[#allocation10 + $0x750] sm:$0xf0] }
 0x251   :  { %4986 = vmatpush.bf16.msrb.mxu3 %v8169_v6  ;;  %4949 = vmatpush.bf16.msrb.mxu0 %v7753_v51  ;;  %v7942_v6 = vld [vmem:[#allocation10 + $0x7d0] sm:$0xf0]  ;;  %v8934_v51 = vld [vmem:[#allocation10 + $0x7a4] sm:$0xf]  ;;  %v8793_v13 = vld [vmem:[#allocation10 + $0x334] sm:$0xf0] }
 0x252   :  { %4861 = vmatmul.bf16.vlgmr.msrb.gmra.mxu1 %v9513_v3  ;;  %v7929_v36 = vor.u32 %v8934_v51, %v7926_v22  ;;  %v8797_v51 = vld [vmem:[#allocation10 + $0x354] sm:$0xf0]  ;;  %v7212_v0 = vld [vmem:[#allocation10 + $0x208] sm:$0xf] }
 0x253   :  { %4957 = vmatpush.bf16.msrb.mxu1 %v7961_v59 }
 0x254   :  { %4974 = vmatpush.bf16.msrb.mxu2 %v8025_v16  ;;  %v8781_v16 = vld [vmem:[#allocation10 + $0x2d4] sm:$0xf0] }
 0x255   :  { %4987 = vmatpush.bf16.msrb.mxu3 %v8153_v8  ;;  %4950 = vmatpush.bf16.msrb.mxu0 %v7737_v55  ;;  %v7945_v8 = vor.u32 %v8938_v1, %v7942_v6  ;;  %v7309_v26 = vor.u32 %v8781_v16, %v7308_v33  ;;  %v8930_v55 = vld [vmem:[#allocation10 + $0x784] sm:$0xf]  ;;  %v8769_v1 = vld [vmem:[#allocation10 + $0x274] sm:$0xf0]  ;;  %v7244_v16 = vld [vmem:[#allocation10 + $0x248] sm:$0xf] }
 0x256   :  { %v7913_v49 = vor.u32 %v8930_v55, %v7910_v42  ;;  %v8801_v6 = vld [vmem:[#allocation10 + $0x374] sm:$0xf0]  ;;  %v7356_v42 = vld [vmem:[#allocation10 + $0x328] sm:$0xf] }
 0x257   :  { %4958 = vmatpush.bf16.msrb.mxu1 %v7945_v8  ;;  %v6989_v8 = vor.u32 %v8701_v11, %v6988_v7  ;;  %v8761_v55 = vld [vmem:[#allocation10 + $0x234] sm:$0xf0] }
 0x258   :  { %4975 = vmatpush.bf16.msrb.mxu2 %v8009_v30  ;;  %v3128_v30 = vperm.slane %v9516_v9, 0 }
 0x259   :  { %4988 = vmatpush.bf16.msrb.mxu3 %v8137_v37  ;;  %4951 = vmatpush.bf16.msrb.mxu0 %v7721_v57  ;;  %v8777_v37 = vld [vmem:[#allocation10 + $0x2b4] sm:$0xf0]  ;;  %v4745_v44 = vpop.f32.mrf.mxu0 }
 0x25a   :  { %v7293_v45 = vor.u32 %v8777_v37, %v7292_v34  ;;  %v7373_v37 = vor.u32 %v8797_v51, %v7372_v20 }
 0x25b   :  { %4959 = vmatpush.bf16.msrb.mxu1 %v7929_v36  ;;  %v7228_v36 = vld [vmem:[#allocation10 + $0x228] sm:$0xf] }
 0x25c   :  { %4976 = vmatpush.bf16.msrb.mxu2 %v7993_v47  ;;  %4952 = vmatmul.bf16.vlgmr.msrb.gmra.mxu0 %v9494_v53  ;;  %v4746_v47 = vadd.f32 %v4745_v44, %v3128_v30  ;;  %v4758_v48 = vpop.f32.mrf.mxu1  ;;  %v8914_v44 = vld [vmem:[#allocation10 + $0x704] sm:$0xf] }
 0x25d   :  { %4989 = vmatpush.bf16.msrb.mxu3 %v8121_v2  ;;  %4996 = vmatpush.bf16.msra.mxu0 %v7069_v61  ;;  %v8773_v2 = vld [vmem:[#allocation10 + $0x294] sm:$0xf0]  ;;  %v7405_v61 = vor.u32 %v8805_v21, %v7404_v56  ;;  %v7196_v56 = vld [vmem:[#allocation10 + $0x1e8] sm:$0xf] }
 0x25e   :  { %v4759_v57 = vadd.f32 %v4758_v48, %v4746_v47  ;;  %v7277_v59 = vor.u32 %v8773_v2, %v7276_v31  ;;  %v7846_v47 = vld [vmem:[#allocation10 + $0x710] sm:$0xf0]  ;;  %v7580_v48 = vld [vmem:[#allocation10 + $0x4e8] sm:$0xf]  ;;  %v7357_v2 = vor.u32 %v8793_v13, %v7356_v42  ;;  %v8753_v21 = vld [vmem:[#allocation10 + $0x1f4] sm:$0xf0] }
 0x25f   :  { %4960 = vmatpush.bf16.msrb.mxu1 %v7913_v49  ;;  %v8849_v49 = vld [vmem:[#allocation10 + $0x4f4] sm:$0xf0]  ;;  %v7849_v5 = vor.u32 %v8914_v44, %v7846_v47  ;;  %v7148_v13 = vld [vmem:[#allocation10 + $0x188] sm:$0xf] }
 0x260   :  { %4977 = vmatpush.bf16.msrb.mxu2 %v7977_v4  ;;  %v7388_v4 = vld [vmem:[#allocation10 + $0x368] sm:$0xf]  ;;  %v8937_v42 = vld [vmem:[#allocation10 + $0x7b4] sm:$0xf0] }
 0x261   :  { %4990 = vmatpush.bf16.msrb.mxu3 %v8105_v12  ;;  %4997 = vmatpush.bf16.msra.mxu0 %v7053_v19  ;;  %v8922_v12 = vld [vmem:[#allocation10 + $0x744] sm:$0xf]  ;;  %v7389_v33 = vor.u32 %v8801_v6, %v7388_v4  ;;  %v8765_v19 = vld [vmem:[#allocation10 + $0x254] sm:$0xf0]  ;;  %v7964_v4 = vld [vmem:[#allocation10 + $0x7e8] sm:$0xf] }
 0x262   :  { %4913 = vmatmul.bf16.vlgmr.msra.gmra.mxu1 %v9473_v54  ;;  %v7881_v22 = vor.u32 %v8922_v12, %v7878_v27  ;;  %v7245_v34 = vor.u32 %v8765_v19, %v7244_v16  ;;  %v8945_v6 = vld [vmem:[#allocation10 + $0x7f4] sm:$0xf0]  ;;  %v7564_v27 = vld [vmem:[#allocation10 + $0x4c8] sm:$0xf] }
 0x263   :  { %4978 = vmatmul.bf16.vlgmr.msrb.gmra.mxu2 %v9506_v24  ;;  %4961 = vmatpush.bf16.msrb.mxu1 %v7897_v60  ;;  %v7180_v60 = vld [vmem:[#allocation10 + $0x1c8] sm:$0xf]  ;;  %v8749_v12 = vld [vmem:[#allocation10 + $0x1d4] sm:$0xf0] }
 0x264   :  { %5022 = vmatpush.bf16.msra.mxu2 %v7325_v14  ;;  %4991 = vmatmul.bf16.vlgmr.msrb.gmra.mxu3 %v9513_v3  ;;  %v4747_v14 = vpop.f32.mrf.mxu0  ;;  %v4760_v17 = vpop.f32.mrf.mxu1  ;;  %v8909_v19 = vld [vmem:[#allocation10 + $0x6d4] sm:$0xf0]  ;;  %v7181_v20 = vor.u32 %v8749_v12, %v7180_v60  ;;  %v7532_v44 = vld [vmem:[#allocation10 + $0x488] sm:$0xf] }
 0x265   :  { %5035 = vmatpush.bf16.msra.mxu3 %v7453_v15  ;;  %4998 = vmatpush.bf16.msra.mxu0 %v7037_v39  ;;  %v7261_v15 = vor.u32 %v8769_v1, %v7260_v62  ;;  %v7836_v62 = vld [vmem:[#allocation10 + $0x6e8] sm:$0xf]  ;;  %v7197_v1 = vor.u32 %v8753_v21, %v7196_v56  ;;  %v8845_v14 = vld [vmem:[#allocation10 + $0x4d4] sm:$0xf0]  ;;  %v7965_v17 = vor.u32 %v8945_v6, %v7964_v4 }
 0x266   :  { %v4771_v30 = vpop.f32.mrf.mxu2  ;;  %v7565_v51 = vor.u32 %v8845_v14, %v7564_v27  ;;  %v8901_v56 = vld [vmem:[#allocation10 + $0x694] sm:$0xf0]  ;;  %v7116_v12 = vld [vmem:[#allocation10 + $0x148] sm:$0xf] }
 0x267   :  { %v4772_v39 = vadd.f32 %v4771_v30, %v4759_v57  ;;  %v4784_v40 = vpop.f32.mrf.mxu3  ;;  %4962 = vmatpush.bf16.msrb.mxu1 %v7881_v22  ;;  %v8757_v57 = vld [vmem:[#allocation10 + $0x214] sm:$0xf0]  ;;  %v7948_v22 = vld [vmem:[#allocation10 + $0x7c8] sm:$0xf] }
 0x268   :  { %5023 = vmatpush.bf16.msra.mxu2 %v7309_v26  ;;  %v8918_v26 = vld [vmem:[#allocation10 + $0x724] sm:$0xf]  ;;  %v7213_v11 = vor.u32 %v8757_v57, %v7212_v0  ;;  %v8841_v30 = vld [vmem:[#allocation10 + $0x4b4] sm:$0xf0]  ;;  %v7916_v0 = vld [vmem:[#allocation10 + $0x788] sm:$0xf] }
 0x269   :  { %5036 = vmatpush.bf16.msra.mxu3 %v7437_v28  ;;  %4999 = vmatpush.bf16.msra.mxu0 %v7021_v29  ;;  %v7862_v28 = vld [vmem:[#allocation10 + $0x730] sm:$0xf0]  ;;  %v9523_v31 = vadd.f32 %v4784_v40, %v4772_v39  ;;  %v7229_v29 = vor.u32 %v8761_v55, %v7228_v36  ;;  %v7804_v36 = vld [vmem:[#allocation10 + $0x6a8] sm:$0xf]  ;;  %v8905_v39 = vld [vmem:[#allocation10 + $0x6b4] sm:$0xf0] }
 0x26a   :  { %v7865_v43 = vor.u32 %v8918_v26, %v7862_v28  ;;  %v8745_v26 = vld [vmem:[#allocation10 + $0x1b4] sm:$0xf0]  ;;  %v7548_v28 = vld [vmem:[#allocation10 + $0x4a8] sm:$0xf] }
 0x26b   :  { %v7165_v40 = vor.u32 %v8745_v26, %v7164_v10  ;;  %v7932_v55 = vld [vmem:[#allocation10 + $0x7a8] sm:$0xf]  ;;  %v8933_v57 = vld [vmem:[#allocation10 + $0x794] sm:$0xf0] }
 0x26c   :  { %5024 = vmatpush.bf16.msra.mxu2 %v7293_v45  ;;  %v6956_v45 = vld [vmem:[#allocation10 + $0x8] sm:$0xf]  ;;  %4963 = vmatpush.bf16.msrb.mxu1 %v7865_v43  ;;  %v8741_v43 = vld [vmem:[#allocation10 + $0x194] sm:$0xf0] }
 0x26d   :  { %5037 = vmatpush.bf16.msra.mxu3 %v7421_v46  ;;  %5000 = vmatpush.bf16.msra.mxu0 %v7005_v63  ;;  %v8693_v46 = vld [vmem:[#allocation10 + $0x14] sm:$0xf0]  ;;  %v7149_v21 = vor.u32 %v8741_v43, %v7148_v13  ;;  %v7500_v14 = vld [vmem:[#allocation10 + $0x448] sm:$0xf] }
 0x26e   :  { %v6957_v52 = vor.u32 %v8693_v46, %v6956_v45  ;;  %v8913_v63 = vld [vmem:[#allocation10 + $0x6f4] sm:$0xf0]  ;;  %v4773_v7 = vpop.f32.mrf.mxu2  ;;  %v7100_v26 = vld [vmem:[#allocation10 + $0x128] sm:$0xf] }
 0x26f   :  { %v7837_v16 = vor.u32 %v8913_v63, %v7836_v62  ;;  %v8837_v45 = vld [vmem:[#allocation10 + $0x494] sm:$0xf0]  ;;  %v7900_v7 = vld [vmem:[#allocation10 + $0x768] sm:$0xf] }
 0x270   :  { %5025 = vmatpush.bf16.msra.mxu2 %v7277_v59  ;;  %v7581_v59 = vor.u32 %v8849_v49, %v7580_v48  ;;  %4964 = vmatpush.bf16.msrb.mxu1 %v7849_v5  ;;  %v7805_v49 = vor.u32 %v8905_v39, %v7804_v36  ;;  %v8833_v62 = vld [vmem:[#allocation10 + $0x474] sm:$0xf0] }
 0x271   :  { %5038 = vmatpush.bf16.msra.mxu3 %v7405_v61  ;;  %5001 = vmatpush.bf16.msra.mxu0 %v6989_v8  ;;  %v8789_v61 = vld [vmem:[#allocation10 + $0x314] sm:$0xf0]  ;;  %v7820_v8 = vld [vmem:[#allocation10 + $0x6c8] sm:$0xf] }
 0x272   :  { %v8897_v4 = vld [vmem:[#allocation10 + $0x674] sm:$0xf0] }
 0x273   :  { %4965 = vmatmul.bf16.vlgmr.msrb.gmra.mxu1 %v9498_v35  ;;  %v8733_v27 = vld [vmem:[#allocation10 + $0x154] sm:$0xf0] }
 0x274   :  { %5026 = vmatpush.bf16.msra.mxu2 %v7261_v15  ;;  %v4786_v15 = vpop.f32.mrf.mxu3  ;;  %5009 = vmatpush.bf16.msra.mxu1 %v7197_v1  ;;  %v7772_v1 = vld [vmem:[#allocation10 + $0x668] sm:$0xf]  ;;  %v8925_v10 = vld [vmem:[#allocation10 + $0x754] sm:$0xf0] }
 0x275   :  { %5039 = vmatpush.bf16.msra.mxu3 %v7389_v33  ;;  %5002 = vmatpush.bf16.msra.mxu0 %v6973_v41  ;;  %v7341_v33 = vor.u32 %v8789_v61, %v7340_v58  ;;  %v7549_v41 = vor.u32 %v8841_v30, %v7548_v28  ;;  %v7132_v58 = vld [vmem:[#allocation10 + $0x168] sm:$0xf]  ;;  %v8829_v15 = vld [vmem:[#allocation10 + $0x454] sm:$0xf0] }
 0x276   :  { %v7516_v61 = vld [vmem:[#allocation10 + $0x468] sm:$0xf]  ;;  %v8729_v28 = vld [vmem:[#allocation10 + $0x134] sm:$0xf0] }
 0x277   :  { %v7517_v60 = vor.u32 %v8833_v62, %v7516_v61  ;;  %v7484_v30 = vld [vmem:[#allocation10 + $0x428] sm:$0xf]  ;;  %v7101_v13 = vor.u32 %v8729_v28, %v7100_v26  ;;  %v8969_v28 = vld [vmem:[#allocation10 + $0x8b4] sm:$0xf0] }
 0x278   :  { %5027 = vmatpush.bf16.msra.mxu2 %v7245_v34  ;;  %v7821_v34 = vor.u32 %v8909_v19, %v7820_v8  ;;  %5010 = vmatpush.bf16.msra.mxu1 %v7181_v20  ;;  %v7756_v19 = vld [vmem:[#allocation10 + $0x648] sm:$0xf]  ;;  %v8893_v20 = vld [vmem:[#allocation10 + $0x654] sm:$0xf0] }
 0x279   :  { %5040 = vmatpush.bf16.msra.mxu3 %v7373_v37  ;;  %5003 = vmatpush.bf16.msra.mxu0 %v6957_v52  ;;  %v7949_v37 = vor.u32 %v8941_v23, %v7948_v22  ;;  %v4797_v46 = vpop.f32.mrf.mxu0  ;;  %v7533_v52 = vor.u32 %v8837_v45, %v7532_v44  ;;  %v7501_v22 = vor.u32 %v8829_v15, %v7500_v14  ;;  %v7884_v23 = vld [vmem:[#allocation10 + $0x748] sm:$0xf]  ;;  %v8921_v44 = vld [vmem:[#allocation10 + $0x734] sm:$0xf0] }
 0x27a   :  { %v4798_v47 = vadd.f32 %v4797_v46, %v9523_v31  ;;  %v7917_v31 = vor.u32 %v8933_v57, %v7916_v0  ;;  %v7757_v39 = vor.u32 %v8893_v20, %v7756_v19  ;;  %v7084_v45 = vld [vmem:[#allocation10 + $0x108] sm:$0xf]  ;;  %v8725_v46 = vld [vmem:[#allocation10 + $0x114] sm:$0xf0] }
 0x27b   :  { %v7085_v0 = vor.u32 %v8725_v46, %v7084_v45  ;;  %v8060_v26 = vld [vmem:[#allocation10 + $0x8a8] sm:$0xf]  ;;  %v8965_v45 = vld [vmem:[#allocation10 + $0x894] sm:$0xf0] }
 0x27c   :  { %5028 = vmatpush.bf16.msra.mxu2 %v7229_v29  ;;  %5004 = vmatmul.bf16.vlgmr.msra.gmra.mxu0 %v9463_v18  ;;  %v4810_v48 = vpop.f32.mrf.mxu1  ;;  %v7933_v29 = vor.u32 %v8937_v42, %v7932_v55  ;;  %v8889_v55 = vld [vmem:[#allocation10 + $0x634] sm:$0xf0]  ;;  %v7868_v42 = vld [vmem:[#allocation10 + $0x728] sm:$0xf] }
 0x27d   :  { %5041 = vmatpush.bf16.msra.mxu3 %v7357_v2  ;;  %5048 = vmatpush.bf16.msrb.mxu0 %v7581_v59  ;;  %v7788_v2 = vld [vmem:[#allocation10 + $0x688] sm:$0xf]  ;;  %v4811_v5 = vadd.f32 %v4810_v48, %v4798_v47  ;;  %v8737_v59 = vld [vmem:[#allocation10 + $0x174] sm:$0xf0] }
 0x27e   :  { %5011 = vmatpush.bf16.msra.mxu1 %v7165_v40  ;;  %v7789_v63 = vor.u32 %v8901_v56, %v7788_v2  ;;  %v7133_v6 = vor.u32 %v8737_v59, %v7132_v58  ;;  %v7885_v40 = vor.u32 %v8925_v10, %v7884_v23  ;;  %v7468_v47 = vld [vmem:[#allocation10 + $0x408] sm:$0xf]  ;;  %v8821_v48 = vld [vmem:[#allocation10 + $0x414] sm:$0xf0] }
 0x27f   :  { %v8092_v2 = vld [vmem:[#allocation10 + $0x8e8] sm:$0xf]  ;;  %v8977_v56 = vld [vmem:[#allocation10 + $0x8f4] sm:$0xf0]  ;;  %v7469_v57 = vor.u32 %v8821_v48, %v7468_v47  ;;  %v8707_v48 = vld [vmem:[#allocation10 + $0x8c] sm:$0xf] }
 0x280   :  { %5029 = vmatpush.bf16.msra.mxu2 %v7213_v11  ;;  %v8929_v11 = vld [vmem:[#allocation10 + $0x774] sm:$0xf0]  ;;  %v7724_v58 = vld [vmem:[#allocation10 + $0x608] sm:$0xf]  ;;  %v8093_v62 = vor.u32 %v8977_v56, %v8092_v2  ;;  %v8739_v56 = vld [vmem:[#allocation10 + $0x18c] sm:$0xf] }
 0x281   :  { %5042 = vmatpush.bf16.msra.mxu3 %v7341_v33  ;;  %5049 = vmatpush.bf16.msrb.mxu0 %v7565_v51  ;;  %v4799_v33 = vpop.f32.mrf.mxu0  ;;  %v7901_v8 = vor.u32 %v8929_v11, %v7900_v7  ;;  %v7117_v51 = vor.u32 %v8733_v27, %v7116_v12  ;;  %v7852_v59 = vld [vmem:[#allocation10 + $0x708] sm:$0xf]  ;;  %v8877_v11 = vld [vmem:[#allocation10 + $0x5d4] sm:$0xf0] }
 0x282   :  { %5012 = vmatpush.bf16.msra.mxu1 %v7149_v21  ;;  %v7692_v7 = vld [vmem:[#allocation10 + $0x5c8] sm:$0xf]  ;;  %v8973_v27 = vld [vmem:[#allocation10 + $0x8d4] sm:$0xf0] }
 0x283   :  { %5030 = vmatmul.bf16.vlgmr.msra.gmra.mxu2 %v9471_v50  ;;  %v8076_v12 = vld [vmem:[#allocation10 + $0x8c8] sm:$0xf]  ;;  %v7693_v19 = vor.u32 %v8877_v11, %v7692_v7  ;;  %v8873_v10 = vld [vmem:[#allocation10 + $0x5b4] sm:$0xf0] }
 0x284   :  { %5074 = vmatpush.bf16.msrb.mxu2 %v7837_v16  ;;  %5043 = vmatmul.bf16.vlgmr.msra.gmra.mxu3 %v9473_v54  ;;  %v4812_v16 = vpop.f32.mrf.mxu1  ;;  %v8077_v20 = vor.u32 %v8973_v27, %v8076_v12  ;;  %v7676_v23 = vld [vmem:[#allocation10 + $0x5a8] sm:$0xf]  ;;  %v8861_v11 = vld [vmem:[#allocation10 + $0x554] sm:$0xf0] }
 0x285   :  { %5087 = vmatpush.bf16.msrb.mxu3 %v7965_v17  ;;  %5050 = vmatpush.bf16.msrb.mxu0 %v7549_v41  ;;  %v7773_v17 = vor.u32 %v8897_v4, %v7772_v1  ;;  %v7740_v41 = vld [vmem:[#allocation10 + $0x628] sm:$0xf]  ;;  %v7070_v1 = vld [vmem:[#allocation10 + $0xf8] sm:$0xf0]  ;;  %v8957_v27 = vld [vmem:[#allocation10 + $0x854] sm:$0xf0] }
 0x286   :  { %5013 = vmatpush.bf16.msra.mxu1 %v7133_v6  ;;  %v7741_v21 = vor.u32 %v8889_v55, %v7740_v41  ;;  %v8751_v6 = vld [vmem:[#allocation10 + $0x1ec] sm:$0xf]  ;;  %v8061_v41 = vor.u32 %v8969_v28, %v8060_v26  ;;  %v8012_v12 = vld [vmem:[#allocation10 + $0x848] sm:$0xf] }
 0x287   :  { %v8743_v55 = vld [vmem:[#allocation10 + $0x1ac] sm:$0xf] }
 0x288   :  { %5075 = vmatpush.bf16.msrb.mxu2 %v7821_v34  ;;  %v8825_v34 = vld [vmem:[#allocation10 + $0x434] sm:$0xf0] }
 0x289   :  { %5088 = vmatpush.bf16.msrb.mxu3 %v7949_v37  ;;  %5051 = vmatpush.bf16.msrb.mxu0 %v7533_v52  ;;  %v4823_v37 = vpop.f32.mrf.mxu2  ;;  %v7485_v43 = vor.u32 %v8825_v34, %v7484_v30  ;;  %v7869_v52 = vor.u32 %v8921_v44, %v7868_v42  ;;  %v7166_v42 = vld [vmem:[#allocation10 + $0x1b8] sm:$0xf0]  ;;  %v8044_v44 = vld [vmem:[#allocation10 + $0x888] sm:$0xf] }
 0x28a   :  { %v9530_v36 = vadd.f32 %v4823_v37, %v4811_v5  ;;  %5014 = vmatpush.bf16.msra.mxu1 %v7117_v51  ;;  %v8885_v5 = vld [vmem:[#allocation10 + $0x614] sm:$0xf0]  ;;  %v8747_v51 = vld [vmem:[#allocation10 + $0x1cc] sm:$0xf]  ;;  %v7169_v47 = vor.u32 %v8743_v55, %v7166_v42  ;;  %v8045_v2 = vor.u32 %v8965_v45, %v8044_v44  ;;  %v7102_v55 = vld [vmem:[#allocation10 + $0x138] sm:$0xf0] }
 0x28b   :  { %v7725_v14 = vor.u32 %v8885_v5, %v7724_v58  ;;  %v8711_v37 = vld [vmem:[#allocation10 + $0xac] sm:$0xf]  ;;  %v8961_v58 = vld [vmem:[#allocation10 + $0x874] sm:$0xf0]  ;;  %v7596_v42 = vld [vmem:[#allocation10 + $0x508] sm:$0xf] }
 0x28c   :  { %5076 = vmatpush.bf16.msrb.mxu2 %v7805_v49  ;;  %v7708_v49 = vld [vmem:[#allocation10 + $0x5e8] sm:$0xf]  ;;  %v8949_v44 = vld [vmem:[#allocation10 + $0x814] sm:$0xf0] }
 0x28d   :  { %5089 = vmatpush.bf16.msrb.mxu3 %v7933_v29  ;;  %5052 = vmatpush.bf16.msrb.mxu0 %v7517_v60  ;;  %v8881_v29 = vld [vmem:[#allocation10 + $0x5f4] sm:$0xf0]  ;;  %v7198_v60 = vld [vmem:[#allocation10 + $0x1f8] sm:$0xf0]  ;;  %v8220_v45 = vld [vmem:[#allocation10 + $0x9e8] sm:$0xf] }
 0x28e   :  { %5015 = vmatpush.bf16.msra.mxu1 %v7101_v13  ;;  %v7709_v61 = vor.u32 %v8881_v29, %v7708_v49  ;;  %v7201_v16 = vor.u32 %v8751_v6, %v7198_v60  ;;  %v7660_v13 = vld [vmem:[#allocation10 + $0x588] sm:$0xf]  ;;  %v7022_v49 = vld [vmem:[#allocation10 + $0x98] sm:$0xf0] }
 0x28f   :  { %v7025_v5 = vor.u32 %v8707_v48, %v7022_v49  ;;  %v7134_v6 = vld [vmem:[#allocation10 + $0x178] sm:$0xf0]  ;;  %v7628_v60 = vld [vmem:[#allocation10 + $0x548] sm:$0xf]  ;;  %v3129_v49 = vperm.slane %v9516_v9, 1 }
 0x290   :  { %5077 = vmatpush.bf16.msrb.mxu2 %v7789_v63  ;;  %v8917_v63 = vld [vmem:[#allocation10 + $0x714] sm:$0xf0]  ;;  %v7326_v48 = vld [vmem:[#allocation10 + $0x2f8] sm:$0xf0]  ;;  %v8204_v9 = vld [vmem:[#allocation10 + $0x9c8] sm:$0xf] }
 0x291   :  { %5090 = vmatpush.bf16.msrb.mxu3 %v7917_v31  ;;  %5053 = vmatpush.bf16.msrb.mxu0 %v7501_v22  ;;  %v8719_v31 = vld [vmem:[#allocation10 + $0xec] sm:$0xf]  ;;  %v4825_v4 = vpop.f32.mrf.mxu2  ;;  %v7853_v15 = vor.u32 %v8917_v63, %v7852_v59  ;;  %v7182_v22 = vld [vmem:[#allocation10 + $0x1d8] sm:$0xf0] }
 0x292   :  { %5016 = vmatpush.bf16.msra.mxu1 %v7085_v0  ;;  %v7073_v33 = vor.u32 %v8719_v31, %v7070_v1  ;;  %v7185_v34 = vor.u32 %v8747_v51, %v7182_v22  ;;  %v8865_v0 = vld [vmem:[#allocation10 + $0x574] sm:$0xf0]  ;;  %v8735_v4 = vld [vmem:[#allocation10 + $0x16c] sm:$0xf]  ;;  %v7612_v51 = vld [vmem:[#allocation10 + $0x528] sm:$0xf] }
 0x294   :  { %5078 = vmatpush.bf16.msrb.mxu2 %v7773_v17  ;;  %v8715_v17 = vld [vmem:[#allocation10 + $0xcc] sm:$0xf] }
 0x295   :  { %5091 = vmatpush.bf16.msrb.mxu3 %v7901_v8  ;;  %5054 = vmatpush.bf16.msrb.mxu0 %v7485_v43  ;;  %v7054_v8 = vld [vmem:[#allocation10 + $0xd8] sm:$0xf0]  ;;  %v8869_v43 = vld [vmem:[#allocation10 + $0x594] sm:$0xf0]  ;;  %v4836_v63 = vpop.f32.mrf.mxu3 }
 0x296   :  { %5061 = vmatpush.bf16.msrb.mxu1 %v7709_v61  ;;  %v7057_v30 = vor.u32 %v8715_v17, %v7054_v8  ;;  %v7661_v29 = vor.u32 %v8869_v43, %v7660_v13  ;;  %v8703_v61 = vld [vmem:[#allocation10 + $0x6c] sm:$0xf]  ;;  %v9537_v7 = vadd.f32 %v4836_v63, %v9530_v36  ;;  %v7629_v17 = vor.u32 %v8861_v11, %v7628_v60  ;;  %v7996_v36 = vld [vmem:[#allocation10 + $0x828] sm:$0xf]  ;;  %v8853_v13 = vld [vmem:[#allocation10 + $0x514] sm:$0xf0] }
 0x297   :  { %5017 = vmatmul.bf16.vlgmr.msra.gmra.mxu1 %v9465_v25  ;;  %v8013_v8 = vor.u32 %v8957_v27, %v8012_v12  ;;  %v7980_v43 = vld [vmem:[#allocation10 + $0x808] sm:$0xf]  ;;  %v7582_v63 = vld [vmem:[#allocation10 + $0x4f8] sm:$0xf0] }
 0x298   :  { %5079 = vmatpush.bf16.msrb.mxu2 %v7757_v39  ;;  %v7038_v39 = vld [vmem:[#allocation10 + $0xb8] sm:$0xf0] }
 0x299   :  { %5092 = vmatpush.bf16.msrb.mxu3 %v7885_v40  ;;  %5055 = vmatpush.bf16.msrb.mxu0 %v7469_v57  ;;  %v7677_v40 = vor.u32 %v8873_v10, %v7676_v23  ;;  %v7041_v46 = vor.u32 %v8711_v37, %v7038_v39  ;;  %v8028_v57 = vld [vmem:[#allocation10 + $0x868] sm:$0xf]  ;;  %v8857_v23 = vld [vmem:[#allocation10 + $0x534] sm:$0xf0]  ;;  %v8727_v37 = vld [vmem:[#allocation10 + $0x12c] sm:$0xf] }
 0x29a   :  { %5062 = vmatpush.bf16.msrb.mxu1 %v7693_v19  ;;  %v8029_v1 = vor.u32 %v8961_v58, %v8028_v57  ;;  %v8731_v19 = vld [vmem:[#allocation10 + $0x14c] sm:$0xf]  ;;  %v8953_v10 = vld [vmem:[#allocation10 + $0x834] sm:$0xf0]  ;;  %v7310_v60 = vld [vmem:[#allocation10 + $0x2d8] sm:$0xf0] }
 0x29b   :  { %v8723_v57 = vld [vmem:[#allocation10 + $0x10c] sm:$0xf] }
 0x29c   :  { %5080 = vmatpush.bf16.msrb.mxu2 %v7741_v21  ;;  %5056 = vmatmul.bf16.vlgmr.msrb.gmra.mxu0 %v9488_v32  ;;  %v7150_v21 = vld [vmem:[#allocation10 + $0x198] sm:$0xf0] }
 0x29d   :  { %5093 = vmatpush.bf16.msrb.mxu3 %v7869_v52  ;;  %5100 = vmatpush.bf16.msra.mxu0 %v8093_v62  ;;  %v7644_v52 = vld [vmem:[#allocation10 + $0x568] sm:$0xf]  ;;  %v7153_v59 = vor.u32 %v8739_v56, %v7150_v21  ;;  %v7006_v62 = vld [vmem:[#allocation10 + $0x78] sm:$0xf0]  ;;  %v4838_v39 = vpop.f32.mrf.mxu3  ;;  %v7597_v56 = vor.u32 %v8853_v13, %v7596_v42  ;;  %v7981_v21 = vor.u32 %v8949_v44, %v7980_v43  ;;  %v8997_v43 = vld [vmem:[#allocation10 + $0x994] sm:$0xf0] }
 0x29e   :  { %5063 = vmatpush.bf16.msrb.mxu1 %v7677_v40  ;;  %v7645_v31 = vor.u32 %v8865_v0, %v7644_v52  ;;  %v7613_v40 = vor.u32 %v8857_v23, %v7612_v51  ;;  %v8691_v52 = vld [vmem:[#allocation10 + $0xc] sm:$0xf]  ;;  %v6958_v0 = vld [vmem:[#allocation10 + $0x18] sm:$0xf0]  ;;  %v8172_v42 = vld [vmem:[#allocation10 + $0x988] sm:$0xf] }
 0x29f   :  { %v6961_v12 = vor.u32 %v8691_v52, %v6958_v0  ;;  %v8875_v51 = vld [vmem:[#allocation10 + $0x5cc] sm:$0xf]  ;;  %v7694_v23 = vld [vmem:[#allocation10 + $0x5d8] sm:$0xf0]  ;;  %v8156_v52 = vld [vmem:[#allocation10 + $0x968] sm:$0xf] }
 0x2a0   :  { %5081 = vmatpush.bf16.msrb.mxu2 %v7725_v14  ;;  %v7009_v14 = vor.u32 %v8703_v61, %v7006_v62  ;;  %v7086_v61 = vld [vmem:[#allocation10 + $0x118] sm:$0xf0]  ;;  %v8847_v62 = vld [vmem:[#allocation10 + $0x4ec] sm:$0xf]  ;;  %v8993_v0 = vld [vmem:[#allocation10 + $0x974] sm:$0xf0] }
 0x2a1   :  { %5094 = vmatpush.bf16.msrb.mxu3 %v7853_v15  ;;  %5101 = vmatpush.bf16.msra.mxu0 %v8077_v20  ;;  %v7137_v15 = vor.u32 %v8735_v4, %v7134_v6  ;;  %v7118_v20 = vld [vmem:[#allocation10 + $0x158] sm:$0xf0]  ;;  %v9005_v4 = vld [vmem:[#allocation10 + $0x9d4] sm:$0xf0]  ;;  %v8779_v6 = vld [vmem:[#allocation10 + $0x2cc] sm:$0xf]  ;;  %v7089_v27 = vor.u32 %v8723_v57, %v7086_v61 }
 0x2a2   :  { %5064 = vmatpush.bf16.msrb.mxu1 %v7661_v29  ;;  %v7121_v28 = vor.u32 %v8731_v19, %v7118_v20  ;;  %v8205_v19 = vor.u32 %v9005_v4, %v8204_v9  ;;  %v7313_v20 = vor.u32 %v8779_v6, %v7310_v60  ;;  %v8771_v44 = vld [vmem:[#allocation10 + $0x28c] sm:$0xf]  ;;  %v7518_v61 = vld [vmem:[#allocation10 + $0x478] sm:$0xf0]  ;;  %v8140_v9 = vld [vmem:[#allocation10 + $0x948] sm:$0xf] }
 0x2a3   :  { %5082 = vmatmul.bf16.vlgmr.msrb.gmra.mxu2 %v9494_v53  ;;  %v8767_v57 = vld [vmem:[#allocation10 + $0x26c] sm:$0xf]  ;;  %v8989_v6 = vld [vmem:[#allocation10 + $0x954] sm:$0xf0] }
 0x2a4   :  { %5126 = vmatpush.bf16.msra.mxu2 %v7073_v33  ;;  %5095 = vmatmul.bf16.vlgmr.msrb.gmra.mxu3 %v9498_v35  ;;  %v8699_v33 = vld [vmem:[#allocation10 + $0x4c] sm:$0xf] }
 0x2a5   :  { %5139 = vmatpush.bf16.msra.mxu3 %v7201_v16  ;;  %5102 = vmatpush.bf16.msra.mxu0 %v8061_v41  ;;  %v6990_v16 = vld [vmem:[#allocation10 + $0x58] sm:$0xf0]  ;;  %v7997_v41 = vor.u32 %v8953_v10, %v7996_v36  ;;  %v8188_v36 = vld [vmem:[#allocation10 + $0x9a8] sm:$0xf]  ;;  %v8775_v10 = vld [vmem:[#allocation10 + $0x2ac] sm:$0xf] }
 0x2a6   :  { %5065 = vmatpush.bf16.msrb.mxu1 %v7645_v31  ;;  %v4875_v22 = vpop.f32.mrf.mxu2  ;;  %v6993_v26 = vor.u32 %v8699_v33, %v6990_v16  ;;  %v8879_v31 = vld [vmem:[#allocation10 + $0x5ec] sm:$0xf] }
 0x2a7   :  { %v4876_v11 = vadd.f32 %v4875_v22, %v3129_v49  ;;  %v8843_v16 = vld [vmem:[#allocation10 + $0x4cc] sm:$0xf]  ;;  %v9001_v22 = vld [vmem:[#allocation10 + $0x9b4] sm:$0xf0] }
 0x2a8   :  { %5127 = vmatpush.bf16.msra.mxu2 %v7057_v30  ;;  %v8695_v30 = vld [vmem:[#allocation10 + $0x2c] sm:$0xf]  ;;  %v8189_v39 = vor.u32 %v9001_v22, %v8188_v36  ;;  %v8985_v36 = vld [vmem:[#allocation10 + $0x934] sm:$0xf0] }
 0x2a9   :  { %5140 = vmatpush.bf16.msra.mxu3 %v7185_v34  ;;  %5103 = vmatpush.bf16.msra.mxu0 %v8045_v2  ;;  %v6974_v34 = vld [vmem:[#allocation10 + $0x38] sm:$0xf0]  ;;  %v7105_v2 = vor.u32 %v8727_v37, %v7102_v55  ;;  %v8763_v60 = vld [vmem:[#allocation10 + $0x24c] sm:$0xf] }
 0x2aa   :  { %5066 = vmatpush.bf16.msrb.mxu1 %v7629_v17  ;;  %v6977_v29 = vor.u32 %v8695_v30, %v6974_v34  ;;  %v7566_v17 = vld [vmem:[#allocation10 + $0x4d8] sm:$0xf0]  ;;  %v7697_v30 = vor.u32 %v8875_v51, %v7694_v23  ;;  %v8839_v34 = vld [vmem:[#allocation10 + $0x4ac] sm:$0xf]  ;;  %v8124_v51 = vld [vmem:[#allocation10 + $0x928] sm:$0xf] }
 0x2ab   :  { %v7550_v37 = vld [vmem:[#allocation10 + $0x4b8] sm:$0xf0]  ;;  %v8759_v22 = vld [vmem:[#allocation10 + $0x22c] sm:$0xf] }
 0x2ac   :  { %5128 = vmatpush.bf16.msra.mxu2 %v7041_v46  ;;  %v9009_v46 = vld [vmem:[#allocation10 + $0x9f4] sm:$0xf0]  ;;  %v7678_v55 = vld [vmem:[#allocation10 + $0x5b8] sm:$0xf0] }
 0x2ad   :  { %5141 = vmatpush.bf16.msra.mxu3 %v7169_v47  ;;  %5104 = vmatpush.bf16.msra.mxu0 %v8029_v1  ;;  %v8783_v47 = vld [vmem:[#allocation10 + $0x2ec] sm:$0xf]  ;;  %v7710_v1 = vld [vmem:[#allocation10 + $0x5f8] sm:$0xf0] }
 0x2ae   :  { %5067 = vmatpush.bf16.msrb.mxu1 %v7613_v40  ;;  %v4877_v58 = vpop.f32.mrf.mxu2  ;;  %v7713_v33 = vor.u32 %v8879_v31, %v7710_v1  ;;  %v8863_v31 = vld [vmem:[#allocation10 + $0x56c] sm:$0xf]  ;;  %v7646_v1 = vld [vmem:[#allocation10 + $0x578] sm:$0xf0] }
 0x2af   :  { %v4849_v13 = vpop.f32.mrf.mxu0  ;;  %v7262_v58 = vld [vmem:[#allocation10 + $0x278] sm:$0xf0] }
 0x2b0   :  { %5129 = vmatpush.bf16.msra.mxu2 %v7025_v5  ;;  %v8221_v5 = vor.u32 %v9009_v46, %v8220_v45  ;;  %v7278_v45 = vld [vmem:[#allocation10 + $0x298] sm:$0xf0]  ;;  %v9547_v46 = vadd.f32 %v4849_v13, %v9537_v7 }
 0x2b1   :  { %5142 = vmatpush.bf16.msra.mxu3 %v7153_v59  ;;  %5105 = vmatpush.bf16.msra.mxu0 %v8013_v8  ;;  %v7329_v59 = vor.u32 %v8783_v47, %v7326_v48  ;;  %v7553_v48 = vor.u32 %v8839_v34, %v7550_v37  ;;  %v7486_v34 = vld [vmem:[#allocation10 + $0x438] sm:$0xf0]  ;;  %v8855_v37 = vld [vmem:[#allocation10 + $0x52c] sm:$0xf] }
 0x2b2   :  { %5068 = vmatpush.bf16.msrb.mxu1 %v7597_v56  ;;  %v8173_v56 = vor.u32 %v8997_v43, %v8172_v42  ;;  %v8981_v42 = vld [vmem:[#allocation10 + $0x914] sm:$0xf0]  ;;  %v8755_v43 = vld [vmem:[#allocation10 + $0x20c] sm:$0xf] }
 0x2b4   :  { %5130 = vmatpush.bf16.msra.mxu2 %v7009_v14  ;;  %v4888_v14 = vpop.f32.mrf.mxu3 }
 0x2b5   :  { %5143 = vmatpush.bf16.msra.mxu3 %v7137_v15  ;;  %5106 = vmatpush.bf16.msra.mxu0 %v7997_v41  ;;  %v7585_v15 = vor.u32 %v8847_v62, %v7582_v63  ;;  %v9540_v8 = vadd.f32 %v4888_v14, %v4876_v11  ;;  %v8871_v41 = vld [vmem:[#allocation10 + $0x5ac] sm:$0xf]  ;;  %v8157_v62 = vor.u32 %v8993_v0, %v8156_v52  ;;  %v7246_v11 = vld [vmem:[#allocation10 + $0x258] sm:$0xf0] }
 0x2b6   :  { %5113 = vmatpush.bf16.msra.mxu1 %v8221_v5  ;;  %v7681_v49 = vor.u32 %v8871_v41, %v7678_v55  ;;  %v7265_v63 = vor.u32 %v8767_v57, %v7262_v58  ;;  %v8827_v14 = vld [vmem:[#allocation10 + $0x44c] sm:$0xf]  ;;  %v7614_v41 = vld [vmem:[#allocation10 + $0x538] sm:$0xf0]  ;;  %v8108_v55 = vld [vmem:[#allocation10 + $0x908] sm:$0xf] }
 0x2b7   :  { %5069 = vmatmul.bf16.vlgmr.msrb.gmra.mxu1 %v9490_v38  ;;  %v4851_v4 = vpop.f32.mrf.mxu0  ;;  %v8819_v52 = vld [vmem:[#allocation10 + $0x40c] sm:$0xf]  ;;  %v7470_v0 = vld [vmem:[#allocation10 + $0x418] sm:$0xf0] }
 0x2b8   :  { %5131 = vmatpush.bf16.msra.mxu2 %v6993_v26  ;;  %v7294_v26 = vld [vmem:[#allocation10 + $0x2b8] sm:$0xf0]  ;;  %v8851_v57 = vld [vmem:[#allocation10 + $0x50c] sm:$0xf] }
 0x2b9   :  { %5144 = vmatpush.bf16.msra.mxu3 %v7121_v28  ;;  %5107 = vmatpush.bf16.msra.mxu0 %v7981_v21  ;;  %v7569_v28 = vor.u32 %v8843_v16, %v7566_v17  ;;  %v7297_v40 = vor.u32 %v8775_v10, %v7294_v26  ;;  %v8867_v21 = vld [vmem:[#allocation10 + $0x58c] sm:$0xf]  ;;  %v8141_v16 = vor.u32 %v8989_v6, %v8140_v9  ;;  %v7230_v10 = vld [vmem:[#allocation10 + $0x238] sm:$0xf0] }
 0x2ba   :  { %5114 = vmatpush.bf16.msra.mxu1 %v8205_v19  ;;  %v7249_v17 = vor.u32 %v8763_v60, %v7246_v11  ;;  %v8859_v19 = vld [vmem:[#allocation10 + $0x54c] sm:$0xf]  ;;  %v7822_v4 = vld [vmem:[#allocation10 + $0x6d8] sm:$0xf0]  ;;  %v7473_v6 = vor.u32 %v8819_v52, %v7470_v0 }
 0x2bb   :  { %v8907_v9 = vld [vmem:[#allocation10 + $0x6cc] sm:$0xf]  ;;  %v7774_v52 = vld [vmem:[#allocation10 + $0x678] sm:$0xf0] }
 0x2bc   :  { %5132 = vmatpush.bf16.msra.mxu2 %v6977_v29  ;;  %5108 = vmatmul.bf16.vlgmr.msra.gmra.mxu0 %v9506_v24  ;;  %v4890_v47 = vpop.f32.mrf.mxu3  ;;  %v8835_v29 = vld [vmem:[#allocation10 + $0x48c] sm:$0xf] }
 0x2bd   :  { %5145 = vmatpush.bf16.msra.mxu3 %v7105_v2  ;;  %5152 = vmatpush.bf16.msrb.mxu0 %v7329_v59  ;;  %v7534_v2 = vld [vmem:[#allocation10 + $0x498] sm:$0xf0]  ;;  %v8831_v59 = vld [vmem:[#allocation10 + $0x46c] sm:$0xf] }
 0x2be   :  { %5115 = vmatpush.bf16.msra.mxu1 %v8189_v39  ;;  %v7537_v7 = vor.u32 %v8835_v29, %v7534_v2  ;;  %v8125_v39 = vor.u32 %v8985_v36, %v8124_v51  ;;  %v7838_v29 = vld [vmem:[#allocation10 + $0x6f8] sm:$0xf0]  ;;  %v8807_v51 = vld [vmem:[#allocation10 + $0x3ac] sm:$0xf] }
 0x2bf   :  { %v4901_v13 = vpop.f32.mrf.mxu0  ;;  %v7422_v36 = vld [vmem:[#allocation10 + $0x3b8] sm:$0xf0] }
 0x2c0   :  { %5133 = vmatpush.bf16.msra.mxu2 %v6961_v12  ;;  %v7521_v12 = vor.u32 %v8831_v59, %v7518_v61  ;;  %v9554_v47 = vadd.f32 %v4901_v13, %v9540_v8  ;;  %v7598_v8 = vld [vmem:[#allocation10 + $0x518] sm:$0xf0]  ;;  %v8975_v59 = vld [vmem:[#allocation10 + $0x8ec] sm:$0xf] }
 0x2c1   :  { %5146 = vmatpush.bf16.msra.mxu3 %v7089_v27  ;;  %5153 = vmatpush.bf16.msrb.mxu0 %v7313_v20  ;;  %v7649_v27 = vor.u32 %v8863_v31, %v7646_v1  ;;  %v7630_v20 = vld [vmem:[#allocation10 + $0x558] sm:$0xf0]  ;;  %v8811_v31 = vld [vmem:[#allocation10 + $0x3cc] sm:$0xf]  ;;  %v7601_v60 = vor.u32 %v8851_v57, %v7598_v8 }
 0x2c2   :  { %5116 = vmatpush.bf16.msra.mxu1 %v8173_v56  ;;  %v7617_v56 = vor.u32 %v8855_v37, %v7614_v41  ;;  %v8094_v61 = vld [vmem:[#allocation10 + $0x8f8] sm:$0xf0]  ;;  %v7425_v37 = vor.u32 %v8807_v51, %v7422_v36  ;;  %v8999_v41 = vld [vmem:[#allocation10 + $0x9ac] sm:$0xf] }
 0x2c3   :  { %5134 = vmatmul.bf16.vlgmr.msra.gmra.mxu2 %v9463_v18  ;;  %v7281_v18 = vor.u32 %v8771_v44, %v7278_v45  ;;  %v7214_v44 = vld [vmem:[#allocation10 + $0x218] sm:$0xf0]  ;;  %v8815_v45 = vld [vmem:[#allocation10 + $0x3ec] sm:$0xf]  ;;  %v8097_v11 = vor.u32 %v8975_v59, %v8094_v61 }
 0x2c4   :  { %5178 = vmatpush.bf16.msrb.mxu2 %v7585_v15  ;;  %5147 = vmatmul.bf16.vlgmr.msra.gmra.mxu3 %v9465_v25  ;;  %v7662_v25 = vld [vmem:[#allocation10 + $0x598] sm:$0xf0]  ;;  %v8899_v13 = vld [vmem:[#allocation10 + $0x68c] sm:$0xf] }
 0x2c5   :  { %5191 = vmatpush.bf16.msrb.mxu3 %v7713_v33  ;;  %5154 = vmatpush.bf16.msrb.mxu0 %v7297_v40  ;;  %v7665_v5 = vor.u32 %v8867_v21, %v7662_v25  ;;  %v7502_v15 = vld [vmem:[#allocation10 + $0x458] sm:$0xf0]  ;;  %v7233_v40 = vor.u32 %v8759_v22, %v7230_v10  ;;  %v8109_v21 = vor.u32 %v8981_v42, %v8108_v55  ;;  %v8903_v22 = vld [vmem:[#allocation10 + $0x6ac] sm:$0xf] }
 0x2c6   :  { %5117 = vmatpush.bf16.msra.mxu1 %v8157_v62  ;;  %v9549_v33 = vpop.f32.mrf.mxu2  ;;  %v7505_v26 = vor.u32 %v8827_v14, %v7502_v15  ;;  %v7217_v25 = vor.u32 %v8755_v43, %v7214_v44  ;;  %v9007_v62 = vld [vmem:[#allocation10 + $0x9ec] sm:$0xf]  ;;  %v7438_v1 = vld [vmem:[#allocation10 + $0x3d8] sm:$0xf0] }
 0x2c7   :  { %v9551_v23 = vpop.f32.mrf.mxu3  ;;  %v8971_v14 = vld [vmem:[#allocation10 + $0x8cc] sm:$0xf]  ;;  %v8078_v15 = vld [vmem:[#allocation10 + $0x8d8] sm:$0xf0] }
 0x2c8   :  { %5179 = vmatpush.bf16.msrb.mxu2 %v7569_v28  ;;  %v7633_v28 = vor.u32 %v8859_v19, %v7630_v20  ;;  %v9003_v19 = vld [vmem:[#allocation10 + $0x9cc] sm:$0xf]  ;;  %v8206_v20 = vld [vmem:[#allocation10 + $0x9d8] sm:$0xf0] }
 0x2c9   :  { %5192 = vmatpush.bf16.msrb.mxu3 %v7697_v30  ;;  %5155 = vmatpush.bf16.msrb.mxu0 %v7281_v18  ;;  %v8823_v30 = vld [vmem:[#allocation10 + $0x42c] sm:$0xf]  ;;  %v7806_v10 = vld [vmem:[#allocation10 + $0x6b8] sm:$0xf0] }
 0x2ca   :  { %5118 = vmatpush.bf16.msra.mxu1 %v8141_v16  ;;  %v7489_v2 = vor.u32 %v8823_v30, %v7486_v34  ;;  %v7441_v16 = vor.u32 %v8811_v31, %v7438_v1  ;;  %v8967_v30 = vld [vmem:[#allocation10 + $0x8ac] sm:$0xf]  ;;  %v8062_v34 = vld [vmem:[#allocation10 + $0x8b8] sm:$0xf0] }
 0x2cb   :  { %v8190_v55 = vld [vmem:[#allocation10 + $0x9b8] sm:$0xf0]  ;;  %v8065_v44 = vor.u32 %v8967_v30, %v8062_v34  ;;  %v8991_v61 = vld [vmem:[#allocation10 + $0x96c] sm:$0xf] }
 0x2cc   :  { %5180 = vmatpush.bf16.msrb.mxu2 %v7553_v48  ;;  %v7454_v48 = vld [vmem:[#allocation10 + $0x3f8] sm:$0xf0]  ;;  %v8891_v1 = vld [vmem:[#allocation10 + $0x64c] sm:$0xf] }
 0x2cd   :  { %5193 = vmatpush.bf16.msrb.mxu3 %v7681_v49  ;;  %5156 = vmatpush.bf16.msrb.mxu0 %v7265_v63  ;;  %v8911_v49 = vld [vmem:[#allocation10 + $0x6ec] sm:$0xf]  ;;  %v8222_v63 = vld [vmem:[#allocation10 + $0x9f8] sm:$0xf0] }
 0x2ce   :  { %5119 = vmatpush.bf16.msra.mxu1 %v8125_v39  ;;  %v4929_v18 = vpop.f32.mrf.mxu2  ;;  %v7809_v39 = vor.u32 %v8903_v22, %v7806_v10  ;;  %v7406_v42 = vld [vmem:[#allocation10 + $0x398] sm:$0xf0]  ;;  %v8887_v36 = vld [vmem:[#allocation10 + $0x62c] sm:$0xf] }
 0x2cf   :  { %v4942_v58 = vpop.f32.mrf.mxu3  ;;  %v7790_v43 = vld [vmem:[#allocation10 + $0x698] sm:$0xf0]  ;;  %v8995_v18 = vld [vmem:[#allocation10 + $0x98c] sm:$0xf] }
 0x2d0   :  { %5181 = vmatpush.bf16.msrb.mxu2 %v7537_v7  ;;  %v7457_v7 = vor.u32 %v8815_v45, %v7454_v48  ;;  %v8193_v45 = vor.u32 %v8999_v41, %v8190_v55  ;;  %v8959_v58 = vld [vmem:[#allocation10 + $0x86c] sm:$0xf]  ;;  %v7374_v31 = vld [vmem:[#allocation10 + $0x358] sm:$0xf0] }
 0x2d1   :  { %5194 = vmatpush.bf16.msrb.mxu3 %v7665_v5  ;;  %5157 = vmatpush.bf16.msrb.mxu0 %v7249_v17  ;;  %v7841_v5 = vor.u32 %v8911_v49, %v7838_v29  ;;  %v7825_v17 = vor.u32 %v8907_v9, %v7822_v4  ;;  %v8963_v49 = vld [vmem:[#allocation10 + $0x88c] sm:$0xf]  ;;  %v8046_v29 = vld [vmem:[#allocation10 + $0x898] sm:$0xf0] }
 0x2d2   :  { %5120 = vmatpush.bf16.msra.mxu1 %v8109_v21  ;;  %v8174_v21 = vld [vmem:[#allocation10 + $0x998] sm:$0xf0]  ;;  %v8049_v0 = vor.u32 %v8963_v49, %v8046_v29  ;;  %v8787_v55 = vld [vmem:[#allocation10 + $0x30c] sm:$0xf] }
 0x2d3   :  { %v8177_v57 = vor.u32 %v8995_v18, %v8174_v21  ;;  %v7758_v9 = vld [vmem:[#allocation10 + $0x658] sm:$0xf0] }
 0x2d4   :  { %5182 = vmatpush.bf16.msrb.mxu2 %v7521_v12  ;;  %v8225_v12 = vor.u32 %v9007_v62, %v8222_v63  ;;  %v8158_v62 = vld [vmem:[#allocation10 + $0x978] sm:$0xf0]  ;;  %v8795_v63 = vld [vmem:[#allocation10 + $0x34c] sm:$0xf] }
 0x2d5   :  { %5195 = vmatpush.bf16.msrb.mxu3 %v7649_v27  ;;  %5158 = vmatpush.bf16.msrb.mxu0 %v7233_v40  ;;  %v4903_v27 = vpop.f32.mrf.mxu0  ;;  %v9558_v40 = vpop.f32.mrf.mxu1  ;;  %v7358_v51 = vld [vmem:[#allocation10 + $0x338] sm:$0xf0] }
 0x2d6   :  { %5165 = vmatpush.bf16.msrb.mxu1 %v7457_v7  ;;  %v8030_v7 = vld [vmem:[#allocation10 + $0x878] sm:$0xf0] }
 0x2d7   :  { %5121 = vmatmul.bf16.vlgmr.msra.gmra.mxu1 %v9513_v3  ;;  %v8033_v4 = vor.u32 %v8959_v58, %v8030_v7  ;;  %v7742_v22 = vld [vmem:[#allocation10 + $0x638] sm:$0xf0]  ;;  %v8979_v58 = vld [vmem:[#allocation10 + $0x90c] sm:$0xf] }
 0x2d8   :  { %5183 = vmatpush.bf16.msrb.mxu2 %v7505_v26  ;;  %v8081_v26 = vor.u32 %v8971_v14, %v8078_v15  ;;  %v7377_v15 = vor.u32 %v8795_v63, %v7374_v31  ;;  %v7998_v30 = vld [vmem:[#allocation10 + $0x838] sm:$0xf0]  ;;  %v8939_v7 = vld [vmem:[#allocation10 + $0x7cc] sm:$0xf]  ;;  %v9016_v31 = vld [vmem:[#allocation13 + $0x30] sm:$0xff] }
 0x2d9   :  { %5196 = vmatpush.bf16.msrb.mxu3 %v7633_v28  ;;  %5159 = vmatpush.bf16.msrb.mxu0 %v7217_v25  ;;  %v8209_v28 = vor.u32 %v9003_v19, %v8206_v20  ;;  %v7390_v25 = vld [vmem:[#allocation10 + $0x378] sm:$0xf0]  ;;  %v8791_v20 = vld [vmem:[#allocation10 + $0x32c] sm:$0xf] }
 0x2da   :  { %5166 = vmatpush.bf16.msrb.mxu1 %v7441_v16  ;;  %v7761_v16 = vor.u32 %v8891_v1, %v7758_v9  ;;  %v8142_v19 = vld [vmem:[#allocation10 + $0x958] sm:$0xf0]  ;;  %v7361_v34 = vor.u32 %v8791_v20, %v7358_v51  ;;  %v8935_v1 = vld [vmem:[#allocation10 + $0x7ac] sm:$0xf] }
 0x2db   :  { %v8126_v41 = vld [vmem:[#allocation10 + $0x938] sm:$0xf0] }
 0x2dc   :  { %5184 = vmatpush.bf16.msrb.mxu2 %v7489_v2  ;;  %5160 = vmatmul.bf16.vlgmr.msrb.gmra.mxu0 %v9471_v50  ;;  %v8803_v50 = vld [vmem:[#allocation10 + $0x38c] sm:$0xf]  ;;  %v7966_v49 = vld [vmem:[#allocation10 + $0x7f8] sm:$0xf0] }
 0x2dd   :  { %5197 = vmatpush.bf16.msrb.mxu3 %v7617_v56  ;;  %5204 = vmatpush.bf16.msra.mxu0 %v7841_v5  ;;  %v9562_v48 = vpop.f32.mrf.mxu0  ;;  %v7409_v2 = vor.u32 %v8803_v50, %v7406_v42  ;;  %v7793_v56 = vor.u32 %v8899_v13, %v7790_v43  ;;  %v4864_v59 = vpop.f32.mrf.mxu1  ;;  %v7342_v42 = vld [vmem:[#allocation10 + $0x318] sm:$0xf0]  ;;  %v8883_v13 = vld [vmem:[#allocation10 + $0x60c] sm:$0xf] }
 0x2de   :  { %5167 = vmatpush.bf16.msrb.mxu1 %v7425_v37  ;;  %v7745_v37 = vor.u32 %v8887_v36, %v7742_v22  ;;  %v7726_v43 = vld [vmem:[#allocation10 + $0x618] sm:$0xf0] }
 0x2df   :  { %v7934_v9 = vld [vmem:[#allocation10 + $0x7b8] sm:$0xf0] }
 0x2e0   :  { %5185 = vmatpush.bf16.msrb.mxu2 %v7473_v6  ;;  %v8161_v6 = vor.u32 %v8991_v61, %v8158_v62  ;;  %v9013_v20 = vld [vmem:[#allocation13 + $0x18] sm:$0xff] }
 0x2e1   :  { %5198 = vmatpush.bf16.msrb.mxu3 %v7601_v60  ;;  %5205 = vmatpush.bf16.msra.mxu0 %v7825_v17  ;;  %v8987_v17 = vld [vmem:[#allocation10 + $0x94c] sm:$0xf] }
 0x2e2   :  { %5168 = vmatpush.bf16.msrb.mxu1 %v7409_v2 }
 0x2e3   :  { %5186 = vmatmul.bf16.vlgmr.msrb.gmra.mxu2 %v9488_v32  ;;  %v8799_v32 = vld [vmem:[#allocation10 + $0x36c] sm:$0xf] }
 0x2e4   :  { %5230 = vmatpush.bf16.msra.mxu2 %v8097_v11  ;;  %5199 = vmatmul.bf16.vlgmr.msrb.gmra.mxu3 %v9490_v38  ;;  %v8895_v38 = vld [vmem:[#allocation10 + $0x66c] sm:$0xf]  ;;  %v7393_v5 = vor.u32 %v8799_v32, %v7390_v25  ;;  %v7345_v32 = vor.u32 %v8787_v55, %v7342_v42  ;;  %v7729_v25 = vor.u32 %v8883_v13, %v7726_v43  ;;  %v7854_v55 = vld [vmem:[#allocation10 + $0x718] sm:$0xf0]  ;;  %v9010_v42 = vld [vmem:[#allocation13] sm:$0xff] }
 0x2e5   :  { %5243 = vmatpush.bf16.msra.mxu3 %v8225_v12  ;;  %5206 = vmatpush.bf16.msra.mxu0 %v7809_v39  ;;  %v7777_v8 = vor.u32 %v8895_v38, %v7774_v52  ;;  %v4955_v60 = vpop.f32.mrf.mxu0  ;;  %v8955_v11 = vld [vmem:[#allocation10 + $0x84c] sm:$0xf]  ;;  %v8014_v12 = vld [vmem:[#allocation10 + $0x858] sm:$0xf0]  ;;  %v4914_v50 = vpop.f32.mrf.mxu1 }
 0x2e6   :  { %5169 = vmatpush.bf16.msrb.mxu1 %v7393_v5  ;;  %v9564_v27 = vpop.f32.mrf.mxu2  ;;  %v8017_v10 = vor.u32 %v8955_v11, %v8014_v12  ;;  %v8983_v39 = vld [vmem:[#allocation10 + $0x92c] sm:$0xf]  ;;  %v9017_v38 = vld [vmem:[#allocation13 + $0x38] sm:$0xff] }
 0x2e7   :  { %v9566_v14 = vpop.f32.mrf.mxu3  ;;  %v8129_v2 = vor.u32 %v8983_v39, %v8126_v41  ;;  %v8947_v52 = vld [vmem:[#allocation10 + $0x80c] sm:$0xf]  ;;  %v7950_v5 = vld [vmem:[#allocation10 + $0x7d8] sm:$0xf0] }
 0x2e8   :  { %5231 = vmatpush.bf16.msra.mxu2 %v8081_v26  ;;  %v8145_v26 = vor.u32 %v8987_v17, %v8142_v19  ;;  %v7953_v63 = vor.u32 %v8939_v7, %v7950_v5  ;;  %v7918_v60 = vld [vmem:[#allocation10 + $0x798] sm:$0xf0]  ;;  %v9011_v39 = vld [vmem:[#allocation13 + $0x8] sm:$0xff]  ;;  %v9032_v7 = vld [vmem:[#allocation13 + $0xb0] sm:$0xff] }
 0x2e9   :  { %5244 = vmatpush.bf16.msra.mxu3 %v8209_v28  ;;  %5207 = vmatpush.bf16.msra.mxu0 %v7793_v56  ;;  %v8951_v28 = vld [vmem:[#allocation10 + $0x82c] sm:$0xf] }
 0x2ea   :  { %5170 = vmatpush.bf16.msrb.mxu1 %v7377_v15  ;;  %v8001_v29 = vor.u32 %v8951_v28, %v7998_v30  ;;  %v8915_v41 = vld [vmem:[#allocation10 + $0x70c] sm:$0xf] }
 0x2ec   :  { %5232 = vmatpush.bf16.msra.mxu2 %v8065_v44  ;;  %v4915_v44 = vadd.f32 %v4914_v50, %v9554_v47  ;;  %v8110_v47 = vld [vmem:[#allocation10 + $0x918] sm:$0xf0]  ;;  %v7857_v50 = vor.u32 %v8915_v41, %v7854_v55  ;;  %v9040_v41 = vld [vmem:[#allocation13 + $0xf0] sm:$0xff] }
 0x2ed   :  { %5245 = vmatpush.bf16.msra.mxu3 %v8193_v45  ;;  %5208 = vmatpush.bf16.msra.mxu0 %v7777_v8  ;;  %v8943_v45 = vld [vmem:[#allocation10 + $0x7ec] sm:$0xf]  ;;  %v4916_v62 = vpop.f32.mrf.mxu1 }
 0x2ee   :  { %5171 = vmatpush.bf16.msrb.mxu1 %v7361_v34  ;;  %v4928_v56 = vadd.f32 %v9549_v33, %v4915_v44  ;;  %v4981_v18 = vpop.f32.mrf.mxu2  ;;  %v8113_v33 = vor.u32 %v8979_v58, %v8110_v47  ;;  %v8919_v34 = vld [vmem:[#allocation10 + $0x72c] sm:$0xf]  ;;  %v9020_v47 = vld [vmem:[#allocation13 + $0x50] sm:$0xff]  ;;  %v9030_v62 = vld [vmem:[#allocation13 + $0xa0] sm:$0xff] }
 0x2ef   :  { %v4994_v21 = vpop.f32.mrf.mxu3 }
 0x2f0   :  { %5233 = vmatpush.bf16.msra.mxu2 %v8049_v0  ;;  %v7969_v0 = vor.u32 %v8943_v45, %v7966_v49  ;;  %v4941_v8 = vadd.f32 %v9551_v23, %v4928_v56  ;;  %v7937_v23 = vor.u32 %v8935_v1, %v7934_v9  ;;  %v9025_v45 = vld [vmem:[#allocation13 + $0x78] sm:$0xff] }
 0x2f1   :  { %5246 = vmatpush.bf16.msra.mxu3 %v8177_v57  ;;  %5209 = vmatpush.bf16.msra.mxu0 %v7761_v16  ;;  %v7982_v57 = vld [vmem:[#allocation10 + $0x818] sm:$0xf0] }
 0x2f2   :  { %5172 = vmatpush.bf16.msrb.mxu1 %v7345_v32  ;;  %v7985_v59 = vor.u32 %v8947_v52, %v7982_v57  ;;  %v4954_v61 = vadd.f32 %v9562_v48, %v4941_v8  ;;  %v7902_v16 = vld [vmem:[#allocation10 + $0x778] sm:$0xf0]  ;;  %v9022_v32 = vld [vmem:[#allocation13 + $0x60] sm:$0xff] }
 0x2f3   :  { %v9021_v52 = vld [vmem:[#allocation13 + $0x58] sm:$0xff] }
 0x2f4   :  { %5234 = vmatpush.bf16.msra.mxu2 %v8033_v4  ;;  %v9015_v4 = vld [vmem:[#allocation13 + $0x28] sm:$0xff]  ;;  %v9029_v9 = vld [vmem:[#allocation13 + $0x98] sm:$0xff] }
 0x2f5   :  { %5247 = vmatpush.bf16.msra.mxu3 %v8161_v6  ;;  %5210 = vmatpush.bf16.msra.mxu0 %v7745_v37  ;;  %v8931_v6 = vld [vmem:[#allocation10 + $0x78c] sm:$0xf]  ;;  %v4966_v11 = vpop.f32.mrf.mxu1  ;;  %v7870_v37 = vld [vmem:[#allocation10 + $0x738] sm:$0xf0] }
 0x2f6   :  { %5217 = vmatpush.bf16.msra.mxu1 %v7969_v0  ;;  %v7921_v12 = vor.u32 %v8931_v6, %v7918_v60  ;;  %v4967_v15 = vadd.f32 %v4966_v11, %v4954_v61  ;;  %v9033_v0 = vld [vmem:[#allocation13 + $0xb8] sm:$0xff]  ;;  %v9018_v61 = vld [vmem:[#allocation13 + $0x40] sm:$0xff]  ;;  %v9027_v6 = vld [vmem:[#allocation13 + $0x88] sm:$0xff] }
 0x2f7   :  { %5173 = vmatmul.bf16.vlgmr.msrb.gmra.mxu1 %v9473_v54  ;;  %v9014_v54 = vld [vmem:[#allocation13 + $0x20] sm:$0xff] }
 0x2f8   :  { %5235 = vmatpush.bf16.msra.mxu2 %v8017_v10  ;;  %v4980_v17 = vadd.f32 %v9564_v27, %v4967_v15  ;;  %v7873_v27 = vor.u32 %v8919_v34, %v7870_v37  ;;  %v9026_v11 = vld [vmem:[#allocation13 + $0x80] sm:$0xff] }
 0x2f9   :  { %5248 = vmatpush.bf16.msra.mxu3 %v8145_v26  ;;  %5211 = vmatpush.bf16.msra.mxu0 %v7729_v25  ;;  %v5005_v48 = vpop.f32.mrf.mxu0  ;;  %v9012_v26 = vld [vmem:[#allocation13 + $0x10] sm:$0xff] }
 0x2fa   :  { %5218 = vmatpush.bf16.msra.mxu1 %v7953_v63  ;;  %v9578_v51 = vadd.f32 %v9566_v14, %v4980_v17  ;;  %v4863_v14 = vadd.f32 %v9558_v40, %v9547_v46  ;;  %v9023_v40 = vld [vmem:[#allocation13 + $0x68] sm:$0xff] }
 0x2fc   :  { %5236 = vmatpush.bf16.msra.mxu2 %v8001_v29  ;;  %5212 = vmatmul.bf16.vlgmr.msra.gmra.mxu0 %v9494_v53  ;;  %v8927_v53 = vld [vmem:[#allocation10 + $0x76c] sm:$0xf]  ;;  %v5256_v13 = vmax.f32 %v4863_v14, 0.0  ;;  %v9024_v29 = vld [vmem:[#allocation13 + $0x70] sm:$0xff]  ;;  %v5257_v63 = vmax.f32 %v9578_v51, 0.0 }
 0x2fd   :  { %5249 = vmatpush.bf16.msra.mxu3 %v8129_v2  ;;  %5524 = vmatpush.bf16.msrb.mxu0 %v9017_v38  ;;  %v7905_v19 = vor.u32 %v8927_v53, %v7902_v16  ;;  %v4968_v22 = vpop.f32.mrf.mxu1  ;;  %v9059_v2 = vld [vmem:[#allocation11] sm:$0xf] }
 0x2fe   :  { %5219 = vmatpush.bf16.msra.mxu1 %v7937_v23  ;;  %v5260_v49 = vpack.c.bf16 %v5256_v13, %v5256_v13  ;;  %v3130_v46 = vperm.slane %v9059_v2, 2  ;;  %v5261_v23 = vpack.c.bf16 %v5257_v63, %v5257_v63  ;;  %v9038_v13 = vld [vmem:[#allocation13 + $0xe0] sm:$0xff] }
 0x300   :  { %5237 = vmatpush.bf16.msra.mxu2 %v7985_v59  ;;  %v5006_v56 = vadd.f32 %v5005_v48, %v3130_v46  ;;  %v9031_v59 = vld [vmem:[#allocation13 + $0xa8] sm:$0xff] }
 0x301   :  { %5250 = vmatpush.bf16.msra.mxu3 %v8113_v33  ;;  %5525 = vmatpush.bf16.msrb.mxu0 %v9016_v31  ;;  %v5007_v36 = vpop.f32.mrf.mxu0  ;;  %v9019_v33 = vld [vmem:[#allocation13 + $0x48] sm:$0xff] }
 0x302   :  { %5220 = vmatpush.bf16.msra.mxu1 %v7921_v12  ;;  %v3131_v12 = vperm.slane %v9059_v2, 3  ;;  %v9035_v46 = vld [vmem:[#allocation13 + $0xc8] sm:$0xff] }
 0x303   :  { %5238 = vmatmul.bf16.vlgmr.msra.gmra.mxu2 %v9506_v24  ;;  %v8923_v24 = vld [vmem:[#allocation10 + $0x74c] sm:$0xf] }
 0x304   :  { %5251 = vmatmul.bf16.vlgmr.msra.gmra.mxu3 %v9513_v3  ;;  %v7886_v3 = vld [vmem:[#allocation10 + $0x758] sm:$0xf0]  ;;  %5550 = vmatpush.bf16.msrb.mxu2 %v9033_v0 }
 0x305   :  { %5526 = vmatpush.bf16.msrb.mxu0 %v9015_v4  ;;  %v7889_v10 = vor.u32 %v8923_v24, %v7886_v3  ;;  %v9028_v4 = vld [vmem:[#allocation13 + $0x90] sm:$0xff] }
 0x306   :  { %5221 = vmatpush.bf16.msra.mxu1 %v7905_v19  ;;  %v5031_v28 = vpop.f32.mrf.mxu2 }
 0x307   :  { %v5044_v30 = vpop.f32.mrf.mxu3 }
 0x308   :  { %5551 = vmatpush.bf16.msrb.mxu2 %v9032_v7 }
 0x309   :  { %5527 = vmatpush.bf16.msrb.mxu0 %v9014_v54 }
 0x30a   :  { %5222 = vmatpush.bf16.msra.mxu1 %v7889_v10 }
 0x30c   :  { %5552 = vmatpush.bf16.msrb.mxu2 %v9031_v59 }
 0x30d   :  { %5528 = vmatpush.bf16.msrb.mxu0 %v9013_v20 }
 0x30e   :  { %5223 = vmatpush.bf16.msra.mxu1 %v7873_v27  ;;  %v5033_v43 = vpop.f32.mrf.mxu2  ;;  %v9041_v27 = vld [vmem:[#allocation13 + $0xf8] sm:$0xff] }
 0x30f   :  { %v5046_v44 = vpop.f32.mrf.mxu3  ;;  %5563 = vmatpush.bf16.msrb.mxu3 %v9041_v27 }
 0x310   :  { %5553 = vmatpush.bf16.msrb.mxu2 %v9030_v62 }
 0x311   :  { %5529 = vmatpush.bf16.msrb.mxu0 %v9012_v26 }
 0x312   :  { %5224 = vmatpush.bf16.msra.mxu1 %v7857_v50 }
 0x313   :  { %5564 = vmatpush.bf16.msrb.mxu3 %v9040_v41 }
 0x314   :  { %v5018_v18 = vpop.f32.mrf.mxu1  ;;  %5554 = vmatpush.bf16.msrb.mxu2 %v9029_v9 }
 0x315   :  { %5530 = vmatpush.bf16.msrb.mxu0 %v9011_v39  ;;  %5225 = vmatmul.bf16.vlgmr.msra.gmra.mxu1 %v9498_v35  ;;  %v5019_v25 = vadd.f32 %v5018_v18, %v5006_v56 }
 0x316   :  { %5537 = vmatpush.bf16.msrb.mxu1 %v9025_v45  ;;  %v9037_v45 = vld [vmem:[#allocation13 + $0xd8] sm:$0xff] }
 0x317   :  { %v5032_v38 = vadd.f32 %v5031_v28, %v5019_v25 }
 0x318   :  { %5555 = vmatpush.bf16.msrb.mxu2 %v9028_v4 }
 0x319   :  { %5531 = vmatpush.bf16.msrb.mxu0 %v9010_v42  ;;  %v5057_v21 = vpop.f32.mrf.mxu0  ;;  %v5045_v57 = vadd.f32 %v5044_v30, %v5032_v38  ;;  %v9039_v42 = vld [vmem:[#allocation13 + $0xe8] sm:$0xff] }
 0x31a   :  { %5538 = vmatpush.bf16.msrb.mxu1 %v9024_v29  ;;  %5565 = vmatpush.bf16.msrb.mxu3 %v9039_v42 }
 0x31b   :  { %v5058_v20 = vadd.f32 %v5057_v21, %v5045_v57 }
 0x31c   :  { %5532 = vmatmul.bf16.vlgmr.msrb.gmra.mxu0 %v5260_v49  ;;  %v5020_v58 = vpop.f32.mrf.mxu1  ;;  %5556 = vmatpush.bf16.msrb.mxu2 %v9027_v6  ;;  %v9036_v49 = vld [vmem:[#allocation13 + $0xd0] sm:$0xff] }
 0x31e   :  { %5539 = vmatpush.bf16.msrb.mxu1 %v9023_v40  ;;  %5566 = vmatpush.bf16.msrb.mxu3 %v9038_v13  ;;  %v9034_v40 = vld [vmem:[#allocation13 + $0xc0] sm:$0xff] }
 0x320   :  { %5557 = vmatpush.bf16.msrb.mxu2 %v9026_v11 }
 0x321   :  { %v5059_v35 = vpop.f32.mrf.mxu0 }
 0x322   :  { %5540 = vmatpush.bf16.msrb.mxu1 %v9022_v32  ;;  %5567 = vmatpush.bf16.msrb.mxu3 %v9037_v45 }
 0x326   :  { %5541 = vmatpush.bf16.msrb.mxu1 %v9021_v52  ;;  %v5083_v5 = vpop.f32.mrf.mxu2  ;;  %5568 = vmatpush.bf16.msrb.mxu3 %v9036_v49 }
 0x327   :  { %v5096_v8 = vpop.f32.mrf.mxu3 }
 0x32a   :  { %5542 = vmatpush.bf16.msrb.mxu1 %v9020_v47  ;;  %5569 = vmatpush.bf16.msrb.mxu3 %v9035_v46 }
 0x32e   :  { %5543 = vmatpush.bf16.msrb.mxu1 %v9019_v33  ;;  %v5085_v31 = vpop.f32.mrf.mxu2  ;;  %5570 = vmatpush.bf16.msrb.mxu3 %v9034_v40 }
 0x32f   :  { %v5098_v1 = vpop.f32.mrf.mxu3  ;;  %v9057_v31 = vld [vmem:[#allocation14] ss:$0 sm:$0xff] }
 0x332   :  { %5544 = vmatpush.bf16.msrb.mxu1 %v9018_v61 }
 0x334   :  { %v5070_v60 = vpop.f32.mrf.mxu1 }
 0x335   :  { %5545 = vmatmul.bf16.vlgmr.msrb.gmra.mxu1 %v5261_v23  ;;  %v5071_v51 = vadd.f32 %v5070_v60, %v5058_v20 }
 0x337   :  { %v5084_v36 = vadd.f32 %v5083_v5, %v5071_v51 }
 0x339   :  { %v5109_v48 = vpop.f32.mrf.mxu0  ;;  %v5097_v22 = vadd.f32 %v5096_v8, %v5084_v36 }
 0x33b   :  { %v5110_v10 = vadd.f32 %v5109_v48, %v5097_v22 }
 0x33c   :  { %v5072_v54 = vpop.f32.mrf.mxu1 }
 0x341   :  { %v5111_v15 = vpop.f32.mrf.mxu0 }
 0x346   :  { %v5135_v53 = vpop.f32.mrf.mxu2 }
 0x347   :  { %v5148_v16 = vpop.f32.mrf.mxu3  ;;  %v5136_v17 = vadd.f32 %v5135_v53, %v3131_v12 }
 0x349   :  { %v5149_v19 = vadd.f32 %v5148_v16, %v5136_v17 }
 0x34e   :  { %v5137_v24 = vpop.f32.mrf.mxu2 }
 0x34f   :  { %v5150_v3 = vpop.f32.mrf.mxu3 }
 0x354   :  { %v5122_v26 = vpop.f32.mrf.mxu1 }
 0x355   :  { %v5123_v30 = vadd.f32 %v5122_v26, %v5110_v10 }
 0x357   :  { %v5258_v34 = vmax.f32 %v5123_v30, 0.0 }
 0x359   :  { %v5161_v28 = vpop.f32.mrf.mxu0  ;;  %v5262_v37 = vpack.c.bf16 %v5258_v34, %v5258_v34 }
 0x35a   :  { %v5162_v25 = vadd.f32 %v5161_v28, %v5149_v19 }
 0x35b   :  { %5558 = vmatmul.bf16.vlgmr.msrb.gmra.mxu2 %v5262_v37 }
 0x35c   :  { %v5124_v39 = vpop.f32.mrf.mxu1 }
 0x361   :  { %v5163_v14 = vpop.f32.mrf.mxu0 }
 0x366   :  { %v5187_v55 = vpop.f32.mrf.mxu2 }
 0x367   :  { %v5200_v50 = vpop.f32.mrf.mxu3 }
 0x36e   :  { %v5189_v43 = vpop.f32.mrf.mxu2 }
 0x36f   :  { %v5202_v44 = vpop.f32.mrf.mxu3 }
 0x374   :  { %v5174_v29 = vpop.f32.mrf.mxu1 }
 0x375   :  { %v5175_v38 = vadd.f32 %v5174_v29, %v5162_v25 }
 0x377   :  { %v5188_v57 = vadd.f32 %v5187_v55, %v5175_v38 }
 0x379   :  { %v5213_v2 = vpop.f32.mrf.mxu0  ;;  %v5201_v58 = vadd.f32 %v5200_v50, %v5188_v57 }
 0x37b   :  { %v5214_v35 = vadd.f32 %v5213_v2, %v5201_v58 }
 0x37c   :  { %v5176_v56 = vpop.f32.mrf.mxu1 }
 0x381   :  { %v5215_v18 = vpop.f32.mrf.mxu0 }
 0x386   :  { %v5239_v21 = vpop.f32.mrf.mxu2 }
 0x387   :  { %v5252_v32 = vpop.f32.mrf.mxu3 }
 0x38e   :  { %v5241_v52 = vpop.f32.mrf.mxu2 }
 0x38f   :  { %v5254_v0 = vpop.f32.mrf.mxu3 }
 0x392   :  { %v5226_v47 = vpop.f32.mrf.mxu1 }
 0x393   :  { %v5227_v5 = vadd.f32 %v5226_v47, %v5214_v35 }
 0x395   :  { %v5240_v8 = vadd.f32 %v5239_v21, %v5227_v5 }
 0x397   :  { %v5253_v59 = vadd.f32 %v5252_v32, %v5240_v8 }
 0x399   :  { %v5533_v7 = vpop.f32.mrf.mxu0  ;;  %v5259_v33 = vmax.f32 %v5253_v59, 0.0 }
 0x39a   :  { %v5228_v61 = vpop.f32.mrf.mxu1  ;;  %v5534_v1 = vadd.f32 %v9057_v31, %v5533_v7 }
 0x39b   :  { %v5263_v63 = vpack.c.bf16 %v5259_v33, %v5259_v33 }
 0x39d   :  { %5571 = vmatmul.bf16.vlgmr.msrb.gmra.mxu3 %v5263_v63 }
 0x3a1   :  { %v5535_v62 = vpop.f32.mrf.mxu0 }
 0x3b2   :  { %v5546_v9 = vpop.f32.mrf.mxu1 }
 0x3b3   :  { %v5547_v23 = vadd.f32 %v5546_v9, %v5534_v1 }
 0x3ba   :  { %v5548_v4 = vpop.f32.mrf.mxu1 }
 0x3de   :  { %v5559_v6 = vpop.f32.mrf.mxu2 }
 0x3df   :  { %v5560_v48 = vadd.f32 %v5559_v6, %v5547_v23 }
 0x3e6   :  { %v5561_v60 = vpop.f32.mrf.mxu2 }
 0x420   :  { %v5572_v11 = vpop.f32.mrf.mxu3 }
 0x421   :  { %v5573_v12 = vadd.f32 %v5572_v11, %v5560_v48 }
 0x423   :  { %5576 = vst [vmem:[#allocation16] sm:$0xff] %v5573_v12 }
 0x424   :  { %5587 = dma.vmem_to_hbm [thread:$0]  %s5583_s26, 128, %s5585_s29, [#allocation4]  }
 0x428   :  { %v5574_v54 = vpop.f32.mrf.mxu3 }
 0x429   :  { %9286 = dma.done.wait [#allocation4], 128  }
 0x42a   :  { %9287 = vsyncadd [#allocation4], 4294967168 }
 0x42b   :  { %5592 = vsyncpa [#allocation3], 1 }
 0x42c   :  { %5593 = vsyncpa [#allocation6], 1 }
 0x42d   :  { %5594 = vsyncpa [#allocation9], 1 }
 0x42e   :  { %5595 = vsyncpa [#allocation12], 1 }
 0x42f   :  { %5596 = vsyncpa [#allocation15], 1 }
 0x430   :  { %5597 = vsyncpa [#allocation4], 1 }

</bundles_post_ra>
